<compile_context>
chip_gen: v7x
topology: tpu7x:2x2x1
jax: 0.10.0
libtpu: 0.0.40
codegen_flags: <defaults>
</compile_context>

<pallas_src>
import jax
import jax.numpy as jnp
from jax.experimental import pallas as pl
from jax.experimental.pallas import tpu as pltpu

# ----------------------------- static sizes --------------------------------
K = 5                        # conv kernel size
C1_IN, C1_OUT = 3, 6         # conv1 channels
C2_IN, C2_OUT = 6, 16        # conv2 channels
W_IN = 32                    # input spatial size (implied by the 16*5*5 flatten)
PW1 = 14                     # pooled conv1 spatial size (28 -> 14)
PW2 = 5                      # pooled conv2 spatial size (10 -> 5)
FC1, FC2, FC3 = 120, 84, 10
LANE = 128                   # lane padding for K-blocks and FC widths
L1 = C1_IN * W_IN            # 96  : conv1 valid lanes per kernel-row block
L1O = C1_OUT * PW1           # 84  : conv1 pooled lanes (oc1*14 + px)
L2O = C2_OUT * PW2           # 80  : conv2 pooled lanes (oc2*5 + qx)
IMG_PER_STEP = 8             # images per grid step (use 16 on v6e/v7x for 256-row MXU)


# ---------------------------------------------------------------------------
# The single fused kernel (IMG_PER_STEP images per grid step).
# ---------------------------------------------------------------------------
def _lenet_kernel(s_ref, t1_ref, b1_ref, t2_ref, b2_ref,
                  v1_ref, fb1_ref, w2_ref, fb2_ref, w3_ref, fb3_ref,
                  out_ref,
                  lhs1_scr, lhs2_scr, p1_scr):
    f32, bf16 = jnp.float32, jnp.bfloat16
    B = out_ref.shape[0]          # images handled by this grid step
    RB = 8 * B                    # rows per pooled-row-parity half

    # conv1 LHS: 20 full-width, tile-aligned (RB x 128) bf16 stores straight from
    # the input slabs (pad lanes already zero host-side -> no scratch zeroing).
    # lhs1 row = pi*RB + m*B + b  (pooled row py = 2m+pi of image b),
    # lhs1 lane = i*128 + c*32 + w.
    for a1 in range(2):                       # pooling row quadrant
        for pi in range(2):                   # pooled-row parity
            for i in range(K):                # conv kernel row
                r = 2 * pi + a1 + i           # input-row phase (mod-4 slab index)
                lhs1_scr[a1, pl.ds(pi * RB, RB), pl.ds(i * LANE, LANE)] = s_ref[r]

    # conv1 + bias + ReLU + 2x2 maxpool as four (8B x 640)@(640 x 128) MXU dots
    # (quadrant/Toeplitz trick; column quadrant lives in the packed RHS).
    q1 = None
    for a1 in range(2):
        lhs = lhs1_scr[a1]                                            # bf16
        for b1 in range(2):                   # pooling column quadrant
            q = jnp.dot(lhs, t1_ref[b1], preferred_element_type=f32)
            q1 = q if q1 is None else jnp.maximum(q1, q)
    pooled1 = jnp.maximum(q1 + b1_ref[...], 0.0)   # rows pi*RB + m*B + b, lanes oc1*14+px
    p1_scr[0, :, :] = pooled1[:RB, :]
    p1_scr[1, :, :] = pooled1[RB:, :]

    # conv2 LHS: aligned contiguous (5B x 128) slices of pooled1.
    # lhs2 row = qy*B + b, lane = i*128 + c2*14 + u  (= pooled1's own lane layout).
    for a2 in range(2):
        for i in range(K):
            r2 = a2 + i
            pi2, rr2 = r2 % 2, r2 // 2
            lhs2_scr[a2, :, pl.ds(i * LANE, LANE)] = \
                p1_scr[pi2, pl.ds(rr2 * B, PW2 * B), :]

    # conv2 + bias + ReLU + 2x2 maxpool.
    q2 = None
    for a2 in range(2):
        lhs = lhs2_scr[a2].astype(bf16)
        for b2 in range(2):
            q = jnp.dot(lhs, t2_ref[b2], preferred_element_type=f32)
            q2 = q if q2 is None else jnp.maximum(q2, q)
    pooled2 = jnp.maximum(q2 + b2_ref[...], 0.0)   # rows qy*B + b, lanes oc2*5+qx

    # fc1 -> ReLU -> fc2 -> ReLU -> fc3; fc1 is ONE (B x 640)@(640 x 128) dot
    # (the torch .view flatten order is folded into the v1 weight packing).
    fc_lhs = jnp.concatenate(
        [pooled2[qy * B:(qy + 1) * B, :] for qy in range(PW2)], axis=1).astype(bf16)
    h1 = jnp.maximum(
        jnp.dot(fc_lhs, v1_ref[...], preferred_element_type=f32) + fb1_ref[...], 0.0)
    h2 = jnp.maximum(
        jnp.dot(h1.astype(bf16), w2_ref[...], preferred_element_type=f32)
        + fb2_ref[...], 0.0)
    out_ref[...] = (jnp.dot(h2.astype(bf16), w3_ref[...], preferred_element_type=f32)
                    + fb3_ref[...])               # (B, 128): lanes 0..9 valid per image


# ---------------------------------------------------------------------------
# Host-side packing (cheap XLA ops on tiny tensors; weights packed ONCE).
# ---------------------------------------------------------------------------
def _pack_input(x, B):
    """x:(N,3,32,32) -> S:(G,8,8B,128) bf16, S[g,r,m*B+b,c*32+w]=x[g*B+b,c,4m+r,w]."""
    n = x.shape[0]
    g = -(-n // B)
    xp = jnp.pad(x, ((0, g * B - n), (0, 0), (0, 0), (0, 0)))
    xp = xp.reshape(g, B, C1_IN, W_IN, W_IN)
    slabs = []
    for r in range(8):
        xr = xp[:, :, :, r::4, :]                               # (g,B,3,mr,32)
        pad_m = 8 - xr.shape[3]
        if pad_m:
            xr = jnp.pad(xr, ((0, 0), (0, 0), (0, 0), (0, pad_m), (0, 0)))
        xr = jnp.transpose(xr, (0, 3, 1, 2, 4)).reshape(g, 8 * B, L1)
        slabs.append(xr)
    s = jnp.stack(slabs, axis=1)                                # (g,8,8B,96)
    s = jnp.pad(s, ((0, 0), (0, 0), (0, 0), (0, LANE - L1)))
    return s.astype(jnp.bfloat16)


def _banded(wc, width, out_w):
    """Toeplitz gather: wc:(OC,C,K,K) -> (2,K,C*width,OC*out_w) banded over cols."""
    u = jnp.arange(width)[:, None, None]
    q = jnp.arange(out_w)[None, :, None]
    b = jnp.arange(2)[None, None, :]
    j = u - 2 * q - b                                           # (width,out_w,2)
    valid = (j >= 0) & (j < K)
    g = wc[:, :, :, jnp.clip(j, 0, K - 1)]                      # (OC,C,K,width,out_w,2)
    g = jnp.where(valid[None, None, None], g, 0.0)
    t = jnp.transpose(g, (5, 2, 1, 3, 0, 4))                    # (b,i,c,u,oc,q)
    oc, c = wc.shape[0], wc.shape[1]
    return t.reshape(2, K, c * width, oc * out_w)


def _pack_conv1(w1):
    t = _banded(w1, W_IN, PW1)                                  # (2,5,96,84)
    t = jnp.pad(t, ((0, 0), (0, 0), (0, LANE - L1), (0, LANE - L1O)))
    return t.reshape(2, K * LANE, LANE).astype(jnp.bfloat16)    # (2,640,128)


def _pack_conv2(w2):
    t = _banded(w2, PW1, PW2)                                   # (2,5,84,80)
    t = jnp.pad(t, ((0, 0), (0, 0), (0, LANE - C2_IN * PW1), (0, LANE - L2O)))
    return t.reshape(2, K * LANE, LANE).astype(jnp.bfloat16)    # (2,640,128)


def _pack_fc1(fc1_w):
    """fc1_w:(120,400) -> (640,128): row qy*128 + oc2*5 + qx, col h (torch .view order)."""
    v = fc1_w.reshape(FC1, C2_OUT, PW2, PW2)                    # (h,oc2,qy,qx)
    v = jnp.transpose(v, (2, 1, 3, 0)).reshape(PW2, L2O, FC1)   # (qy, oc2*5+qx, h)
    v = jnp.pad(v, ((0, 0), (0, LANE - L2O), (0, LANE - FC1)))  # (5,128,128)
    return v.reshape(PW2 * LANE, LANE).astype(jnp.bfloat16)


def pack_params(params):
    """One-time packing of Net parameters into MXU-friendly bf16 tiles (hoisted)."""
    p = {}
    p["t1"] = _pack_conv1(params["conv1_w"])
    p["b1"] = jnp.pad(jnp.repeat(params["conv1_b"], PW1), (0, LANE - L1O)).reshape(1, LANE)
    p["t2"] = _pack_conv2(params["conv2_w"])
    p["b2"] = jnp.pad(jnp.repeat(params["conv2_b"], PW2), (0, LANE - L2O)).reshape(1, LANE)
    p["v1"] = _pack_fc1(params["fc1_w"])
    p["fb1"] = jnp.pad(params["fc1_b"], (0, LANE - FC1)).reshape(1, LANE)
    p["w2"] = jnp.pad(params["fc2_w"].T,
                      ((0, LANE - FC1), (0, LANE - FC2))).astype(jnp.bfloat16)
    p["fb2"] = jnp.pad(params["fc2_b"], (0, LANE - FC2)).reshape(1, LANE)
    p["w3"] = jnp.pad(params["fc3_w"].T,
                      ((0, LANE - FC2), (0, LANE - FC3))).astype(jnp.bfloat16)
    p["fb3"] = jnp.pad(params["fc3_b"], (0, LANE - FC3)).reshape(1, LANE)
    return p


# ---------------------------------------------------------------------------
# Forward pass (numerically mirrors Net.forward; bf16 matmuls, f32 accumulation)
# ---------------------------------------------------------------------------
def net_forward(packed, x, images_per_step=IMG_PER_STEP):
    n = x.shape[0]
    B = images_per_step
    s = _pack_input(x, B)
    g = s.shape[0]

    def full(shape):
        nd = len(shape)
        return pl.BlockSpec(shape, lambda i, _nd=nd: (0,) * _nd)

    out = pl.pallas_call(
        _lenet_kernel,
        out_shape=jax.ShapeDtypeStruct((g * B, LANE), jnp.float32),
        grid=(g,),
        in_specs=[
            pl.BlockSpec((None, 8, 8 * B, LANE), lambda i: (i, 0, 0, 0)),  # input slabs
            full((2, K * LANE, LANE)), full((1, LANE)),                    # conv1 T / bias
            full((2, K * LANE, LANE)), full((1, LANE)),                    # conv2 T / bias
            full((K * LANE, LANE)), full((1, LANE)),                       # fc1
            full((LANE, LANE)), full((1, LANE)),                           # fc2
            full((LANE, LANE)), full((1, LANE)),                           # fc3
        ],
        out_specs=pl.BlockSpec((B, LANE), lambda i: (i, 0)),
        scratch_shapes=[
            pltpu.VMEM((2, 16 * B, K * LANE), jnp.bfloat16),   # conv1 LHS (both row quadrants)
            pltpu.VMEM((2, PW2 * B, K * LANE), jnp.float32),   # conv2 LHS
            pltpu.VMEM((2, 8 * B, LANE), jnp.float32),         # pooled1 parity halves
        ],
        compiler_params=pltpu.CompilerParams(dimension_semantics=("parallel",)),
    )(s, packed["t1"], packed["b1"], packed["t2"], packed["b2"],
      packed["v1"], packed["fb1"], packed["w2"], packed["fb2"],
      packed["w3"], packed["fb3"])
    return out[:n, :FC3]                                        # (N, 10)


# ---------------------------------------------------------------------------
# Deterministic parameter init (PyTorch-default-style uniform(+-1/sqrt(fan_in)))
# ---------------------------------------------------------------------------
def init_params(key, l1=120, l2=84):
    def linear_init(k, fan_in, fan_out):
        k1, k2 = jax.random.split(k)
        bound = 1.0 / float(fan_in) ** 0.5
        w = jax.random.uniform(k1, (fan_out, fan_in), jnp.float32, -bound, bound)
        b = jax.random.uniform(k2, (fan_out,), jnp.float32, -bound, bound)
        return w, b

    def conv_init(k, oc, ic, kh, kw):
        k1, k2 = jax.random.split(k)
        bound = 1.0 / float(ic * kh * kw) ** 0.5
        w = jax.random.uniform(k1, (oc, ic, kh, kw), jnp.float32, -bound, bound)
        b = jax.random.uniform(k2, (oc,), jnp.float32, -bound, bound)
        return w, b

    keys = jax.random.split(key, 5)
    p = {}
    p["conv1_w"], p["conv1_b"] = conv_init(keys[0], 6, 3, 5, 5)
    p["conv2_w"], p["conv2_b"] = conv_init(keys[1], 16, 6, 5, 5)
    p["fc1_w"], p["fc1_b"] = linear_init(keys[2], 16 * 5 * 5, l1)
    p["fc2_w"], p["fc2_b"] = linear_init(keys[3], l1, l2)
    p["fc3_w"], p["fc3_b"] = linear_init(keys[4], l2, 10)
    return p


# Pure-JAX f32 reference (same math as torch Net.forward) for a correctness check.
def _reference_forward(params, x):
    def conv(x, w, b):
        y = jax.lax.conv_general_dilated(
            x, w, window_strides=(1, 1), padding="VALID",
            dimension_numbers=("NCHW", "OIHW", "NCHW"))
        return jax.nn.relu(y + b[None, :, None, None])

    def pool(x):
        return jax.lax.reduce_window(x, -jnp.inf, jax.lax.max,
                                     (1, 1, 2, 2), (1, 1, 2, 2), "VALID")

    x = pool(conv(x, params["conv1_w"], params["conv1_b"]))
    x = pool(conv(x, params["conv2_w"], params["conv2_b"]))
    x = x.reshape(x.shape[0], -1)
    x = jax.nn.relu(x @ params["fc1_w"].T + params["fc1_b"])
    x = jax.nn.relu(x @ params["fc2_w"].T + params["fc2_b"])
    return x @ params["fc3_w"].T + params["fc3_b"]


if __name__ == "__main__":
    key = jax.random.PRNGKey(0)
    pkey, xkey = jax.random.split(key)
    params = init_params(pkey)
    # The 16*5*5 flatten implies a 3x32x32 spatial input (CIFAR-sized).
    x = jax.random.normal(xkey, (2, 3, 32, 32), jnp.float32)
    packed = pack_params(params)          # hoisted: pack weights once, reuse every call
    fwd = jax.jit(net_forward)
    out = jax.block_until_ready(fwd(packed, x))
    assert out.shape == (2, 10) and out.dtype == jnp.float32
    ref = _reference_forward(params, x)
    err = float(jnp.max(jnp.abs(out - ref)))
    assert jnp.allclose(out, ref, atol=5e-2, rtol=5e-2), f"max abs err {err}"
    print("KERNEL_OK")
</pallas_src>

<mosaic_0001>
module attributes {stable_mosaic.version = 11 : i64} {
  func.func @_lenet_kernel(%arg0: i32, %arg1: memref<1x8x64x128xbf16, #tpu.memory_space<vmem>>, %arg2: memref<2x640x128xbf16, #tpu.memory_space<vmem>>, %arg3: memref<1x128xf32, #tpu.memory_space<vmem>>, %arg4: memref<2x640x128xbf16, #tpu.memory_space<vmem>>, %arg5: memref<1x128xf32, #tpu.memory_space<vmem>>, %arg6: memref<640x128xbf16, #tpu.memory_space<vmem>>, %arg7: memref<1x128xf32, #tpu.memory_space<vmem>>, %arg8: memref<128x128xbf16, #tpu.memory_space<vmem>>, %arg9: memref<1x128xf32, #tpu.memory_space<vmem>>, %arg10: memref<128x128xbf16, #tpu.memory_space<vmem>>, %arg11: memref<1x128xf32, #tpu.memory_space<vmem>>, %arg12: memref<8x128xf32, #tpu.memory_space<vmem>>, %arg13: memref<2x128x640xbf16, #tpu.memory_space<vmem>>, %arg14: memref<2x40x640xf32, #tpu.memory_space<vmem>>, %arg15: memref<2x64x128xf32, #tpu.memory_space<vmem>>) attributes {dimension_semantics = [#tpu.dimension_semantics<parallel>], iteration_bounds = array<i64: 1>, scalar_prefetch = 0 : i64, scratch_operands = 3 : i64, tpu.core_type = #tpu.core_type<tc>, window_params = [{transform_indices = @transform_0, window_bounds = array<i64: 1, 8, 64, 128>}, {pipeline_mode = #tpu.pipeline_mode<synchronous>, transform_indices = @transform_1, window_bounds = array<i64: 2, 640, 128>}, {pipeline_mode = #tpu.pipeline_mode<synchronous>, transform_indices = @transform_2, window_bounds = array<i64: 1, 128>}, {pipeline_mode = #tpu.pipeline_mode<synchronous>, transform_indices = @transform_3, window_bounds = array<i64: 2, 640, 128>}, {pipeline_mode = #tpu.pipeline_mode<synchronous>, transform_indices = @transform_4, window_bounds = array<i64: 1, 128>}, {pipeline_mode = #tpu.pipeline_mode<synchronous>, transform_indices = @transform_5, window_bounds = array<i64: 640, 128>}, {pipeline_mode = #tpu.pipeline_mode<synchronous>, transform_indices = @transform_6, window_bounds = array<i64: 1, 128>}, {pipeline_mode = #tpu.pipeline_mode<synchronous>, transform_indices = @transform_7, window_bounds = array<i64: 128, 128>}, {pipeline_mode = #tpu.pipeline_mode<synchronous>, transform_indices = @transform_8, window_bounds = array<i64: 1, 128>}, {pipeline_mode = #tpu.pipeline_mode<synchronous>, transform_indices = @transform_9, window_bounds = array<i64: 128, 128>}, {pipeline_mode = #tpu.pipeline_mode<synchronous>, transform_indices = @transform_10, window_bounds = array<i64: 1, 128>}, {transform_indices = @transform_11, window_bounds = array<i64: 8, 128>}]} {
    %c0 = arith.constant 0 : index
    %c0_0 = arith.constant 0 : index
    %c0_1 = arith.constant 0 : index
    %c0_2 = arith.constant 0 : index
    %0 = vector.load %arg1[%c0, %c0_0, %c0_1, %c0_2] : memref<1x8x64x128xbf16, #tpu.memory_space<vmem>>, vector<1x1x64x128xbf16>
    %1 = vector.shape_cast %0 : vector<1x1x64x128xbf16> to vector<64x128xbf16>
    %c0_3 = arith.constant 0 : index
    %c0_4 = arith.constant 0 : index
    %c0_5 = arith.constant 0 : index
    %2 = vector.load %arg13[%c0_3, %c0_4, %c0_5] : memref<2x128x640xbf16, #tpu.memory_space<vmem>>, vector<1x64x128xbf16>
    %3 = vector.shape_cast %2 : vector<1x64x128xbf16> to vector<64x128xbf16>
    %4 = vector.shape_cast %1 : vector<64x128xbf16> to vector<1x64x128xbf16>
    tpu.vector_store %arg13[%c0_3, %c0_4, %c0_5], %4 {strides = array<i32>} : memref<2x128x640xbf16, #tpu.memory_space<vmem>>, vector<1x64x128xbf16>,
    %c0_6 = arith.constant 0 : index
    %c1 = arith.constant 1 : index
    %c0_7 = arith.constant 0 : index
    %c0_8 = arith.constant 0 : index
    %5 = vector.load %arg1[%c0_6, %c1, %c0_7, %c0_8] : memref<1x8x64x128xbf16, #tpu.memory_space<vmem>>, vector<1x1x64x128xbf16>
    %6 = vector.shape_cast %5 : vector<1x1x64x128xbf16> to vector<64x128xbf16>
    %c0_9 = arith.constant 0 : index
    %c0_10 = arith.constant 0 : index
    %c128 = arith.constant 128 : index
    %7 = vector.load %arg13[%c0_9, %c0_10, %c128] : memref<2x128x640xbf16, #tpu.memory_space<vmem>>, vector<1x64x128xbf16>
    %8 = vector.shape_cast %7 : vector<1x64x128xbf16> to vector<64x128xbf16>
    %9 = vector.shape_cast %6 : vector<64x128xbf16> to vector<1x64x128xbf16>
    tpu.vector_store %arg13[%c0_9, %c0_10, %c128], %9 {strides = array<i32>} : memref<2x128x640xbf16, #tpu.memory_space<vmem>>, vector<1x64x128xbf16>,
    %c0_11 = arith.constant 0 : index
    %c2 = arith.constant 2 : index
    %c0_12 = arith.constant 0 : index
    %c0_13 = arith.constant 0 : index
    %10 = vector.load %arg1[%c0_11, %c2, %c0_12, %c0_13] : memref<1x8x64x128xbf16, #tpu.memory_space<vmem>>, vector<1x1x64x128xbf16>
    %11 = vector.shape_cast %10 : vector<1x1x64x128xbf16> to vector<64x128xbf16>
    %c0_14 = arith.constant 0 : index
    %c0_15 = arith.constant 0 : index
    %c256 = arith.constant 256 : index
    %12 = vector.load %arg13[%c0_14, %c0_15, %c256] : memref<2x128x640xbf16, #tpu.memory_space<vmem>>, vector<1x64x128xbf16>
    %13 = vector.shape_cast %12 : vector<1x64x128xbf16> to vector<64x128xbf16>
    %14 = vector.shape_cast %11 : vector<64x128xbf16> to vector<1x64x128xbf16>
    tpu.vector_store %arg13[%c0_14, %c0_15, %c256], %14 {strides = array<i32>} : memref<2x128x640xbf16, #tpu.memory_space<vmem>>, vector<1x64x128xbf16>,
    %c0_16 = arith.constant 0 : index
    %c3 = arith.constant 3 : index
    %c0_17 = arith.constant 0 : index
    %c0_18 = arith.constant 0 : index
    %15 = vector.load %arg1[%c0_16, %c3, %c0_17, %c0_18] : memref<1x8x64x128xbf16, #tpu.memory_space<vmem>>, vector<1x1x64x128xbf16>
    %16 = vector.shape_cast %15 : vector<1x1x64x128xbf16> to vector<64x128xbf16>
    %c0_19 = arith.constant 0 : index
    %c0_20 = arith.constant 0 : index
    %c384 = arith.constant 384 : index
    %17 = vector.load %arg13[%c0_19, %c0_20, %c384] : memref<2x128x640xbf16, #tpu.memory_space<vmem>>, vector<1x64x128xbf16>
    %18 = vector.shape_cast %17 : vector<1x64x128xbf16> to vector<64x128xbf16>
    %19 = vector.shape_cast %16 : vector<64x128xbf16> to vector<1x64x128xbf16>
    tpu.vector_store %arg13[%c0_19, %c0_20, %c384], %19 {strides = array<i32>} : memref<2x128x640xbf16, #tpu.memory_space<vmem>>, vector<1x64x128xbf16>,
    %c0_21 = arith.constant 0 : index
    %c4 = arith.constant 4 : index
    %c0_22 = arith.constant 0 : index
    %c0_23 = arith.constant 0 : index
    %20 = vector.load %arg1[%c0_21, %c4, %c0_22, %c0_23] : memref<1x8x64x128xbf16, #tpu.memory_space<vmem>>, vector<1x1x64x128xbf16>
    %21 = vector.shape_cast %20 : vector<1x1x64x128xbf16> to vector<64x128xbf16>
    %c0_24 = arith.constant 0 : index
    %c0_25 = arith.constant 0 : index
    %c512 = arith.constant 512 : index
    %22 = vector.load %arg13[%c0_24, %c0_25, %c512] : memref<2x128x640xbf16, #tpu.memory_space<vmem>>, vector<1x64x128xbf16>
    %23 = vector.shape_cast %22 : vector<1x64x128xbf16> to vector<64x128xbf16>
    %24 = vector.shape_cast %21 : vector<64x128xbf16> to vector<1x64x128xbf16>
    tpu.vector_store %arg13[%c0_24, %c0_25, %c512], %24 {strides = array<i32>} : memref<2x128x640xbf16, #tpu.memory_space<vmem>>, vector<1x64x128xbf16>,
    %c0_26 = arith.constant 0 : index
    %c2_27 = arith.constant 2 : index
    %c0_28 = arith.constant 0 : index
    %c0_29 = arith.constant 0 : index
    %25 = vector.load %arg1[%c0_26, %c2_27, %c0_28, %c0_29] : memref<1x8x64x128xbf16, #tpu.memory_space<vmem>>, vector<1x1x64x128xbf16>
    %26 = vector.shape_cast %25 : vector<1x1x64x128xbf16> to vector<64x128xbf16>
    %c0_30 = arith.constant 0 : index
    %c64 = arith.constant 64 : index
    %c0_31 = arith.constant 0 : index
    %27 = vector.load %arg13[%c0_30, %c64, %c0_31] : memref<2x128x640xbf16, #tpu.memory_space<vmem>>, vector<1x64x128xbf16>
    %28 = vector.shape_cast %27 : vector<1x64x128xbf16> to vector<64x128xbf16>
    %29 = vector.shape_cast %26 : vector<64x128xbf16> to vector<1x64x128xbf16>
    tpu.vector_store %arg13[%c0_30, %c64, %c0_31], %29 {strides = array<i32>} : memref<2x128x640xbf16, #tpu.memory_space<vmem>>, vector<1x64x128xbf16>,
    %c0_32 = arith.constant 0 : index
    %c3_33 = arith.constant 3 : index
    %c0_34 = arith.constant 0 : index
    %c0_35 = arith.constant 0 : index
    %30 = vector.load %arg1[%c0_32, %c3_33, %c0_34, %c0_35] : memref<1x8x64x128xbf16, #tpu.memory_space<vmem>>, vector<1x1x64x128xbf16>
    %31 = vector.shape_cast %30 : vector<1x1x64x128xbf16> to vector<64x128xbf16>
    %c0_36 = arith.constant 0 : index
    %c64_37 = arith.constant 64 : index
    %c128_38 = arith.constant 128 : index
    %32 = vector.load %arg13[%c0_36, %c64_37, %c128_38] : memref<2x128x640xbf16, #tpu.memory_space<vmem>>, vector<1x64x128xbf16>
    %33 = vector.shape_cast %32 : vector<1x64x128xbf16> to vector<64x128xbf16>
    %34 = vector.shape_cast %31 : vector<64x128xbf16> to vector<1x64x128xbf16>
    tpu.vector_store %arg13[%c0_36, %c64_37, %c128_38], %34 {strides = array<i32>} : memref<2x128x640xbf16, #tpu.memory_space<vmem>>, vector<1x64x128xbf16>,
    %c0_39 = arith.constant 0 : index
    %c4_40 = arith.constant 4 : index
    %c0_41 = arith.constant 0 : index
    %c0_42 = arith.constant 0 : index
    %35 = vector.load %arg1[%c0_39, %c4_40, %c0_41, %c0_42] : memref<1x8x64x128xbf16, #tpu.memory_space<vmem>>, vector<1x1x64x128xbf16>
    %36 = vector.shape_cast %35 : vector<1x1x64x128xbf16> to vector<64x128xbf16>
    %c0_43 = arith.constant 0 : index
    %c64_44 = arith.constant 64 : index
    %c256_45 = arith.constant 256 : index
    %37 = vector.load %arg13[%c0_43, %c64_44, %c256_45] : memref<2x128x640xbf16, #tpu.memory_space<vmem>>, vector<1x64x128xbf16>
    %38 = vector.shape_cast %37 : vector<1x64x128xbf16> to vector<64x128xbf16>
    %39 = vector.shape_cast %36 : vector<64x128xbf16> to vector<1x64x128xbf16>
    tpu.vector_store %arg13[%c0_43, %c64_44, %c256_45], %39 {strides = array<i32>} : memref<2x128x640xbf16, #tpu.memory_space<vmem>>, vector<1x64x128xbf16>,
    %c0_46 = arith.constant 0 : index
    %c5 = arith.constant 5 : index
    %c0_47 = arith.constant 0 : index
    %c0_48 = arith.constant 0 : index
    %40 = vector.load %arg1[%c0_46, %c5, %c0_47, %c0_48] : memref<1x8x64x128xbf16, #tpu.memory_space<vmem>>, vector<1x1x64x128xbf16>
    %41 = vector.shape_cast %40 : vector<1x1x64x128xbf16> to vector<64x128xbf16>
    %c0_49 = arith.constant 0 : index
    %c64_50 = arith.constant 64 : index
    %c384_51 = arith.constant 384 : index
    %42 = vector.load %arg13[%c0_49, %c64_50, %c384_51] : memref<2x128x640xbf16, #tpu.memory_space<vmem>>, vector<1x64x128xbf16>
    %43 = vector.shape_cast %42 : vector<1x64x128xbf16> to vector<64x128xbf16>
    %44 = vector.shape_cast %41 : vector<64x128xbf16> to vector<1x64x128xbf16>
    tpu.vector_store %arg13[%c0_49, %c64_50, %c384_51], %44 {strides = array<i32>} : memref<2x128x640xbf16, #tpu.memory_space<vmem>>, vector<1x64x128xbf16>,
    %c0_52 = arith.constant 0 : index
    %c6 = arith.constant 6 : index
    %c0_53 = arith.constant 0 : index
    %c0_54 = arith.constant 0 : index
    %45 = vector.load %arg1[%c0_52, %c6, %c0_53, %c0_54] : memref<1x8x64x128xbf16, #tpu.memory_space<vmem>>, vector<1x1x64x128xbf16>
    %46 = vector.shape_cast %45 : vector<1x1x64x128xbf16> to vector<64x128xbf16>
    %c0_55 = arith.constant 0 : index
    %c64_56 = arith.constant 64 : index
    %c512_57 = arith.constant 512 : index
    %47 = vector.load %arg13[%c0_55, %c64_56, %c512_57] : memref<2x128x640xbf16, #tpu.memory_space<vmem>>, vector<1x64x128xbf16>
    %48 = vector.shape_cast %47 : vector<1x64x128xbf16> to vector<64x128xbf16>
    %49 = vector.shape_cast %46 : vector<64x128xbf16> to vector<1x64x128xbf16>
    tpu.vector_store %arg13[%c0_55, %c64_56, %c512_57], %49 {strides = array<i32>} : memref<2x128x640xbf16, #tpu.memory_space<vmem>>, vector<1x64x128xbf16>,
    %c0_58 = arith.constant 0 : index
    %c1_59 = arith.constant 1 : index
    %c0_60 = arith.constant 0 : index
    %c0_61 = arith.constant 0 : index
    %50 = vector.load %arg1[%c0_58, %c1_59, %c0_60, %c0_61] : memref<1x8x64x128xbf16, #tpu.memory_space<vmem>>, vector<1x1x64x128xbf16>
    %51 = vector.shape_cast %50 : vector<1x1x64x128xbf16> to vector<64x128xbf16>
    %c1_62 = arith.constant 1 : index
    %c0_63 = arith.constant 0 : index
    %c0_64 = arith.constant 0 : index
    %52 = vector.load %arg13[%c1_62, %c0_63, %c0_64] : memref<2x128x640xbf16, #tpu.memory_space<vmem>>, vector<1x64x128xbf16>
    %53 = vector.shape_cast %52 : vector<1x64x128xbf16> to vector<64x128xbf16>
    %54 = vector.shape_cast %51 : vector<64x128xbf16> to vector<1x64x128xbf16>
    tpu.vector_store %arg13[%c1_62, %c0_63, %c0_64], %54 {strides = array<i32>} : memref<2x128x640xbf16, #tpu.memory_space<vmem>>, vector<1x64x128xbf16>,
    %c0_65 = arith.constant 0 : index
    %c2_66 = arith.constant 2 : index
    %c0_67 = arith.constant 0 : index
    %c0_68 = arith.constant 0 : index
    %55 = vector.load %arg1[%c0_65, %c2_66, %c0_67, %c0_68] : memref<1x8x64x128xbf16, #tpu.memory_space<vmem>>, vector<1x1x64x128xbf16>
    %56 = vector.shape_cast %55 : vector<1x1x64x128xbf16> to vector<64x128xbf16>
    %c1_69 = arith.constant 1 : index
    %c0_70 = arith.constant 0 : index
    %c128_71 = arith.constant 128 : index
    %57 = vector.load %arg13[%c1_69, %c0_70, %c128_71] : memref<2x128x640xbf16, #tpu.memory_space<vmem>>, vector<1x64x128xbf16>
    %58 = vector.shape_cast %57 : vector<1x64x128xbf16> to vector<64x128xbf16>
    %59 = vector.shape_cast %56 : vector<64x128xbf16> to vector<1x64x128xbf16>
    tpu.vector_store %arg13[%c1_69, %c0_70, %c128_71], %59 {strides = array<i32>} : memref<2x128x640xbf16, #tpu.memory_space<vmem>>, vector<1x64x128xbf16>,
    %c0_72 = arith.constant 0 : index
    %c3_73 = arith.constant 3 : index
    %c0_74 = arith.constant 0 : index
    %c0_75 = arith.constant 0 : index
    %60 = vector.load %arg1[%c0_72, %c3_73, %c0_74, %c0_75] : memref<1x8x64x128xbf16, #tpu.memory_space<vmem>>, vector<1x1x64x128xbf16>
    %61 = vector.shape_cast %60 : vector<1x1x64x128xbf16> to vector<64x128xbf16>
    %c1_76 = arith.constant 1 : index
    %c0_77 = arith.constant 0 : index
    %c256_78 = arith.constant 256 : index
    %62 = vector.load %arg13[%c1_76, %c0_77, %c256_78] : memref<2x128x640xbf16, #tpu.memory_space<vmem>>, vector<1x64x128xbf16>
    %63 = vector.shape_cast %62 : vector<1x64x128xbf16> to vector<64x128xbf16>
    %64 = vector.shape_cast %61 : vector<64x128xbf16> to vector<1x64x128xbf16>
    tpu.vector_store %arg13[%c1_76, %c0_77, %c256_78], %64 {strides = array<i32>} : memref<2x128x640xbf16, #tpu.memory_space<vmem>>, vector<1x64x128xbf16>,
    %c0_79 = arith.constant 0 : index
    %c4_80 = arith.constant 4 : index
    %c0_81 = arith.constant 0 : index
    %c0_82 = arith.constant 0 : index
    %65 = vector.load %arg1[%c0_79, %c4_80, %c0_81, %c0_82] : memref<1x8x64x128xbf16, #tpu.memory_space<vmem>>, vector<1x1x64x128xbf16>
    %66 = vector.shape_cast %65 : vector<1x1x64x128xbf16> to vector<64x128xbf16>
    %c1_83 = arith.constant 1 : index
    %c0_84 = arith.constant 0 : index
    %c384_85 = arith.constant 384 : index
    %67 = vector.load %arg13[%c1_83, %c0_84, %c384_85] : memref<2x128x640xbf16, #tpu.memory_space<vmem>>, vector<1x64x128xbf16>
    %68 = vector.shape_cast %67 : vector<1x64x128xbf16> to vector<64x128xbf16>
    %69 = vector.shape_cast %66 : vector<64x128xbf16> to vector<1x64x128xbf16>
    tpu.vector_store %arg13[%c1_83, %c0_84, %c384_85], %69 {strides = array<i32>} : memref<2x128x640xbf16, #tpu.memory_space<vmem>>, vector<1x64x128xbf16>,
    %c0_86 = arith.constant 0 : index
    %c5_87 = arith.constant 5 : index
    %c0_88 = arith.constant 0 : index
    %c0_89 = arith.constant 0 : index
    %70 = vector.load %arg1[%c0_86, %c5_87, %c0_88, %c0_89] : memref<1x8x64x128xbf16, #tpu.memory_space<vmem>>, vector<1x1x64x128xbf16>
    %71 = vector.shape_cast %70 : vector<1x1x64x128xbf16> to vector<64x128xbf16>
    %c1_90 = arith.constant 1 : index
    %c0_91 = arith.constant 0 : index
    %c512_92 = arith.constant 512 : index
    %72 = vector.load %arg13[%c1_90, %c0_91, %c512_92] : memref<2x128x640xbf16, #tpu.memory_space<vmem>>, vector<1x64x128xbf16>
    %73 = vector.shape_cast %72 : vector<1x64x128xbf16> to vector<64x128xbf16>
    %74 = vector.shape_cast %71 : vector<64x128xbf16> to vector<1x64x128xbf16>
    tpu.vector_store %arg13[%c1_90, %c0_91, %c512_92], %74 {strides = array<i32>} : memref<2x128x640xbf16, #tpu.memory_space<vmem>>, vector<1x64x128xbf16>,
    %c0_93 = arith.constant 0 : index
    %c3_94 = arith.constant 3 : index
    %c0_95 = arith.constant 0 : index
    %c0_96 = arith.constant 0 : index
    %75 = vector.load %arg1[%c0_93, %c3_94, %c0_95, %c0_96] : memref<1x8x64x128xbf16, #tpu.memory_space<vmem>>, vector<1x1x64x128xbf16>
    %76 = vector.shape_cast %75 : vector<1x1x64x128xbf16> to vector<64x128xbf16>
    %c1_97 = arith.constant 1 : index
    %c64_98 = arith.constant 64 : index
    %c0_99 = arith.constant 0 : index
    %77 = vector.load %arg13[%c1_97, %c64_98, %c0_99] : memref<2x128x640xbf16, #tpu.memory_space<vmem>>, vector<1x64x128xbf16>
    %78 = vector.shape_cast %77 : vector<1x64x128xbf16> to vector<64x128xbf16>
    %79 = vector.shape_cast %76 : vector<64x128xbf16> to vector<1x64x128xbf16>
    tpu.vector_store %arg13[%c1_97, %c64_98, %c0_99], %79 {strides = array<i32>} : memref<2x128x640xbf16, #tpu.memory_space<vmem>>, vector<1x64x128xbf16>,
    %c0_100 = arith.constant 0 : index
    %c4_101 = arith.constant 4 : index
    %c0_102 = arith.constant 0 : index
    %c0_103 = arith.constant 0 : index
    %80 = vector.load %arg1[%c0_100, %c4_101, %c0_102, %c0_103] : memref<1x8x64x128xbf16, #tpu.memory_space<vmem>>, vector<1x1x64x128xbf16>
    %81 = vector.shape_cast %80 : vector<1x1x64x128xbf16> to vector<64x128xbf16>
    %c1_104 = arith.constant 1 : index
    %c64_105 = arith.constant 64 : index
    %c128_106 = arith.constant 128 : index
    %82 = vector.load %arg13[%c1_104, %c64_105, %c128_106] : memref<2x128x640xbf16, #tpu.memory_space<vmem>>, vector<1x64x128xbf16>
    %83 = vector.shape_cast %82 : vector<1x64x128xbf16> to vector<64x128xbf16>
    %84 = vector.shape_cast %81 : vector<64x128xbf16> to vector<1x64x128xbf16>
    tpu.vector_store %arg13[%c1_104, %c64_105, %c128_106], %84 {strides = array<i32>} : memref<2x128x640xbf16, #tpu.memory_space<vmem>>, vector<1x64x128xbf16>,
    %c0_107 = arith.constant 0 : index
    %c5_108 = arith.constant 5 : index
    %c0_109 = arith.constant 0 : index
    %c0_110 = arith.constant 0 : index
    %85 = vector.load %arg1[%c0_107, %c5_108, %c0_109, %c0_110] : memref<1x8x64x128xbf16, #tpu.memory_space<vmem>>, vector<1x1x64x128xbf16>
    %86 = vector.shape_cast %85 : vector<1x1x64x128xbf16> to vector<64x128xbf16>
    %c1_111 = arith.constant 1 : index
    %c64_112 = arith.constant 64 : index
    %c256_113 = arith.constant 256 : index
    %87 = vector.load %arg13[%c1_111, %c64_112, %c256_113] : memref<2x128x640xbf16, #tpu.memory_space<vmem>>, vector<1x64x128xbf16>
    %88 = vector.shape_cast %87 : vector<1x64x128xbf16> to vector<64x128xbf16>
    %89 = vector.shape_cast %86 : vector<64x128xbf16> to vector<1x64x128xbf16>
    tpu.vector_store %arg13[%c1_111, %c64_112, %c256_113], %89 {strides = array<i32>} : memref<2x128x640xbf16, #tpu.memory_space<vmem>>, vector<1x64x128xbf16>,
    %c0_114 = arith.constant 0 : index
    %c6_115 = arith.constant 6 : index
    %c0_116 = arith.constant 0 : index
    %c0_117 = arith.constant 0 : index
    %90 = vector.load %arg1[%c0_114, %c6_115, %c0_116, %c0_117] : memref<1x8x64x128xbf16, #tpu.memory_space<vmem>>, vector<1x1x64x128xbf16>
    %91 = vector.shape_cast %90 : vector<1x1x64x128xbf16> to vector<64x128xbf16>
    %c1_118 = arith.constant 1 : index
    %c64_119 = arith.constant 64 : index
    %c384_120 = arith.constant 384 : index
    %92 = vector.load %arg13[%c1_118, %c64_119, %c384_120] : memref<2x128x640xbf16, #tpu.memory_space<vmem>>, vector<1x64x128xbf16>
    %93 = vector.shape_cast %92 : vector<1x64x128xbf16> to vector<64x128xbf16>
    %94 = vector.shape_cast %91 : vector<64x128xbf16> to vector<1x64x128xbf16>
    tpu.vector_store %arg13[%c1_118, %c64_119, %c384_120], %94 {strides = array<i32>} : memref<2x128x640xbf16, #tpu.memory_space<vmem>>, vector<1x64x128xbf16>,
    %c0_121 = arith.constant 0 : index
    %c7 = arith.constant 7 : index
    %c0_122 = arith.constant 0 : index
    %c0_123 = arith.constant 0 : index
    %95 = vector.load %arg1[%c0_121, %c7, %c0_122, %c0_123] : memref<1x8x64x128xbf16, #tpu.memory_space<vmem>>, vector<1x1x64x128xbf16>
    %96 = vector.shape_cast %95 : vector<1x1x64x128xbf16> to vector<64x128xbf16>
    %c1_124 = arith.constant 1 : index
    %c64_125 = arith.constant 64 : index
    %c512_126 = arith.constant 512 : index
    %97 = vector.load %arg13[%c1_124, %c64_125, %c512_126] : memref<2x128x640xbf16, #tpu.memory_space<vmem>>, vector<1x64x128xbf16>
    %98 = vector.shape_cast %97 : vector<1x64x128xbf16> to vector<64x128xbf16>
    %99 = vector.shape_cast %96 : vector<64x128xbf16> to vector<1x64x128xbf16>
    tpu.vector_store %arg13[%c1_124, %c64_125, %c512_126], %99 {strides = array<i32>} : memref<2x128x640xbf16, #tpu.memory_space<vmem>>, vector<1x64x128xbf16>,
    %c0_127 = arith.constant 0 : index
    %c0_128 = arith.constant 0 : index
    %c0_129 = arith.constant 0 : index
    %100 = vector.load %arg13[%c0_127, %c0_128, %c0_129] : memref<2x128x640xbf16, #tpu.memory_space<vmem>>, vector<1x128x640xbf16>
    %101 = vector.shape_cast %100 : vector<1x128x640xbf16> to vector<128x640xbf16>
    %c0_130 = arith.constant 0 : index
    %c0_131 = arith.constant 0 : index
    %c0_132 = arith.constant 0 : index
    %102 = vector.load %arg2[%c0_130, %c0_131, %c0_132] : memref<2x640x128xbf16, #tpu.memory_space<vmem>>, vector<1x640x128xbf16>
    %103 = vector.shape_cast %102 : vector<1x640x128xbf16> to vector<640x128xbf16>
    %cst = arith.constant dense<0.000000e+00> : vector<128x128xf32>
    %104 = tpu.matmul %101, %103, %cst {dimension_numbers = #tpu.dot_dimension_numbers<[1], [0], [0], [1], [0, 0, 1, 1], [], []>} : vector<128x640xbf16>, vector<640x128xbf16>, vector<128x128xf32> -> vector<128x128xf32>
    %c1_133 = arith.constant 1 : index
    %c0_134 = arith.constant 0 : index
    %c0_135 = arith.constant 0 : index
    %105 = vector.load %arg2[%c1_133, %c0_134, %c0_135] : memref<2x640x128xbf16, #tpu.memory_space<vmem>>, vector<1x640x128xbf16>
    %106 = vector.shape_cast %105 : vector<1x640x128xbf16> to vector<640x128xbf16>
    %cst_136 = arith.constant dense<0.000000e+00> : vector<128x128xf32>
    %107 = tpu.matmul %101, %106, %cst_136 {dimension_numbers = #tpu.dot_dimension_numbers<[1], [0], [0], [1], [0, 0, 1, 1], [], []>} : vector<128x640xbf16>, vector<640x128xbf16>, vector<128x128xf32> -> vector<128x128xf32>
    %108 = arith.maximumf %104, %107 : vector<128x128xf32>
    %c1_137 = arith.constant 1 : index
    %c0_138 = arith.constant 0 : index
    %c0_139 = arith.constant 0 : index
    %109 = vector.load %arg13[%c1_137, %c0_138, %c0_139] : memref<2x128x640xbf16, #tpu.memory_space<vmem>>, vector<1x128x640xbf16>
    %110 = vector.shape_cast %109 : vector<1x128x640xbf16> to vector<128x640xbf16>
    %c0_140 = arith.constant 0 : index
    %c0_141 = arith.constant 0 : index
    %c0_142 = arith.constant 0 : index
    %111 = vector.load %arg2[%c0_140, %c0_141, %c0_142] : memref<2x640x128xbf16, #tpu.memory_space<vmem>>, vector<1x640x128xbf16>
    %112 = vector.shape_cast %111 : vector<1x640x128xbf16> to vector<640x128xbf16>
    %cst_143 = arith.constant dense<0.000000e+00> : vector<128x128xf32>
    %113 = tpu.matmul %110, %112, %cst_143 {dimension_numbers = #tpu.dot_dimension_numbers<[1], [0], [0], [1], [0, 0, 1, 1], [], []>} : vector<128x640xbf16>, vector<640x128xbf16>, vector<128x128xf32> -> vector<128x128xf32>
    %114 = arith.maximumf %108, %113 : vector<128x128xf32>
    %c1_144 = arith.constant 1 : index
    %c0_145 = arith.constant 0 : index
    %c0_146 = arith.constant 0 : index
    %115 = vector.load %arg2[%c1_144, %c0_145, %c0_146] : memref<2x640x128xbf16, #tpu.memory_space<vmem>>, vector<1x640x128xbf16>
    %116 = vector.shape_cast %115 : vector<1x640x128xbf16> to vector<640x128xbf16>
    %cst_147 = arith.constant dense<0.000000e+00> : vector<128x128xf32>
    %117 = tpu.matmul %110, %116, %cst_147 {dimension_numbers = #tpu.dot_dimension_numbers<[1], [0], [0], [1], [0, 0, 1, 1], [], []>} : vector<128x640xbf16>, vector<640x128xbf16>, vector<128x128xf32> -> vector<128x128xf32>
    %118 = arith.maximumf %114, %117 : vector<128x128xf32>
    %c0_148 = arith.constant 0 : index
    %c0_149 = arith.constant 0 : index
    %119 = vector.load %arg3[%c0_148, %c0_149] : memref<1x128xf32, #tpu.memory_space<vmem>>, vector<1x128xf32>
    %120 = vector.broadcast %119 : vector<1x128xf32> to vector<128x128xf32>
    %121 = arith.addf %118, %120 : vector<128x128xf32>
    %cst_150 = arith.constant 0.000000e+00 : f32
    %122 = vector.broadcast %cst_150 : f32 to vector<128x128xf32>
    %123 = arith.maximumf %121, %122 : vector<128x128xf32>
    %124 = vector.extract_strided_slice %123 {offsets = [0, 0], sizes = [64, 128], strides = [1, 1]} : vector<128x128xf32> to vector<64x128xf32>
    %c0_151 = arith.constant 0 : index
    %c0_152 = arith.constant 0 : index
    %c0_153 = arith.constant 0 : index
    %125 = vector.load %arg15[%c0_151, %c0_152, %c0_153] : memref<2x64x128xf32, #tpu.memory_space<vmem>>, vector<1x64x128xf32>
    %126 = vector.shape_cast %125 : vector<1x64x128xf32> to vector<64x128xf32>
    %127 = vector.shape_cast %124 : vector<64x128xf32> to vector<1x64x128xf32>
    tpu.vector_store %arg15[%c0_151, %c0_152, %c0_153], %127 {strides = array<i32>} : memref<2x64x128xf32, #tpu.memory_space<vmem>>, vector<1x64x128xf32>,
    %128 = vector.extract_strided_slice %123 {offsets = [64, 0], sizes = [64, 128], strides = [1, 1]} : vector<128x128xf32> to vector<64x128xf32>
    %c1_154 = arith.constant 1 : index
    %c0_155 = arith.constant 0 : index
    %c0_156 = arith.constant 0 : index
    %129 = vector.load %arg15[%c1_154, %c0_155, %c0_156] : memref<2x64x128xf32, #tpu.memory_space<vmem>>, vector<1x64x128xf32>
    %130 = vector.shape_cast %129 : vector<1x64x128xf32> to vector<64x128xf32>
    %131 = vector.shape_cast %128 : vector<64x128xf32> to vector<1x64x128xf32>
    tpu.vector_store %arg15[%c1_154, %c0_155, %c0_156], %131 {strides = array<i32>} : memref<2x64x128xf32, #tpu.memory_space<vmem>>, vector<1x64x128xf32>,
    %c0_157 = arith.constant 0 : index
    %c0_158 = arith.constant 0 : index
    %c0_159 = arith.constant 0 : index
    %132 = vector.load %arg15[%c0_157, %c0_158, %c0_159] : memref<2x64x128xf32, #tpu.memory_space<vmem>>, vector<1x40x128xf32>
    %133 = vector.shape_cast %132 : vector<1x40x128xf32> to vector<40x128xf32>
    %c0_160 = arith.constant 0 : index
    %c0_161 = arith.constant 0 : index
    %c0_162 = arith.constant 0 : index
    %134 = vector.load %arg14[%c0_160, %c0_161, %c0_162] : memref<2x40x640xf32, #tpu.memory_space<vmem>>, vector<1x40x128xf32>
    %135 = vector.shape_cast %134 : vector<1x40x128xf32> to vector<40x128xf32>
    %136 = vector.shape_cast %133 : vector<40x128xf32> to vector<1x40x128xf32>
    tpu.vector_store %arg14[%c0_160, %c0_161, %c0_162], %136 {strides = array<i32>} : memref<2x40x640xf32, #tpu.memory_space<vmem>>, vector<1x40x128xf32>,
    %c1_163 = arith.constant 1 : index
    %c0_164 = arith.constant 0 : index
    %c0_165 = arith.constant 0 : index
    %137 = vector.load %arg15[%c1_163, %c0_164, %c0_165] : memref<2x64x128xf32, #tpu.memory_space<vmem>>, vector<1x40x128xf32>
    %138 = vector.shape_cast %137 : vector<1x40x128xf32> to vector<40x128xf32>
    %c0_166 = arith.constant 0 : index
    %c0_167 = arith.constant 0 : index
    %c128_168 = arith.constant 128 : index
    %139 = vector.load %arg14[%c0_166, %c0_167, %c128_168] : memref<2x40x640xf32, #tpu.memory_space<vmem>>, vector<1x40x128xf32>
    %140 = vector.shape_cast %139 : vector<1x40x128xf32> to vector<40x128xf32>
    %141 = vector.shape_cast %138 : vector<40x128xf32> to vector<1x40x128xf32>
    tpu.vector_store %arg14[%c0_166, %c0_167, %c128_168], %141 {strides = array<i32>} : memref<2x40x640xf32, #tpu.memory_space<vmem>>, vector<1x40x128xf32>,
    %c0_169 = arith.constant 0 : index
    %c8 = arith.constant 8 : index
    %c0_170 = arith.constant 0 : index
    %142 = vector.load %arg15[%c0_169, %c8, %c0_170] : memref<2x64x128xf32, #tpu.memory_space<vmem>>, vector<1x40x128xf32>
    %143 = vector.shape_cast %142 : vector<1x40x128xf32> to vector<40x128xf32>
    %c0_171 = arith.constant 0 : index
    %c0_172 = arith.constant 0 : index
    %c256_173 = arith.constant 256 : index
    %144 = vector.load %arg14[%c0_171, %c0_172, %c256_173] : memref<2x40x640xf32, #tpu.memory_space<vmem>>, vector<1x40x128xf32>
    %145 = vector.shape_cast %144 : vector<1x40x128xf32> to vector<40x128xf32>
    %146 = vector.shape_cast %143 : vector<40x128xf32> to vector<1x40x128xf32>
    tpu.vector_store %arg14[%c0_171, %c0_172, %c256_173], %146 {strides = array<i32>} : memref<2x40x640xf32, #tpu.memory_space<vmem>>, vector<1x40x128xf32>,
    %c1_174 = arith.constant 1 : index
    %c8_175 = arith.constant 8 : index
    %c0_176 = arith.constant 0 : index
    %147 = vector.load %arg15[%c1_174, %c8_175, %c0_176] : memref<2x64x128xf32, #tpu.memory_space<vmem>>, vector<1x40x128xf32>
    %148 = vector.shape_cast %147 : vector<1x40x128xf32> to vector<40x128xf32>
    %c0_177 = arith.constant 0 : index
    %c0_178 = arith.constant 0 : index
    %c384_179 = arith.constant 384 : index
    %149 = vector.load %arg14[%c0_177, %c0_178, %c384_179] : memref<2x40x640xf32, #tpu.memory_space<vmem>>, vector<1x40x128xf32>
    %150 = vector.shape_cast %149 : vector<1x40x128xf32> to vector<40x128xf32>
    %151 = vector.shape_cast %148 : vector<40x128xf32> to vector<1x40x128xf32>
    tpu.vector_store %arg14[%c0_177, %c0_178, %c384_179], %151 {strides = array<i32>} : memref<2x40x640xf32, #tpu.memory_space<vmem>>, vector<1x40x128xf32>,
    %c0_180 = arith.constant 0 : index
    %c16 = arith.constant 16 : index
    %c0_181 = arith.constant 0 : index
    %152 = vector.load %arg15[%c0_180, %c16, %c0_181] : memref<2x64x128xf32, #tpu.memory_space<vmem>>, vector<1x40x128xf32>
    %153 = vector.shape_cast %152 : vector<1x40x128xf32> to vector<40x128xf32>
    %c0_182 = arith.constant 0 : index
    %c0_183 = arith.constant 0 : index
    %c512_184 = arith.constant 512 : index
    %154 = vector.load %arg14[%c0_182, %c0_183, %c512_184] : memref<2x40x640xf32, #tpu.memory_space<vmem>>, vector<1x40x128xf32>
    %155 = vector.shape_cast %154 : vector<1x40x128xf32> to vector<40x128xf32>
    %156 = vector.shape_cast %153 : vector<40x128xf32> to vector<1x40x128xf32>
    tpu.vector_store %arg14[%c0_182, %c0_183, %c512_184], %156 {strides = array<i32>} : memref<2x40x640xf32, #tpu.memory_space<vmem>>, vector<1x40x128xf32>,
    %c1_185 = arith.constant 1 : index
    %c0_186 = arith.constant 0 : index
    %c0_187 = arith.constant 0 : index
    %157 = vector.load %arg15[%c1_185, %c0_186, %c0_187] : memref<2x64x128xf32, #tpu.memory_space<vmem>>, vector<1x40x128xf32>
    %158 = vector.shape_cast %157 : vector<1x40x128xf32> to vector<40x128xf32>
    %c1_188 = arith.constant 1 : index
    %c0_189 = arith.constant 0 : index
    %c0_190 = arith.constant 0 : index
    %159 = vector.load %arg14[%c1_188, %c0_189, %c0_190] : memref<2x40x640xf32, #tpu.memory_space<vmem>>, vector<1x40x128xf32>
    %160 = vector.shape_cast %159 : vector<1x40x128xf32> to vector<40x128xf32>
    %161 = vector.shape_cast %158 : vector<40x128xf32> to vector<1x40x128xf32>
    tpu.vector_store %arg14[%c1_188, %c0_189, %c0_190], %161 {strides = array<i32>} : memref<2x40x640xf32, #tpu.memory_space<vmem>>, vector<1x40x128xf32>,
    %c0_191 = arith.constant 0 : index
    %c8_192 = arith.constant 8 : index
    %c0_193 = arith.constant 0 : index
    %162 = vector.load %arg15[%c0_191, %c8_192, %c0_193] : memref<2x64x128xf32, #tpu.memory_space<vmem>>, vector<1x40x128xf32>
    %163 = vector.shape_cast %162 : vector<1x40x128xf32> to vector<40x128xf32>
    %c1_194 = arith.constant 1 : index
    %c0_195 = arith.constant 0 : index
    %c128_196 = arith.constant 128 : index
    %164 = vector.load %arg14[%c1_194, %c0_195, %c128_196] : memref<2x40x640xf32, #tpu.memory_space<vmem>>, vector<1x40x128xf32>
    %165 = vector.shape_cast %164 : vector<1x40x128xf32> to vector<40x128xf32>
    %166 = vector.shape_cast %163 : vector<40x128xf32> to vector<1x40x128xf32>
    tpu.vector_store %arg14[%c1_194, %c0_195, %c128_196], %166 {strides = array<i32>} : memref<2x40x640xf32, #tpu.memory_space<vmem>>, vector<1x40x128xf32>,
    %c1_197 = arith.constant 1 : index
    %c8_198 = arith.constant 8 : index
    %c0_199 = arith.constant 0 : index
    %167 = vector.load %arg15[%c1_197, %c8_198, %c0_199] : memref<2x64x128xf32, #tpu.memory_space<vmem>>, vector<1x40x128xf32>
    %168 = vector.shape_cast %167 : vector<1x40x128xf32> to vector<40x128xf32>
    %c1_200 = arith.constant 1 : index
    %c0_201 = arith.constant 0 : index
    %c256_202 = arith.constant 256 : index
    %169 = vector.load %arg14[%c1_200, %c0_201, %c256_202] : memref<2x40x640xf32, #tpu.memory_space<vmem>>, vector<1x40x128xf32>
    %170 = vector.shape_cast %169 : vector<1x40x128xf32> to vector<40x128xf32>
    %171 = vector.shape_cast %168 : vector<40x128xf32> to vector<1x40x128xf32>
    tpu.vector_store %arg14[%c1_200, %c0_201, %c256_202], %171 {strides = array<i32>} : memref<2x40x640xf32, #tpu.memory_space<vmem>>, vector<1x40x128xf32>,
    %c0_203 = arith.constant 0 : index
    %c16_204 = arith.constant 16 : index
    %c0_205 = arith.constant 0 : index
    %172 = vector.load %arg15[%c0_203, %c16_204, %c0_205] : memref<2x64x128xf32, #tpu.memory_space<vmem>>, vector<1x40x128xf32>
    %173 = vector.shape_cast %172 : vector<1x40x128xf32> to vector<40x128xf32>
    %c1_206 = arith.constant 1 : index
    %c0_207 = arith.constant 0 : index
    %c384_208 = arith.constant 384 : index
    %174 = vector.load %arg14[%c1_206, %c0_207, %c384_208] : memref<2x40x640xf32, #tpu.memory_space<vmem>>, vector<1x40x128xf32>
    %175 = vector.shape_cast %174 : vector<1x40x128xf32> to vector<40x128xf32>
    %176 = vector.shape_cast %173 : vector<40x128xf32> to vector<1x40x128xf32>
    tpu.vector_store %arg14[%c1_206, %c0_207, %c384_208], %176 {strides = array<i32>} : memref<2x40x640xf32, #tpu.memory_space<vmem>>, vector<1x40x128xf32>,
    %c1_209 = arith.constant 1 : index
    %c16_210 = arith.constant 16 : index
    %c0_211 = arith.constant 0 : index
    %177 = vector.load %arg15[%c1_209, %c16_210, %c0_211] : memref<2x64x128xf32, #tpu.memory_space<vmem>>, vector<1x40x128xf32>
    %178 = vector.shape_cast %177 : vector<1x40x128xf32> to vector<40x128xf32>
    %c1_212 = arith.constant 1 : index
    %c0_213 = arith.constant 0 : index
    %c512_214 = arith.constant 512 : index
    %179 = vector.load %arg14[%c1_212, %c0_213, %c512_214] : memref<2x40x640xf32, #tpu.memory_space<vmem>>, vector<1x40x128xf32>
    %180 = vector.shape_cast %179 : vector<1x40x128xf32> to vector<40x128xf32>
    %181 = vector.shape_cast %178 : vector<40x128xf32> to vector<1x40x128xf32>
    tpu.vector_store %arg14[%c1_212, %c0_213, %c512_214], %181 {strides = array<i32>} : memref<2x40x640xf32, #tpu.memory_space<vmem>>, vector<1x40x128xf32>,
    %c0_215 = arith.constant 0 : index
    %c0_216 = arith.constant 0 : index
    %c0_217 = arith.constant 0 : index
    %182 = vector.load %arg14[%c0_215, %c0_216, %c0_217] : memref<2x40x640xf32, #tpu.memory_space<vmem>>, vector<1x40x640xf32>
    %183 = vector.shape_cast %182 : vector<1x40x640xf32> to vector<40x640xf32>
    %184 = arith.truncf %183 : vector<40x640xf32> to vector<40x640xbf16>
    %c0_218 = arith.constant 0 : index
    %c0_219 = arith.constant 0 : index
    %c0_220 = arith.constant 0 : index
    %185 = vector.load %arg4[%c0_218, %c0_219, %c0_220] : memref<2x640x128xbf16, #tpu.memory_space<vmem>>, vector<1x640x128xbf16>
    %186 = vector.shape_cast %185 : vector<1x640x128xbf16> to vector<640x128xbf16>
    %cst_221 = arith.constant dense<0.000000e+00> : vector<40x128xf32>
    %187 = tpu.matmul %184, %186, %cst_221 {dimension_numbers = #tpu.dot_dimension_numbers<[1], [0], [0], [1], [0, 0, 1, 1], [], []>} : vector<40x640xbf16>, vector<640x128xbf16>, vector<40x128xf32> -> vector<40x128xf32>
    %c1_222 = arith.constant 1 : index
    %c0_223 = arith.constant 0 : index
    %c0_224 = arith.constant 0 : index
    %188 = vector.load %arg4[%c1_222, %c0_223, %c0_224] : memref<2x640x128xbf16, #tpu.memory_space<vmem>>, vector<1x640x128xbf16>
    %189 = vector.shape_cast %188 : vector<1x640x128xbf16> to vector<640x128xbf16>
    %cst_225 = arith.constant dense<0.000000e+00> : vector<40x128xf32>
    %190 = tpu.matmul %184, %189, %cst_225 {dimension_numbers = #tpu.dot_dimension_numbers<[1], [0], [0], [1], [0, 0, 1, 1], [], []>} : vector<40x640xbf16>, vector<640x128xbf16>, vector<40x128xf32> -> vector<40x128xf32>
    %191 = arith.maximumf %187, %190 : vector<40x128xf32>
    %c1_226 = arith.constant 1 : index
    %c0_227 = arith.constant 0 : index
    %c0_228 = arith.constant 0 : index
    %192 = vector.load %arg14[%c1_226, %c0_227, %c0_228] : memref<2x40x640xf32, #tpu.memory_space<vmem>>, vector<1x40x640xf32>
    %193 = vector.shape_cast %192 : vector<1x40x640xf32> to vector<40x640xf32>
    %194 = arith.truncf %193 : vector<40x640xf32> to vector<40x640xbf16>
    %c0_229 = arith.constant 0 : index
    %c0_230 = arith.constant 0 : index
    %c0_231 = arith.constant 0 : index
    %195 = vector.load %arg4[%c0_229, %c0_230, %c0_231] : memref<2x640x128xbf16, #tpu.memory_space<vmem>>, vector<1x640x128xbf16>
    %196 = vector.shape_cast %195 : vector<1x640x128xbf16> to vector<640x128xbf16>
    %cst_232 = arith.constant dense<0.000000e+00> : vector<40x128xf32>
    %197 = tpu.matmul %194, %196, %cst_232 {dimension_numbers = #tpu.dot_dimension_numbers<[1], [0], [0], [1], [0, 0, 1, 1], [], []>} : vector<40x640xbf16>, vector<640x128xbf16>, vector<40x128xf32> -> vector<40x128xf32>
    %198 = arith.maximumf %191, %197 : vector<40x128xf32>
    %c1_233 = arith.constant 1 : index
    %c0_234 = arith.constant 0 : index
    %c0_235 = arith.constant 0 : index
    %199 = vector.load %arg4[%c1_233, %c0_234, %c0_235] : memref<2x640x128xbf16, #tpu.memory_space<vmem>>, vector<1x640x128xbf16>
    %200 = vector.shape_cast %199 : vector<1x640x128xbf16> to vector<640x128xbf16>
    %cst_236 = arith.constant dense<0.000000e+00> : vector<40x128xf32>
    %201 = tpu.matmul %194, %200, %cst_236 {dimension_numbers = #tpu.dot_dimension_numbers<[1], [0], [0], [1], [0, 0, 1, 1], [], []>} : vector<40x640xbf16>, vector<640x128xbf16>, vector<40x128xf32> -> vector<40x128xf32>
    %202 = arith.maximumf %198, %201 : vector<40x128xf32>
    %c0_237 = arith.constant 0 : index
    %c0_238 = arith.constant 0 : index
    %203 = vector.load %arg5[%c0_237, %c0_238] : memref<1x128xf32, #tpu.memory_space<vmem>>, vector<1x128xf32>
    %204 = vector.broadcast %203 : vector<1x128xf32> to vector<40x128xf32>
    %205 = arith.addf %202, %204 : vector<40x128xf32>
    %cst_239 = arith.constant 0.000000e+00 : f32
    %206 = vector.broadcast %cst_239 : f32 to vector<40x128xf32>
    %207 = arith.maximumf %205, %206 : vector<40x128xf32>
    %208 = vector.extract_strided_slice %207 {offsets = [0, 0], sizes = [8, 128], strides = [1, 1]} : vector<40x128xf32> to vector<8x128xf32>
    %209 = vector.extract_strided_slice %207 {offsets = [8, 0], sizes = [8, 128], strides = [1, 1]} : vector<40x128xf32> to vector<8x128xf32>
    %210 = vector.extract_strided_slice %207 {offsets = [16, 0], sizes = [8, 128], strides = [1, 1]} : vector<40x128xf32> to vector<8x128xf32>
    %211 = vector.extract_strided_slice %207 {offsets = [24, 0], sizes = [8, 128], strides = [1, 1]} : vector<40x128xf32> to vector<8x128xf32>
    %212 = vector.extract_strided_slice %207 {offsets = [32, 0], sizes = [8, 128], strides = [1, 1]} : vector<40x128xf32> to vector<8x128xf32>
    %213 = tpu.concatenate %208, %209, %210, %211, %212 in 1 : vector<8x128xf32>, vector<8x128xf32>, vector<8x128xf32>, vector<8x128xf32>, vector<8x128xf32> -> vector<8x640xf32>
    %214 = arith.truncf %213 : vector<8x640xf32> to vector<8x640xbf16>
    %c0_240 = arith.constant 0 : index
    %c0_241 = arith.constant 0 : index
    %215 = vector.load %arg6[%c0_240, %c0_241] : memref<640x128xbf16, #tpu.memory_space<vmem>>, vector<640x128xbf16>
    %cst_242 = arith.constant dense<0.000000e+00> : vector<8x128xf32>
    %216 = tpu.matmul %214, %215, %cst_242 {dimension_numbers = #tpu.dot_dimension_numbers<[1], [0], [0], [1], [0, 0, 1, 1], [], []>} : vector<8x640xbf16>, vector<640x128xbf16>, vector<8x128xf32> -> vector<8x128xf32>
    %c0_243 = arith.constant 0 : index
    %c0_244 = arith.constant 0 : index
    %217 = vector.load %arg7[%c0_243, %c0_244] : memref<1x128xf32, #tpu.memory_space<vmem>>, vector<1x128xf32>
    %218 = vector.broadcast %217 : vector<1x128xf32> to vector<8x128xf32>
    %219 = arith.addf %216, %218 : vector<8x128xf32>
    %cst_245 = arith.constant 0.000000e+00 : f32
    %220 = vector.broadcast %cst_245 : f32 to vector<8x128xf32>
    %221 = arith.maximumf %219, %220 : vector<8x128xf32>
    %222 = arith.truncf %221 : vector<8x128xf32> to vector<8x128xbf16>
    %c0_246 = arith.constant 0 : index
    %c0_247 = arith.constant 0 : index
    %223 = vector.load %arg8[%c0_246, %c0_247] : memref<128x128xbf16, #tpu.memory_space<vmem>>, vector<128x128xbf16>
    %cst_248 = arith.constant dense<0.000000e+00> : vector<8x128xf32>
    %224 = tpu.matmul %222, %223, %cst_248 {dimension_numbers = #tpu.dot_dimension_numbers<[1], [0], [0], [1], [0, 0, 1, 1], [], []>} : vector<8x128xbf16>, vector<128x128xbf16>, vector<8x128xf32> -> vector<8x128xf32>
    %c0_249 = arith.constant 0 : index
    %c0_250 = arith.constant 0 : index
    %225 = vector.load %arg9[%c0_249, %c0_250] : memref<1x128xf32, #tpu.memory_space<vmem>>, vector<1x128xf32>
    %226 = vector.broadcast %225 : vector<1x128xf32> to vector<8x128xf32>
    %227 = arith.addf %224, %226 : vector<8x128xf32>
    %cst_251 = arith.constant 0.000000e+00 : f32
    %228 = vector.broadcast %cst_251 : f32 to vector<8x128xf32>
    %229 = arith.maximumf %227, %228 : vector<8x128xf32>
    %230 = arith.truncf %229 : vector<8x128xf32> to vector<8x128xbf16>
    %c0_252 = arith.constant 0 : index
    %c0_253 = arith.constant 0 : index
    %231 = vector.load %arg10[%c0_252, %c0_253] : memref<128x128xbf16, #tpu.memory_space<vmem>>, vector<128x128xbf16>
    %cst_254 = arith.constant dense<0.000000e+00> : vector<8x128xf32>
    %232 = tpu.matmul %230, %231, %cst_254 {dimension_numbers = #tpu.dot_dimension_numbers<[1], [0], [0], [1], [0, 0, 1, 1], [], []>} : vector<8x128xbf16>, vector<128x128xbf16>, vector<8x128xf32> -> vector<8x128xf32>
    %c0_255 = arith.constant 0 : index
    %c0_256 = arith.constant 0 : index
    %233 = vector.load %arg11[%c0_255, %c0_256] : memref<1x128xf32, #tpu.memory_space<vmem>>, vector<1x128xf32>
    %234 = vector.broadcast %233 : vector<1x128xf32> to vector<8x128xf32>
    %235 = arith.addf %232, %234 : vector<8x128xf32>
    %c0_257 = arith.constant 0 : index
    %c0_258 = arith.constant 0 : index
    %236 = vector.load %arg12[%c0_257, %c0_258] : memref<8x128xf32, #tpu.memory_space<vmem>>, vector<8x128xf32>
    tpu.vector_store %arg12[%c0_257, %c0_258], %235 {strides = array<i32>} : memref<8x128xf32, #tpu.memory_space<vmem>>, vector<8x128xf32>,
    return
  }
  func.func @transform_0(%arg0: i32) -> (i32, i32, i32, i32) {
    %c0_i32 = arith.constant 0 : i32
    %c0_i32_0 = arith.constant 0 : i32
    %c0_i32_1 = arith.constant 0 : i32
    %c0_i32_2 = arith.constant 0 : i32
    return %arg0, %c0_i32, %c0_i32_0, %c0_i32_1 : i32, i32, i32, i32
  }
  func.func @transform_1(%arg0: i32) -> (i32, i32, i32) {
    %c0_i32 = arith.constant 0 : i32
    %c0_i32_0 = arith.constant 0 : i32
    %c0_i32_1 = arith.constant 0 : i32
    %c0_i32_2 = arith.constant 0 : i32
    return %c0_i32, %c0_i32_0, %c0_i32_1 : i32, i32, i32
  }
  func.func @transform_2(%arg0: i32) -> (i32, i32) {
    %c0_i32 = arith.constant 0 : i32
    %c0_i32_0 = arith.constant 0 : i32
    %c0_i32_1 = arith.constant 0 : i32
    return %c0_i32, %c0_i32_0 : i32, i32
  }
  func.func @transform_3(%arg0: i32) -> (i32, i32, i32) {
    %c0_i32 = arith.constant 0 : i32
    %c0_i32_0 = arith.constant 0 : i32
    %c0_i32_1 = arith.constant 0 : i32
    %c0_i32_2 = arith.constant 0 : i32
    return %c0_i32, %c0_i32_0, %c0_i32_1 : i32, i32, i32
  }
  func.func @transform_4(%arg0: i32) -> (i32, i32) {
    %c0_i32 = arith.constant 0 : i32
    %c0_i32_0 = arith.constant 0 : i32
    %c0_i32_1 = arith.constant 0 : i32
    return %c0_i32, %c0_i32_0 : i32, i32
  }
  func.func @transform_5(%arg0: i32) -> (i32, i32) {
    %c0_i32 = arith.constant 0 : i32
    %c0_i32_0 = arith.constant 0 : i32
    %c0_i32_1 = arith.constant 0 : i32
    return %c0_i32, %c0_i32_0 : i32, i32
  }
  func.func @transform_6(%arg0: i32) -> (i32, i32) {
    %c0_i32 = arith.constant 0 : i32
    %c0_i32_0 = arith.constant 0 : i32
    %c0_i32_1 = arith.constant 0 : i32
    return %c0_i32, %c0_i32_0 : i32, i32
  }
  func.func @transform_7(%arg0: i32) -> (i32, i32) {
    %c0_i32 = arith.constant 0 : i32
    %c0_i32_0 = arith.constant 0 : i32
    %c0_i32_1 = arith.constant 0 : i32
    return %c0_i32, %c0_i32_0 : i32, i32
  }
  func.func @transform_8(%arg0: i32) -> (i32, i32) {
    %c0_i32 = arith.constant 0 : i32
    %c0_i32_0 = arith.constant 0 : i32
    %c0_i32_1 = arith.constant 0 : i32
    return %c0_i32, %c0_i32_0 : i32, i32
  }
  func.func @transform_9(%arg0: i32) -> (i32, i32) {
    %c0_i32 = arith.constant 0 : i32
    %c0_i32_0 = arith.constant 0 : i32
    %c0_i32_1 = arith.constant 0 : i32
    return %c0_i32, %c0_i32_0 : i32, i32
  }
  func.func @transform_10(%arg0: i32) -> (i32, i32) {
    %c0_i32 = arith.constant 0 : i32
    %c0_i32_0 = arith.constant 0 : i32
    %c0_i32_1 = arith.constant 0 : i32
    return %c0_i32, %c0_i32_0 : i32, i32
  }
  func.func @transform_11(%arg0: i32) -> (i32, i32) {
    %c0_i32 = arith.constant 0 : i32
    %c0_i32_0 = arith.constant 0 : i32
    return %arg0, %c0_i32 : i32, i32
  }
}

</mosaic_0001>

<bundles_post_ra>
// kernel: net_forward.1
= control target key start
LH: loop header
LB: loop body
LE: loop exit
PB: predicated region body
PF: predicated region fallthrough
CT: control target
= control target key end

     0   :  { %vm7201_vm0 = vmmov 0   ;;  %s9703_s1 = inlined_call_operand.vmem [shape: bf16[2,640,128], index: 1, kind: input, shape index: {}]   ;;  %s9704_s0 = inlined_call_operand.vmem [shape: bf16[1,8,64,128], index: 0, kind: input, shape index: {}]   ;;  %s9705_s3 = inlined_call_operand.vmem [shape: bf16[2,640,128], index: 3, kind: input, shape index: {}]   ;;  %s9706_s2 = inlined_call_operand.vmem [shape: f32[1,128], index: 2, kind: input, shape index: {}]   ;;  %s9707_s5 = inlined_call_operand.vmem [shape: bf16[640,128], index: 5, kind: input, shape index: {}]   ;;  %s9708_s4 = inlined_call_operand.vmem [shape: f32[1,128], index: 4, kind: input, shape index: {}]   ;;  %s9709_s7 = inlined_call_operand.vmem [shape: bf16[128,128], index: 7, kind: input, shape index: {}]   ;;  %s9710_s9 = inlined_call_operand.vmem [shape: bf16[128,128], index: 9, kind: input, shape index: {}]   ;;  %s9711_s6 = inlined_call_operand.vmem [shape: f32[1,128], index: 6, kind: input, shape index: {}]   ;;  %s9712_s8 = inlined_call_operand.vmem [shape: f32[1,128], index: 8, kind: input, shape index: {}]   ;;  %s9713_s10 = inlined_call_operand.vmem [shape: f32[1,128], index: 10, kind: input, shape index: {}]   ;;  %s9714_s11 = inlined_call_operand.vmem [shape: f32[8,128], index: 11, kind: output, shape index: {}]  }
   0x1   :  { %v6843_v0 = vld [vmem:[%s9703_s1 + $0x40] sm:$0xff]   ;;  %v6847_v4 = vld [vmem:[%s9703_s1 + $0x48] sm:$0xff]   ;;  %v6851_v8 = vld [vmem:[%s9703_s1 + $0x50] sm:$0xff]  }
   0x2   :  { %v6844_v1 = vld [vmem:[%s9703_s1 + $0xc0] sm:$0xff]   ;;  %5578 = vmatprep.subr.bf16.mxu0 %v6843_v0  ;;  %v6848_v5 = vld [vmem:[%s9703_s1 + $0xc8] sm:$0xff]   ;;  %v6852_v9 = vld [vmem:[%s9703_s1 + $0xd0] sm:$0xff]  }
   0x3   :  { %v6845_v2 = vld [vmem:[%s9703_s1] sm:$0xff]   ;;  %5642 = vmatprep.subr.bf16.mxu1 %v6844_v1  ;;  %v6849_v6 = vld [vmem:[%s9703_s1 + $0x8] sm:$0xff]   ;;  %v6853_v10 = vld [vmem:[%s9703_s1 + $0x10] sm:$0xff]  }
   0x4   :  { %v6846_v3 = vld [vmem:[%s9703_s1 + $0x80] sm:$0xff]   ;;  %5579 = vmatpush3.bf16.msra.mxu0 %v6845_v2  ;;  %v6850_v7 = vld [vmem:[%s9703_s1 + $0x88] sm:$0xff]   ;;  %v6854_v11 = vld [vmem:[%s9703_s1 + $0x90] sm:$0xff]  }
   0x5   :  { %5643 = vmatpush3.bf16.msra.mxu1 %v6846_v3  ;;  %5580 = vmatprep.subr.bf16.mxu0 %v6847_v4  ;;  %v6855_v12 = vld [vmem:[%s9703_s1 + $0x58] sm:$0xff]   ;;  %v6859_v16 = vld [vmem:[%s9703_s1 + $0x60] sm:$0xff]   ;;  %v7325_v20 = vld [vmem:[%s9703_s1 + $0x68] sm:$0xff]  }
   0x6   :  { %5644 = vmatprep.subr.bf16.mxu1 %v6848_v5  ;;  %v6856_v13 = vld [vmem:[%s9703_s1 + $0xd8] sm:$0xff]   ;;  %v6860_v17 = vld [vmem:[%s9703_s1 + $0xe0] sm:$0xff]   ;;  %v6864_v21 = vld [vmem:[%s9703_s1 + $0xe8] sm:$0xff]  }
   0x7   :  { %v6857_v14 = vld [vmem:[%s9703_s1 + $0x18] sm:$0xff]   ;;  %v6861_v18 = vld [vmem:[%s9703_s1 + $0x20] sm:$0xff]   ;;  %v7334_v22 = vld [vmem:[%s9703_s1 + $0x28] sm:$0xff]  }
   0x8   :  { %5581 = vmatpush3.bf16.msra.mxu0 %v6849_v6  ;;  %v6858_v15 = vld [vmem:[%s9703_s1 + $0x98] sm:$0xff]   ;;  %v6862_v19 = vld [vmem:[%s9703_s1 + $0xa0] sm:$0xff]   ;;  %v6866_v23 = vld [vmem:[%s9703_s1 + $0xa8] sm:$0xff]  }
   0x9   :  { %5645 = vmatpush3.bf16.msra.mxu1 %v6850_v7  ;;  %5582 = vmatprep.subr.bf16.mxu0 %v6851_v8  ;;  %v7343_v24 = vld [vmem:[%s9703_s1 + $0x70] sm:$0xff]   ;;  %v7361_v28 = vld [vmem:[%s9703_s1 + $0x78] sm:$0xff]   ;;  %v7379_v32 = vld [vmem:[%s9704_s0 + $0x20] sm:$0xff]  }
   0xa   :  { %5646 = vmatprep.subr.bf16.mxu1 %v6852_v9  ;;  %v6868_v25 = vld [vmem:[%s9703_s1 + $0xf0] sm:$0xff]   ;;  %v6872_v29 = vld [vmem:[%s9703_s1 + $0xf8] sm:$0xff]   ;;  %v7384_v33 = vld [vmem:[%s9704_s0 + $0x60] sm:$0xff]   ;;  %1159 = vmatprep.mubr.bf16.mxu0 %v7379_v32 }
   0xb   :  { %v7352_v26 = vld [vmem:[%s9703_s1 + $0x30] sm:$0xff]   ;;  %v7370_v30 = vld [vmem:[%s9703_s1 + $0x38] sm:$0xff]   ;;  %v7390_v34 = vld [vmem:[%s9704_s0] sm:$0xff]   ;;  %1256 = vmatprep.mubr.bf16.mxu1 %v7384_v33 }
   0xc   :  { %5583 = vmatpush3.bf16.msra.mxu0 %v6853_v10  ;;  %v6870_v27 = vld [vmem:[%s9703_s1 + $0xb0] sm:$0xff]   ;;  %v6874_v31 = vld [vmem:[%s9703_s1 + $0xb8] sm:$0xff]   ;;  %v7396_v35 = vld [vmem:[%s9704_s0 + $0x40] sm:$0xff]  }
   0xd   :  { %5647 = vmatpush3.bf16.msra.mxu1 %v6854_v11  ;;  %5584 = vmatprep.subr.bf16.mxu0 %v6855_v12  ;;  %v6879_v36 = vld [vmem:[%s9703_s1 + $0x180] sm:$0xff]   ;;  %v7409_v38 = vld [vmem:[%s9704_s0 + $0x28] sm:$0xff]   ;;  %v7449_v45 = vld [vmem:[%s9704_s0 + $0x30] sm:$0xff]  }
   0xe   :  { %5648 = vmatprep.subr.bf16.mxu1 %v6856_v13  ;;  %v6880_v37 = vld [vmem:[%s9703_s1 + $0x140] sm:$0xff]   ;;  %v7414_v39 = vld [vmem:[%s9704_s0 + $0x68] sm:$0xff]   ;;  %v7456_v46 = vld [vmem:[%s9704_s0 + $0x70] sm:$0xff]  }
   0xf   :  { %v7420_v40 = vld [vmem:[%s9704_s0 + $0x8] sm:$0xff]   ;;  %v7443_v44 = vld [vmem:[%s9703_s1 + $0x100] sm:$0xff]   ;;  %v7463_v47 = vld [vmem:[%s9704_s0 + $0x10] sm:$0xff]  }
  0x10   :  { %5585 = vmatpush3.bf16.msra.mxu0 %v6857_v14  ;;  %v7426_v41 = vld [vmem:[%s9704_s0 + $0x48] sm:$0xff]   ;;  %v7469_v48 = vld [vmem:[%s9704_s0 + $0x50] sm:$0xff]   ;;  %v7492_v52 = vld [vmem:[%s9704_s0 + $0x38] sm:$0xff]  }
  0x11   :  { %5649 = vmatpush3.bf16.msra.mxu1 %v6858_v15  ;;  %5586 = vmatprep.subr.bf16.mxu0 %v6859_v16  ;;  %v7431_v42 = vld [vmem:[%s9703_s1 + $0x188] sm:$0xff]   ;;  %v7474_v49 = vld [vmem:[%s9703_s1 + $0x190] sm:$0xff]   ;;  %v7499_v53 = vld [vmem:[%s9704_s0 + $0x78] sm:$0xff]  }
  0x12   :  { %5650 = vmatprep.subr.bf16.mxu1 %v6860_v17  ;;  %v7436_v43 = vld [vmem:[%s9703_s1 + $0x148] sm:$0xff]   ;;  %v7479_v50 = vld [vmem:[%s9703_s1 + $0x150] sm:$0xff]   ;;  %v7506_v54 = vld [vmem:[%s9704_s0 + $0x18] sm:$0xff]  }
  0x13   :  { %v7485_v51 = vld [vmem:[%s9703_s1 + $0x108] sm:$0xff]   ;;  %v7512_v55 = vld [vmem:[%s9704_s0 + $0x58] sm:$0xff]   ;;  %v7528_v58 = vld [vmem:[%s9703_s1 + $0x110] sm:$0xff]  }
  0x14   :  { %5587 = vmatpush3.bf16.msra.mxu0 %v6861_v18  ;;  %v7517_v56 = vld [vmem:[%s9703_s1 + $0x198] sm:$0xff]   ;;  %v7534_v59 = vld [vmem:[%s9704_s0 + $0x60] sm:$0xff]   ;;  %v7577_v2 = vld [vmem:[%s9704_s0 + $0x68] sm:$0xff]  }
  0x15   :  { %5651 = vmatpush3.bf16.msra.mxu1 %v6862_v19  ;;  %5588 = vmatprep.subr.bf16.mxu0 %v7325_v20  ;;  %v7522_v57 = vld [vmem:[%s9703_s1 + $0x158] sm:$0xff]   ;;  %v7541_v60 = vld [vmem:[%s9704_s0 + $0xa0] sm:$0xff]   ;;  %v7583_v3 = vld [vmem:[%s9704_s0 + $0xa8] sm:$0xff]  }
  0x16   :  { %5652 = vmatprep.subr.bf16.mxu1 %v6864_v21  ;;  %v7550_v61 = vld [vmem:[%s9704_s0 + $0x40] sm:$0xff]   ;;  %v7571_v1 = vld [vmem:[%s9703_s1 + $0x118] sm:$0xff]   ;;  %v7593_v4 = vld [vmem:[%s9704_s0 + $0x48] sm:$0xff]  }
  0x17   :  { %v7555_v62 = vld [vmem:[%s9704_s0 + $0x80] sm:$0xff]   ;;  %v7598_v5 = vld [vmem:[%s9703_s1 + $0x1a8] sm:$0xff]   ;;  %v7620_v9 = vld [vmem:[%s9704_s0 + $0x70] sm:$0xff]  }
  0x18   :  { %5589 = vmatpush3.bf16.msra.mxu0 %v7334_v22  ;;  %v7560_v63 = vld [vmem:[%s9703_s1 + $0x1a0] sm:$0xff]   ;;  %v7603_v6 = vld [vmem:[%s9704_s0 + $0x88] sm:$0xff]   ;;  %v7626_v10 = vld [vmem:[%s9704_s0 + $0xb0] sm:$0xff]  }
  0x19   :  { %5653 = vmatpush3.bf16.msra.mxu1 %v6866_v23  ;;  %5590 = vmatprep.subr.bf16.mxu0 %v7343_v24  ;;  %v7565_v0 = vld [vmem:[%s9703_s1 + $0x160] sm:$0xff]   ;;  %v7608_v7 = vld [vmem:[%s9703_s1 + $0x168] sm:$0xff]   ;;  %v7635_v11 = vld [vmem:[%s9703_s1 + $0x1b0] sm:$0xff]  }
  0x1a   :  { %5654 = vmatprep.subr.bf16.mxu1 %v6868_v25  ;;  %v7614_v8 = vld [vmem:[%s9703_s1 + $0x120] sm:$0xff]   ;;  %v7641_v12 = vld [vmem:[%s9704_s0 + $0x50] sm:$0xff]   ;;  %v7652_v14 = vld [vmem:[%s9703_s1 + $0x128] sm:$0xff]  }
  0x1b   :  { %v7646_v13 = vld [vmem:[%s9703_s1 + $0x170] sm:$0xff]   ;;  %v7664_v16 = vld [vmem:[%s9704_s0 + $0x78] sm:$0xff]  }
  0x1c   :  { %5591 = vmatpush3.bf16.msra.mxu0 %v7352_v26  ;;  %9746 = vst [vmem:[#allocation5_spill] sm:$0xff] %v7646_v13  ;;  %v7657_v15 = vld [vmem:[%s9704_s0 + $0x90] sm:$0xff]   ;;  %v7670_v17 = vld [vmem:[%s9704_s0 + $0xb8] sm:$0xff]  }
  0x1d   :  { %5655 = vmatpush3.bf16.msra.mxu1 %v6870_v27  ;;  %5592 = vmatprep.subr.bf16.mxu0 %v7361_v28  ;;  %v7676_v18 = vld [vmem:[%s9703_s1 + $0x130] sm:$0xff]   ;;  %v7683_v19 = vld [vmem:[%s9703_s1 + $0x1b8] sm:$0xff]  }
  0x1e   :  { %5656 = vmatprep.subr.bf16.mxu1 %v6872_v29  ;;  %9747 = vst [vmem:[#allocation6_spill] sm:$0xff] %v7683_v19  ;;  %v7689_v21 = vld [vmem:[%s9704_s0 + $0x58] sm:$0xff]   ;;  %v7714_v29 = vld [vmem:[%s9704_s0 + $0x80] sm:$0xff]  }
  0x1f   :  { %v7695_v23 = vld [vmem:[%s9703_s1 + $0x178] sm:$0xff]  }
  0x20   :  { %5593 = vmatpush3.bf16.msra.mxu0 %v7370_v30  ;;  %9748 = vst [vmem:[#allocation7_spill] sm:$0xff] %v7695_v23  ;;  %v7702_v25 = vld [vmem:[%s9703_s1 + $0x138] sm:$0xff]  }
  0x21   :  { %5657 = vmatpush3.bf16.msra.mxu1 %v6874_v31  ;;  %6541 = vmatprep.subr.bf16.mxu0 %v7443_v44  ;;  %9749 = vst [vmem:[#allocation8_spill] sm:$0xff] %v7702_v25  ;;  %v7707_v27 = vld [vmem:[%s9704_s0 + $0x98] sm:$0xff]   ;;  %v7719_v31 = vld [vmem:[%s9703_s1 + $0x200] sm:$0xff]  }
  0x22   :  { %5722 = vmatprep.subr.bf16.mxu1 %v6879_v36  ;;  %9750 = vst [vmem:[#allocation9_spill] sm:$0xff] %v7719_v31  ;;  %v7725_v36 = vld [vmem:[%s9703_s1 + $0x240] sm:$0xff]  }
  0x23   :  { %1160 = vmatmul.mubr.bf16.vlgmr.msra.gmra.mrb[0].mxu0 %v7390_v34  ;;  %9751 = vst [vmem:[#allocation10_spill] sm:$0xff] %v7725_v36 }
  0x24   :  { %1257 = vmatmul.mubr.bf16.vlgmr.msra.gmra.mrb[0].mxu1 %v7396_v35  ;;  %1167 = vmatprep.mubr.bf16.mxu0 %v7409_v38 }
  0x25   :  { %5723 = vmatpush3.bf16.msra.mxu1 %v6880_v37  ;;  %1264 = vmatprep.mubr.bf16.mxu1 %v7414_v39  ;;  %v7736_v37 = vld [vmem:[%s9704_s0 + $0x88] sm:$0xff]  }
  0x26   :  { %5724 = vmatprep.subr.bf16.mxu1 %v7431_v42  ;;  %6542 = vmatpush3.bf16.msra.mxu0 %v7443_v44 }
  0x27   :  { %6543 = vmatprep.subr.bf16.mxu0 %v7485_v51 }
  0x29   :  { %5725 = vmatpush3.bf16.msra.mxu1 %v7436_v43 }
  0x2a   :  { %5726 = vmatprep.subr.bf16.mxu1 %v7474_v49  ;;  %6544 = vmatpush3.bf16.msra.mxu0 %v7485_v51 }
  0x2b   :  { %1168 = vmatmul.mubr.bf16.gmra.mrb[4].mxu0 %v7420_v40  ;;  %6545 = vmatprep.subr.bf16.mxu0 %v7528_v58 }
  0x2c   :  { %1265 = vmatmul.mubr.bf16.gmra.mrb[4].mxu1 %v7426_v41  ;;  %1175 = vmatprep.mubr.bf16.mxu0 %v7449_v45 }
  0x2d   :  { %1272 = vmatprep.mubr.bf16.mxu1 %v7456_v46  ;;  %5727 = vmatpush3.bf16.msra.mxu1 %v7479_v50 }
  0x2e   :  { %5728 = vmatprep.subr.bf16.mxu1 %v7517_v56  ;;  %6546 = vmatpush3.bf16.msra.mxu0 %v7528_v58 }
  0x2f   :  { %6547 = vmatprep.subr.bf16.mxu0 %v7571_v1 }
  0x31   :  { %5729 = vmatpush3.bf16.msra.mxu1 %v7522_v57 }
  0x32   :  { %5730 = vmatprep.subr.bf16.mxu1 %v7560_v63  ;;  %6548 = vmatpush3.bf16.msra.mxu0 %v7571_v1 }
  0x33   :  { %1176 = vmatmul.mubr.bf16.gmra.mrb[8].mxu0 %v7463_v47  ;;  %6549 = vmatprep.subr.bf16.mxu0 %v7614_v8 }
  0x34   :  { %1273 = vmatmul.mubr.bf16.gmra.mrb[8].mxu1 %v7469_v48  ;;  %1183 = vmatprep.mubr.bf16.mxu0 %v7492_v52 }
  0x35   :  { %1280 = vmatprep.mubr.bf16.mxu1 %v7499_v53  ;;  %5731 = vmatpush3.bf16.msra.mxu1 %v7565_v0 }
  0x36   :  { %5732 = vmatprep.subr.bf16.mxu1 %v7598_v5  ;;  %6550 = vmatpush3.bf16.msra.mxu0 %v7614_v8 }
  0x37   :  { %6551 = vmatprep.subr.bf16.mxu0 %v7652_v14 }
  0x39   :  { %5733 = vmatpush3.bf16.msra.mxu1 %v7608_v7 }
  0x3a   :  { %5734 = vmatprep.subr.bf16.mxu1 %v7635_v11  ;;  %6552 = vmatpush3.bf16.msra.mxu0 %v7652_v14 }
  0x3b   :  { %1184 = vmatmul.mubr.bf16.gmra.mrb[12].mxu0 %v7506_v54  ;;  %6553 = vmatprep.subr.bf16.mxu0 %v7676_v18 }
  0x3c   :  { %1281 = vmatmul.mubr.bf16.gmra.mrb[12].mxu1 %v7512_v55  ;;  %1191 = vmatprep.mubr.bf16.mxu0 %v7534_v59 }
  0x3d   :  { %1288 = vmatprep.mubr.bf16.mxu1 %v7541_v60  ;;  %5735 = vmatpush3.bf16.msra.mxu1 %v7646_v13  ;;  %v7771_v13 = vld [vmem:[%s9704_s0 + $0x98] sm:$0xff]  }
  0x3e   :  { %5736 = vmatprep.subr.bf16.mxu1 %v7683_v19  ;;  %6554 = vmatpush3.bf16.msra.mxu0 %v7676_v18  ;;  %v7764_v19 = vld [vmem:[%s9703_s1 + $0x1c8] sm:$0xff]  }
  0x3f   :  { %6555 = vmatprep.subr.bf16.mxu0 %v7702_v25  ;;  %9755 = vst [vmem:[#allocation14_spill] sm:$0xff] %v7764_v19 }
  0x41   :  { %5737 = vmatpush3.bf16.msra.mxu1 %v7695_v23  ;;  %v7741_v23 = vld [vmem:[%s9703_s1 + $0x1c0] sm:$0xff]  }
  0x42   :  { %6556 = vmatpush3.bf16.msra.mxu0 %v7702_v25  ;;  %6573 = vmatprep.subr.bf16.mxu1 %v7725_v36  ;;  %9752 = vst [vmem:[#allocation11_spill] sm:$0xff] %v7741_v23  ;;  %v7757_v25 = vld [vmem:[%s9703_s1 + $0x248] sm:$0xff]  }
  0x43   :  { %1192 = vmatmul.mubr.bf16.gmra.mrb[16].mxu0 %v7550_v61  ;;  %5786 = vmatprep.subr.bf16.mxu0 %v7719_v31  ;;  %v7746_v31 = vld [vmem:[%s9703_s1 + $0x208] sm:$0xff]   ;;  %9754 = vst [vmem:[#allocation13_spill] sm:$0xff] %v7757_v25 }
  0x44   :  { %1289 = vmatmul.mubr.bf16.gmra.mrb[16].mxu1 %v7555_v62  ;;  %1199 = vmatprep.mubr.bf16.mxu0 %v7577_v2  ;;  %9753 = vst [vmem:[#allocation12_spill] sm:$0xff] %v7746_v31 }
  0x45   :  { %1296 = vmatprep.mubr.bf16.mxu1 %v7583_v3 }
  0x4b   :  { %1200 = vmatmul.mubr.bf16.gmra.mrb[20].mxu0 %v7593_v4 }
  0x4c   :  { %1297 = vmatmul.mubr.bf16.gmra.mrb[20].mxu1 %v7603_v6  ;;  %1207 = vmatprep.mubr.bf16.mxu0 %v7620_v9 }
  0x4d   :  { %1304 = vmatprep.mubr.bf16.mxu1 %v7626_v10 }
  0x53   :  { %1208 = vmatmul.mubr.bf16.gmra.mrb[24].mxu0 %v7641_v12 }
  0x54   :  { %1305 = vmatmul.mubr.bf16.gmra.mrb[24].mxu1 %v7657_v15  ;;  %1215 = vmatprep.mubr.bf16.mxu0 %v7664_v16 }
  0x55   :  { %1312 = vmatprep.mubr.bf16.mxu1 %v7670_v17 }
  0x5b   :  { %1216 = vmatmul.mubr.bf16.gmra.mrb[28].mxu0 %v7689_v21 }
  0x5c   :  { %1313 = vmatmul.mubr.bf16.gmra.mrb[28].mxu1 %v7707_v27  ;;  %6557 = vmatprep.mubr.bf16.mxu0 %v7714_v29 }
  0x5d   :  { %1771 = vmatprep.mubr.bf16.mxu1 %v7379_v32  ;;  %v7751_v32 = vld [vmem:[%s9704_s0 + $0x90] sm:$0xff]  }
  0x63   :  { %6558 = vmatmul.mubr.bf16.vlgmr.msra.gmra.mrb[32].mxu0 %v7736_v37 }
  0x64   :  { %1772 = vmatmul.mubr.bf16.vlgmr.msra.gmra.mrb[32].mxu1 %v7390_v34  ;;  %5787 = vmatpush3.bf16.msra.mxu0 %v7741_v23  ;;  %v7776_v34 = vld [vmem:[%s9703_s1 + $0x210] sm:$0xff]  }
  0x65   :  { %6574 = vmatpush3.bf16.msra.mxu1 %v7725_v36  ;;  %5788 = vmatprep.subr.bf16.mxu0 %v7746_v31  ;;  %9756 = vst [vmem:[#allocation15_spill] sm:$0xff] %v7776_v34  ;;  %v7783_v23 = vld [vmem:[%s9703_s1 + $0x1d0] sm:$0xff]   ;;  %v7789_v31 = vld [vmem:[%s9703_s1 + $0x218] sm:$0xff]  }
  0x66   :  { %6561 = vmatprep.mubr.bf16.mxu0 %v7751_v32  ;;  %1779 = vmatprep.mubr.bf16.mxu1 %v7409_v38  ;;  %9757 = vst [vmem:[#allocation16_spill] sm:$0xff] %v7783_v23  ;;  %9758 = vst [vmem:[#allocation17_spill] sm:$0xff] %v7789_v31  ;;  %v7795_v36 = vld [vmem:[%s9703_s1 + $0x250] sm:$0xff]   ;;  %v7802_v38 = vld [vmem:[%s9704_s0 + $0xc0] sm:$0xff]  }
  0x67   :  { %6575 = vmatprep.subr.bf16.mxu1 %v7757_v25  ;;  %9759 = vst [vmem:[#allocation18_spill] sm:$0xff] %v7795_v36 }
  0x68   :  { %5789 = vmatpush3.bf16.msra.mxu0 %v7764_v19  ;;  %v7811_v19 = vld [vmem:[%s9703_s1 + $0x1d8] sm:$0xff]  }
  0x69   :  { %5790 = vmatprep.subr.bf16.mxu0 %v7776_v34  ;;  %6576 = vmatpush3.bf16.msra.mxu1 %v7757_v25  ;;  %9760 = vst [vmem:[#allocation19_spill] sm:$0xff] %v7811_v19  ;;  %v7818_v34 = vld [vmem:[%s9704_s0 + $0xc8] sm:$0xff]  }
  0x6a   :  { %6577 = vmatprep.subr.bf16.mxu1 %v7795_v36  ;;  %v7841_v25 = vld [vmem:[%s9703_s1 + $0x228] sm:$0xff]  }
  0x6b   :  { %6562 = vmatmul.mubr.bf16.gmra.mrb[36].mxu0 %v7771_v13  ;;  %9764 = vst [vmem:[#allocation23_spill] sm:$0xff] %v7841_v25 }
  0x6c   :  { %1780 = vmatmul.mubr.bf16.gmra.mrb[36].mxu1 %v7420_v40  ;;  %5791 = vmatpush3.bf16.msra.mxu0 %v7783_v23  ;;  %v7823_v40 = vld [vmem:[%s9703_s1 + $0x220] sm:$0xff]  }
  0x6d   :  { %5792 = vmatprep.subr.bf16.mxu0 %v7789_v31  ;;  %6565 = vmatprep.mubr.bf16.mxu0 %v7802_v38  ;;  %9761 = vst [vmem:[#allocation20_spill] sm:$0xff] %v7823_v40  ;;  %v7829_v23 = vld [vmem:[%s9703_s1 + $0x1e0] sm:$0xff]   ;;  %v7835_v31 = vld [vmem:[%s9703_s1 + $0x258] sm:$0xff]  }
  0x6e   :  { %1787 = vmatprep.mubr.bf16.mxu1 %v7449_v45  ;;  %9762 = vst [vmem:[#allocation21_spill] sm:$0xff] %v7829_v23  ;;  %6578 = vmatpush3.bf16.msra.mxu1 %v7795_v36  ;;  %9763 = vst [vmem:[#allocation22_spill] sm:$0xff] %v7835_v31  ;;  %v7847_v45 = vld [vmem:[%s9704_s0 + $0xd0] sm:$0xff]   ;;  %v7853_v36 = vld [vmem:[%s9703_s1 + $0x1e8] sm:$0xff]  }
  0x6f   :  { %6579 = vmatprep.subr.bf16.mxu1 %v7835_v31  ;;  %9765 = vst [vmem:[#allocation24_spill] sm:$0xff] %v7853_v36 }
  0x70   :  { %5793 = vmatpush3.bf16.msra.mxu0 %v7811_v19  ;;  %v7867_v19 = vld [vmem:[%s9703_s1 + $0x268] sm:$0xff]  }
  0x71   :  { %5794 = vmatprep.subr.bf16.mxu0 %v7823_v40  ;;  %v7860_v40 = vld [vmem:[%s9703_s1 + $0x260] sm:$0xff]  }
  0x72   :  { %6580 = vmatpush3.bf16.msra.mxu1 %v7835_v31  ;;  %v7874_v31 = vld [vmem:[%s9703_s1 + $0x230] sm:$0xff]  }
  0x73   :  { %6566 = vmatmul.mubr.bf16.gmra.mrb[40].mxu0 %v7818_v34  ;;  %9766 = vst [vmem:[#allocation25_spill] sm:$0xff] %v7874_v31  ;;  %6581 = vmatprep.subr.bf16.mxu1 %v7860_v40 }
  0x74   :  { %1788 = vmatmul.mubr.bf16.gmra.mrb[40].mxu1 %v7463_v47  ;;  %5795 = vmatpush3.bf16.msra.mxu0 %v7829_v23  ;;  %v7881_v47 = vld [vmem:[%s9704_s0 + $0xd8] sm:$0xff]   ;;  %v7900_v23 = vld [vmem:[%s9703_s1 + $0x270] sm:$0xff]  }
  0x75   :  { %5796 = vmatprep.subr.bf16.mxu0 %v7841_v25  ;;  %6569 = vmatprep.mubr.bf16.mxu0 %v7847_v45  ;;  %v7888_v25 = vld [vmem:[%s9703_s1 + $0x1f0] sm:$0xff]  }
  0x76   :  { %1795 = vmatprep.mubr.bf16.mxu1 %v7492_v52  ;;  %6582 = vmatpush3.bf16.msra.mxu1 %v7860_v40  ;;  %v7895_v52 = vld [vmem:[%s9703_s1 + $0x238] sm:$0xff]  }
  0x77   :  { %6583 = vmatprep.subr.bf16.mxu1 %v7867_v19 }
  0x78   :  { %5797 = vmatpush3.bf16.msra.mxu0 %v7853_v36  ;;  %v7906_v36 = vld [vmem:[%s9703_s1 + $0x1f8] sm:$0xff]  }
  0x79   :  { %5798 = vmatprep.subr.bf16.mxu0 %v7874_v31  ;;  %v7914_v31 = vld [vmem:[%s9703_s1 + $0x278] sm:$0xff]  }
  0x7a   :  { %6584 = vmatpush3.bf16.msra.mxu1 %v7867_v19 }
  0x7b   :  { %6570 = vmatmul.mubr.bf16.gmra.mrb[44].mxu0 %v7881_v47  ;;  %6585 = vmatprep.subr.bf16.mxu1 %v7900_v23 }
  0x7c   :  { %1796 = vmatmul.mubr.bf16.gmra.mrb[44].mxu1 %v7506_v54  ;;  %5799 = vmatpush3.bf16.msra.mxu0 %v7888_v25  ;;  %v7139_v54 = vld [vmem:[%s9703_s1 + $0x40] sm:$0xff]  }
  0x7d   :  { %5800 = vmatprep.subr.bf16.mxu0 %v7895_v52  ;;  %1803 = vmatprep.mubr.bf16.mxu1 %v7534_v59  ;;  %v7141_v59 = vld [vmem:[%s9703_s1 + $0x48] sm:$0xff]  }
  0x7e   :  { %1868 = vmatprep.mubr.bf16.mxu0 %v7384_v33  ;;  %6586 = vmatpush3.bf16.msra.mxu1 %v7900_v23  ;;  %v7140_v33 = vld [vmem:[%s9703_s1] sm:$0xff]  }
  0x7f   :  { %6587 = vmatprep.subr.bf16.mxu1 %v7914_v31 }
  0x80   :  { %5801 = vmatpush3.bf16.msra.mxu0 %v7906_v36 }
  0x81   :  { %5866 = vmatprep.subr.bf16.mxu0 %v7139_v54  ;;  %v7146_v54 = vld [vmem:[%s9703_s1 + $0x58] sm:$0xff]  }
  0x82   :  { %6588 = vmatpush3.bf16.msra.mxu1 %v7914_v31 }
  0x83   :  { %1869 = vmatmul.mubr.bf16.vlgmr.msra.gmra.mrb[48].mxu0 %v7396_v35  ;;  %v7142_v35 = vld [vmem:[%s9703_s1 + $0xc0] sm:$0xff]  }
  0x84   :  { %1804 = vmatmul.mubr.bf16.gmra.mrb[48].mxu1 %v7550_v61  ;;  %1876 = vmatprep.mubr.bf16.mxu0 %v7414_v39  ;;  %v7143_v39 = vld [vmem:[%s9703_s1 + $0x8] sm:$0xff]   ;;  %v7144_v61 = vld [vmem:[%s9703_s1 + $0x50] sm:$0xff]  }
  0x85   :  { %1811 = vmatprep.mubr.bf16.mxu1 %v7577_v2  ;;  %5867 = vmatpush3.bf16.msra.mxu0 %v7140_v33  ;;  %v7145_v2 = vld [vmem:[%s9703_s1 + $0x10] sm:$0xff]  }
  0x86   :  { %5868 = vmatprep.subr.bf16.mxu0 %v7141_v59  ;;  %5930 = vmatprep.subr.bf16.mxu1 %v7142_v35  ;;  %v8221_v33 = vld [vmem:[%s9704_s0 + $0x90] sm:$0xff]  }
  0x87   :  { %v8226_v59 = vld [vmem:[%s9704_s0 + $0xd0] sm:$0xff]  }
  0x88   :  { %v8235_v35 = vld [vmem:[%s9704_s0 + $0x70] sm:$0xff]  }
  0x89   :  { %5869 = vmatpush3.bf16.msra.mxu0 %v7143_v39  ;;  %v8240_v39 = vld [vmem:[%s9704_s0 + $0xb0] sm:$0xff]  }
  0x8a   :  { %5870 = vmatprep.subr.bf16.mxu0 %v7144_v61  ;;  %v8245_v61 = vld [vmem:[%s9704_s0 + $0x98] sm:$0xff]  }
  0x8b   :  { %1877 = vmatmul.mubr.bf16.gmra.mrb[52].mxu0 %v7426_v41  ;;  %v7147_v41 = vld [vmem:[%s9703_s1 + $0x18] sm:$0xff]  }
  0x8c   :  { %1812 = vmatmul.mubr.bf16.gmra.mrb[52].mxu1 %v7593_v4  ;;  %1884 = vmatprep.mubr.bf16.mxu0 %v7456_v46  ;;  %v7148_v46 = vld [vmem:[%s9703_s1 + $0x60] sm:$0xff]  }
  0x8d   :  { %1819 = vmatprep.mubr.bf16.mxu1 %v7620_v9  ;;  %5871 = vmatpush3.bf16.msra.mxu0 %v7145_v2  ;;  %v7149_v4 = vld [vmem:[%s9703_s1 + $0x20] sm:$0xff]   ;;  %v7161_v9 = vld [vmem:[%s9703_s1 + $0xf0] sm:$0xff]   ;;  %v8250_v2 = vld [vmem:[%s9704_s0 + $0xd8] sm:$0xff]  }
  0x8e   :  { %5872 = vmatprep.subr.bf16.mxu0 %v7146_v54 }
  0x91   :  { %5873 = vmatpush3.bf16.msra.mxu0 %v7147_v41 }
  0x92   :  { %5874 = vmatprep.subr.bf16.mxu0 %v7148_v46 }
  0x93   :  { %1885 = vmatmul.mubr.bf16.gmra.mrb[56].mxu0 %v7469_v48  ;;  %v7156_v48 = vld [vmem:[%s9703_s1 + $0x98] sm:$0xff]  }
  0x94   :  { %1820 = vmatmul.mubr.bf16.gmra.mrb[56].mxu1 %v7641_v12  ;;  %1892 = vmatprep.mubr.bf16.mxu0 %v7499_v53  ;;  %v7157_v53 = vld [vmem:[%s9703_s1 + $0xe0] sm:$0xff]   ;;  %v7163_v12 = vld [vmem:[%s9703_s1 + $0xf8] sm:$0xff]  }
  0x95   :  { %1827 = vmatprep.mubr.bf16.mxu1 %v7664_v16  ;;  %5875 = vmatpush3.bf16.msra.mxu0 %v7149_v4  ;;  %v8061_v16 = vld [vmem:[%s9704_s0 + $0x48] sm:$0xff]   ;;  %v8259_v4 = vld [vmem:[%s9704_s0 + $0x78] sm:$0xff]  }
  0x96   :  { %5876 = vmatprep.subr.bf16.mxu0 %v7325_v20  ;;  %v7150_v20 = vld [vmem:[%s9703_s1 + $0x80] sm:$0xff]  }
  0x99   :  { %5877 = vmatpush3.bf16.msra.mxu0 %v7334_v22  ;;  %v7151_v22 = vld [vmem:[%s9703_s1 + $0xc8] sm:$0xff]  }
  0x9a   :  { %5878 = vmatprep.subr.bf16.mxu0 %v7343_v24  ;;  %v7152_v24 = vld [vmem:[%s9703_s1 + $0x88] sm:$0xff]  }
  0x9b   :  { %1893 = vmatmul.mubr.bf16.gmra.mrb[60].mxu0 %v7512_v55  ;;  %v7158_v55 = vld [vmem:[%s9703_s1 + $0xa0] sm:$0xff]  }
  0x9c   :  { %1828 = vmatmul.mubr.bf16.gmra.mrb[60].mxu1 %v7689_v21  ;;  %1900 = vmatprep.mubr.bf16.mxu0 %v7541_v60  ;;  %v7159_v60 = vld [vmem:[%s9703_s1 + $0xe8] sm:$0xff]  }
  0x9d   :  { %6589 = vmatprep.mubr.bf16.mxu1 %v7714_v29  ;;  %5879 = vmatpush3.bf16.msra.mxu0 %v7352_v26  ;;  %v7153_v26 = vld [vmem:[%s9703_s1 + $0xd0] sm:$0xff]   ;;  %v8069_v21 = vld [vmem:[%s9704_s0 + $0x88] sm:$0xff]   ;;  %v7166_v29 = vld [vmem:[%s9703_s1 + $0x140] sm:$0xff]  }
  0x9e   :  { %5880 = vmatprep.subr.bf16.mxu0 %v7361_v28  ;;  %v7154_v28 = vld [vmem:[%s9703_s1 + $0x90] sm:$0xff]  }
  0xa1   :  { %5881 = vmatpush3.bf16.msra.mxu0 %v7370_v30  ;;  %v7155_v30 = vld [vmem:[%s9703_s1 + $0xd8] sm:$0xff]  }
  0xa2   :  { %6605 = vmatprep.subr.bf16.mxu0 %v7443_v44 }
  0xa3   :  { %1901 = vmatmul.mubr.bf16.gmra.mrb[64].mxu0 %v7555_v62  ;;  %v8025_v62 = vld [vmem:[%s9704_s0 + $0x40] sm:$0xff]  }
  0xa4   :  { %6590 = vmatmul.mubr.bf16.vlgmr.msra.gmra.mrb[64].mxu1 %v7736_v37  ;;  %1908 = vmatprep.mubr.bf16.mxu0 %v7583_v3  ;;  %v7160_v3 = vld [vmem:[%s9703_s1 + $0xa8] sm:$0xff]  }
  0xa5   :  { %5931 = vmatpush3.bf16.msra.mxu1 %v7150_v20  ;;  %6593 = vmatprep.mubr.bf16.mxu1 %v7751_v32  ;;  %v8086_v37 = vld [vmem:[%s9704_s0 + $0x28] sm:$0xff]  }
  0xa6   :  { %5932 = vmatprep.subr.bf16.mxu1 %v7151_v22  ;;  %v8092_v32 = vld [vmem:[%s9704_s0 + $0x68] sm:$0xff]  }
  0xa9   :  { %5933 = vmatpush3.bf16.msra.mxu1 %v7152_v24 }
  0xaa   :  { %5934 = vmatprep.subr.bf16.mxu1 %v7153_v26  ;;  %v8264_v26 = vld [vmem:[%s9704_s0 + $0xb8] sm:$0xff]  }
  0xab   :  { %1909 = vmatmul.mubr.bf16.gmra.mrb[68].mxu0 %v7603_v6  ;;  %v8033_v6 = vld [vmem:[%s9704_s0 + $0x80] sm:$0xff]  }
  0xac   :  { %6594 = vmatmul.mubr.bf16.gmra.mrb[68].mxu1 %v7771_v13  ;;  %1916 = vmatprep.mubr.bf16.mxu0 %v7626_v10  ;;  %v7162_v10 = vld [vmem:[%s9703_s1 + $0xb0] sm:$0xff]   ;;  %v8051_v13 = vld [vmem:[%s9704_s0 + $0x20] sm:$0xff]  }
  0xad   :  { %5935 = vmatpush3.bf16.msra.mxu1 %v7154_v28  ;;  %6597 = vmatprep.mubr.bf16.mxu1 %v7802_v38  ;;  %v9772_v38 = vld [vmem:[#allocation9_spill] sm:$0xff] }
  0xae   :  { %5936 = vmatprep.subr.bf16.mxu1 %v7155_v30  ;;  %v8269_v28 = vld [vmem:[%s9704_s0 + $0xa0] sm:$0xff]  }
  0xb1   :  { %5937 = vmatpush3.bf16.msra.mxu1 %v7156_v48 }
  0xb2   :  { %5938 = vmatprep.subr.bf16.mxu1 %v7157_v53 }
  0xb3   :  { %1917 = vmatmul.mubr.bf16.gmra.mrb[72].mxu0 %v7657_v15  ;;  %v8056_v15 = vld [vmem:[%s9704_s0 + $0x60] sm:$0xff]  }
  0xb4   :  { %6598 = vmatmul.mubr.bf16.gmra.mrb[72].mxu1 %v7818_v34  ;;  %1924 = vmatprep.mubr.bf16.mxu0 %v7670_v17  ;;  %v7164_v17 = vld [vmem:[%s9703_s1 + $0xb8] sm:$0xff]   ;;  %v8097_v34 = vld [vmem:[%s9704_s0 + $0x50] sm:$0xff]  }
  0xb5   :  { %5939 = vmatpush3.bf16.msra.mxu1 %v7158_v55  ;;  %6601 = vmatprep.mubr.bf16.mxu1 %v7847_v45  ;;  %v8211_v45 = vld [vmem:[%s9704_s0 + $0x68] sm:$0xff]  }
  0xb6   :  { %5940 = vmatprep.subr.bf16.mxu1 %v7159_v60 }
  0xb9   :  { %5941 = vmatpush3.bf16.msra.mxu1 %v7160_v3 }
  0xba   :  { %5942 = vmatprep.subr.bf16.mxu1 %v7161_v9 }
  0xbb   :  { %1925 = vmatmul.mubr.bf16.gmra.mrb[76].mxu0 %v7707_v27  ;;  %v7165_v27 = vld [vmem:[%s9703_s1 + $0x180] sm:$0xff]  }
  0xbc   :  { %6602 = vmatmul.mubr.bf16.gmra.mrb[76].mxu1 %v7881_v47  ;;  %2118 = vmatprep.mubr.bf16.mxu0 %v8025_v62  ;;  %v8216_v47 = vld [vmem:[%s9704_s0 + $0xa8] sm:$0xff]  }
  0xbd   :  { %5943 = vmatpush3.bf16.msra.mxu1 %v7162_v10  ;;  %2215 = vmatprep.mubr.bf16.mxu1 %v8033_v6 }
  0xbe   :  { %5944 = vmatprep.subr.bf16.mxu1 %v7163_v12 }
  0xc1   :  { %5945 = vmatpush3.bf16.msra.mxu1 %v7164_v17 }
  0xc2   :  { %6010 = vmatprep.subr.bf16.mxu1 %v7165_v27 }
  0xc3   :  { %2119 = vmatmul.mubr.bf16.vlgmr.msra.gmra.mrb[80].mxu0 %v8051_v13 }
  0xc4   :  { %2216 = vmatmul.mubr.bf16.vlgmr.msra.gmra.mrb[80].mxu1 %v8056_v15  ;;  %2126 = vmatprep.mubr.bf16.mxu0 %v8061_v16 }
  0xc5   :  { %6011 = vmatpush3.bf16.msra.mxu1 %v7166_v29  ;;  %2223 = vmatprep.mubr.bf16.mxu1 %v8069_v21  ;;  %v8282_v29 = vld [vmem:[%s9704_s0 + $0xa8] sm:$0xff]  }
  0xc6   :  { %6012 = vmatprep.subr.bf16.mxu1 %v7431_v42  ;;  %6606 = vmatpush3.bf16.msra.mxu0 %v7443_v44  ;;  %v8103_v42 = vld [vmem:[%s9704_s0 + $0x90] sm:$0xff]  }
  0xc7   :  { %6607 = vmatprep.subr.bf16.mxu0 %v7485_v51  ;;  %v8124_v44 = vld [vmem:[%s9704_s0 + $0x70] sm:$0xff]  }
  0xc9   :  { %6013 = vmatpush3.bf16.msra.mxu1 %v7436_v43  ;;  %v8118_v43 = vld [vmem:[%s9704_s0 + $0x30] sm:$0xff]  }
  0xca   :  { %6014 = vmatprep.subr.bf16.mxu1 %v7474_v49  ;;  %6608 = vmatpush3.bf16.msra.mxu0 %v7485_v51  ;;  %v8129_v49 = vld [vmem:[%s9704_s0 + $0x58] sm:$0xff]  }
  0xcb   :  { %2127 = vmatmul.mubr.bf16.gmra.mrb[84].mxu0 %v8086_v37  ;;  %6609 = vmatprep.subr.bf16.mxu0 %v7528_v58  ;;  %v8150_v51 = vld [vmem:[%s9704_s0 + $0x38] sm:$0xff]  }
  0xcc   :  { %2224 = vmatmul.mubr.bf16.gmra.mrb[84].mxu1 %v8092_v32  ;;  %2134 = vmatprep.mubr.bf16.mxu0 %v8097_v34 }
  0xcd   :  { %2231 = vmatprep.mubr.bf16.mxu1 %v8103_v42  ;;  %6015 = vmatpush3.bf16.msra.mxu1 %v7479_v50  ;;  %v8134_v50 = vld [vmem:[%s9704_s0 + $0x98] sm:$0xff]  }
  0xce   :  { %6016 = vmatprep.subr.bf16.mxu1 %v7517_v56  ;;  %6610 = vmatpush3.bf16.msra.mxu0 %v7528_v58  ;;  %v8156_v56 = vld [vmem:[%s9704_s0 + $0x78] sm:$0xff]   ;;  %v8166_v58 = vld [vmem:[%s9704_s0 + $0xc0] sm:$0xff]  }
  0xcf   :  { %6611 = vmatprep.subr.bf16.mxu0 %v7571_v1 }
  0xd1   :  { %6017 = vmatpush3.bf16.msra.mxu1 %v7522_v57  ;;  %v8161_v57 = vld [vmem:[%s9704_s0 + $0x80] sm:$0xff]  }
  0xd2   :  { %6018 = vmatprep.subr.bf16.mxu1 %v7560_v63  ;;  %6612 = vmatpush3.bf16.msra.mxu0 %v7571_v1  ;;  %v9767_v63 = vld [vmem:[#allocation5_spill] sm:$0xff] }
  0xd3   :  { %2135 = vmatmul.mubr.bf16.gmra.mrb[88].mxu0 %v8118_v43  ;;  %6613 = vmatprep.subr.bf16.mxu0 %v7614_v8  ;;  %v8182_v1 = vld [vmem:[%s9704_s0 + $0x60] sm:$0xff]  }
  0xd4   :  { %2232 = vmatmul.mubr.bf16.gmra.mrb[88].mxu1 %v8124_v44  ;;  %2142 = vmatprep.mubr.bf16.mxu0 %v8129_v49 }
  0xd5   :  { %2239 = vmatprep.mubr.bf16.mxu1 %v8134_v50  ;;  %6019 = vmatpush3.bf16.msra.mxu1 %v7565_v0  ;;  %v9768_v0 = vld [vmem:[#allocation6_spill] sm:$0xff] }
  0xd6   :  { %6020 = vmatprep.subr.bf16.mxu1 %v7598_v5  ;;  %6614 = vmatpush3.bf16.msra.mxu0 %v7614_v8  ;;  %v9769_v5 = vld [vmem:[#allocation8_spill] sm:$0xff]  ;;  %v8193_v8 = vld [vmem:[%s9704_s0 + $0x88] sm:$0xff]  }
  0xd7   :  { %6615 = vmatprep.subr.bf16.mxu0 %v7652_v14 }
  0xd9   :  { %6021 = vmatpush3.bf16.msra.mxu1 %v7608_v7  ;;  %v8188_v7 = vld [vmem:[%s9704_s0 + $0xa0] sm:$0xff]  }
  0xda   :  { %6022 = vmatprep.subr.bf16.mxu1 %v7635_v11  ;;  %6616 = vmatpush3.bf16.msra.mxu0 %v7652_v14  ;;  %v8198_v11 = vld [vmem:[%s9704_s0 + $0xc8] sm:$0xff]   ;;  %v9770_v14 = vld [vmem:[#allocation7_spill] sm:$0xff] }
  0xdb   :  { %2143 = vmatmul.mubr.bf16.gmra.mrb[92].mxu0 %v8150_v51  ;;  %6617 = vmatprep.subr.bf16.mxu0 %v7676_v18 }
  0xdc   :  { %2240 = vmatmul.mubr.bf16.gmra.mrb[92].mxu1 %v8156_v56  ;;  %2150 = vmatprep.mubr.bf16.mxu0 %v8161_v57 }
  0xdd   :  { %2247 = vmatprep.mubr.bf16.mxu1 %v8166_v58  ;;  %6023 = vmatpush3.bf16.msra.mxu1 %v9767_v63 }
  0xde   :  { %6024 = vmatprep.subr.bf16.mxu1 %v9768_v0  ;;  %6618 = vmatpush3.bf16.msra.mxu0 %v7676_v18  ;;  %v9771_v18 = vld [vmem:[#allocation10_spill] sm:$0xff] }
  0xdf   :  { %6619 = vmatprep.subr.bf16.mxu0 %v9769_v5 }
  0xe1   :  { %6025 = vmatpush3.bf16.msra.mxu1 %v9770_v14 }
  0xe2   :  { %6620 = vmatpush3.bf16.msra.mxu0 %v9769_v5  ;;  %6637 = vmatprep.subr.bf16.mxu1 %v9771_v18 }
  0xe3   :  { %2151 = vmatmul.mubr.bf16.gmra.mrb[96].mxu0 %v8182_v1  ;;  %6074 = vmatprep.subr.bf16.mxu0 %v9772_v38 }
  0xe4   :  { %2248 = vmatmul.mubr.bf16.gmra.mrb[96].mxu1 %v8188_v7  ;;  %2158 = vmatprep.mubr.bf16.mxu0 %v8193_v8 }
  0xe5   :  { %2255 = vmatprep.mubr.bf16.mxu1 %v8198_v11 }
  0xeb   :  { %2159 = vmatmul.mubr.bf16.gmra.mrb[100].mxu0 %v8211_v45 }
  0xec   :  { %2256 = vmatmul.mubr.bf16.gmra.mrb[100].mxu1 %v8216_v47  ;;  %2166 = vmatprep.mubr.bf16.mxu0 %v8221_v33 }
  0xed   :  { %2263 = vmatprep.mubr.bf16.mxu1 %v8226_v59 }
  0xf3   :  { %2167 = vmatmul.mubr.bf16.gmra.mrb[104].mxu0 %v8235_v35 }
  0xf4   :  { %2264 = vmatmul.mubr.bf16.gmra.mrb[104].mxu1 %v8240_v39  ;;  %2174 = vmatprep.mubr.bf16.mxu0 %v8245_v61 }
  0xf5   :  { %2271 = vmatprep.mubr.bf16.mxu1 %v8250_v2 }
  0xf6   :  { %v5594_v54 = vpop.f32.mrb[0].mxu0 }
  0xf7   :  { %v5658_v41 = vpop.f32.mrb[0].mxu1  ;;  %v5595_v46 = vpop.f32.mrb[1].mxu0 }
  0xf8   :  { %v5596_v20 = vadd.f32 %v5595_v46, %v5594_v54  ;;  %v5659_v22 = vpop.f32.mrb[1].mxu1  ;;  %v5597_v24 = vpop.f32.mrb[2].mxu0 }
  0xf9   :  { %v5660_v30 = vadd.f32 %v5659_v22, %v5658_v41  ;;  %v5661_v48 = vpop.f32.mrb[2].mxu1  ;;  %v5598_v53 = vpop.f32.mrb[3].mxu0 }
  0xfa   :  { %v5599_v55 = vadd.f32 %v5598_v53, %v5597_v24  ;;  %v5662_v60 = vpop.f32.mrb[3].mxu1  ;;  %v9773_v24 = vld [vmem:[#allocation11_spill] sm:$0xff] }
  0xfb   :  { %v5663_v3 = vadd.f32 %v5662_v60, %v5661_v48  ;;  %2175 = vmatmul.mubr.bf16.gmra.mrb[108].mxu0 %v8259_v4  ;;  %v8272_v9 = vadd.f32 %v5660_v30, %v5596_v20  ;;  %v9774_v30 = vld [vmem:[#allocation12_spill] sm:$0xff] }
  0xfc   :  { %2272 = vmatmul.mubr.bf16.gmra.mrb[108].mxu1 %v8264_v26  ;;  %6621 = vmatprep.mubr.bf16.mxu0 %v8269_v28 }
  0xfd   :  { %2425 = vmatprep.mubr.bf16.mxu1 %v8025_v62  ;;  %v8277_v10 = vadd.f32 %v5663_v3, %v5599_v55  ;;  %v8287_v62 = vld [vmem:[%s9704_s0 + $0xb0] sm:$0xff]   ;;  %v8303_v3 = vld [vmem:[%s9704_s0 + $0xb8] sm:$0xff]  }
  0xfe   :  { %v5600_v12 = vpop.f32.mrb[4].mxu0 }
  0xff   :  { %v5664_v17 = vpop.f32.mrb[4].mxu1  ;;  %v5601_v27 = vpop.f32.mrb[5].mxu0 }
 0x100   :  { %v5602_v63 = vadd.f32 %v5601_v27, %v5600_v12  ;;  %v5665_v0 = vpop.f32.mrb[5].mxu1  ;;  %v5603_v5 = vpop.f32.mrb[6].mxu0  ;;  %v9776_v27 = vld [vmem:[#allocation14_spill] sm:$0xff] }
 0x101   :  { %v5666_v14 = vadd.f32 %v5665_v0, %v5664_v17  ;;  %v5667_v38 = vpop.f32.mrb[6].mxu1  ;;  %v5604_v54 = vpop.f32.mrb[7].mxu0 }
 0x102   :  { %v5605_v41 = vadd.f32 %v5604_v54, %v5603_v5  ;;  %v5668_v46 = vpop.f32.mrb[7].mxu1 }
 0x103   :  { %v5669_v20 = vadd.f32 %v5668_v46, %v5667_v38  ;;  %6622 = vmatmul.mubr.bf16.vlgmr.msra.gmra.mrb[112].mxu0 %v8282_v29  ;;  %v8290_v22 = vadd.f32 %v5666_v14, %v5602_v63  ;;  %v9777_v14 = vld [vmem:[#allocation15_spill] sm:$0xff] }
 0x104   :  { %2426 = vmatmul.mubr.bf16.vlgmr.msra.gmra.mrb[112].mxu1 %v8051_v13  ;;  %6075 = vmatpush3.bf16.msra.mxu0 %v9773_v24  ;;  %v9775_v13 = vld [vmem:[#allocation13_spill] sm:$0xff]  ;;  %v9779_v24 = vld [vmem:[#allocation16_spill] sm:$0xff] }
 0x105   :  { %6638 = vmatpush3.bf16.msra.mxu1 %v9771_v18  ;;  %6076 = vmatprep.subr.bf16.mxu0 %v9774_v30  ;;  %v8296_v48 = vadd.f32 %v5669_v20, %v5605_v41  ;;  %v9778_v41 = vld [vmem:[#allocation18_spill] sm:$0xff]  ;;  %v9780_v30 = vld [vmem:[#allocation17_spill] sm:$0xff] }
 0x106   :  { %v5606_v53 = vpop.f32.mrb[8].mxu0  ;;  %6625 = vmatprep.mubr.bf16.mxu0 %v8287_v62  ;;  %2433 = vmatprep.mubr.bf16.mxu1 %v8061_v16  ;;  %v8312_v16 = vld [vmem:[%s9704_s0 + $0xe0] sm:$0xff]  }
 0x107   :  { %v5670_v55 = vpop.f32.mrb[8].mxu1  ;;  %v5607_v60 = vpop.f32.mrb[9].mxu0  ;;  %6639 = vmatprep.subr.bf16.mxu1 %v9775_v13 }
 0x108   :  { %v5608_v12 = vadd.f32 %v5607_v60, %v5606_v53  ;;  %v5671_v18 = vpop.f32.mrb[9].mxu1  ;;  %v5609_v17 = vpop.f32.mrb[10].mxu0  ;;  %6077 = vmatpush3.bf16.msra.mxu0 %v9776_v27  ;;  %v9782_v27 = vld [vmem:[#allocation19_spill] sm:$0xff] }
 0x109   :  { %v5672_v63 = vadd.f32 %v5671_v18, %v5670_v55  ;;  %v5673_v0 = vpop.f32.mrb[10].mxu1  ;;  %v5610_v5 = vpop.f32.mrb[11].mxu0  ;;  %6078 = vmatprep.subr.bf16.mxu0 %v9777_v14  ;;  %6640 = vmatpush3.bf16.msra.mxu1 %v9775_v13  ;;  %v9783_v14 = vld [vmem:[#allocation20_spill] sm:$0xff] }
 0x10a   :  { %v5611_v38 = vadd.f32 %v5610_v5, %v5609_v17  ;;  %v5674_v54 = vpop.f32.mrb[11].mxu1  ;;  %6641 = vmatprep.subr.bf16.mxu1 %v9778_v41 }
 0x10b   :  { %v5675_v46 = vadd.f32 %v5674_v54, %v5673_v0  ;;  %6626 = vmatmul.mubr.bf16.gmra.mrb[116].mxu0 %v8303_v3  ;;  %v8316_v20 = vadd.f32 %v5672_v63, %v5608_v12  ;;  %v8329_v12 = vld [vmem:[%s9704_s0 + $0xe8] sm:$0xff]  }
 0x10c   :  { %2434 = vmatmul.mubr.bf16.gmra.mrb[116].mxu1 %v8086_v37  ;;  %6079 = vmatpush3.bf16.msra.mxu0 %v9779_v24  ;;  %v9781_v37 = vld [vmem:[#allocation22_spill] sm:$0xff]  ;;  %v9785_v24 = vld [vmem:[#allocation23_spill] sm:$0xff] }
 0x10d   :  { %6080 = vmatprep.subr.bf16.mxu0 %v9780_v30  ;;  %6629 = vmatprep.mubr.bf16.mxu0 %v8312_v16  ;;  %v8322_v53 = vadd.f32 %v5675_v46, %v5611_v38  ;;  %v8337_v38 = vld [vmem:[%s9704_s0 + $0xf0] sm:$0xff]   ;;  %v9784_v46 = vld [vmem:[#allocation21_spill] sm:$0xff] }
 0x10e   :  { %v5612_v55 = vpop.f32.mrb[12].mxu0  ;;  %2441 = vmatprep.mubr.bf16.mxu1 %v8097_v34  ;;  %6642 = vmatpush3.bf16.msra.mxu1 %v9778_v41 }
 0x10f   :  { %v5676_v60 = vpop.f32.mrb[12].mxu1  ;;  %v5613_v13 = vpop.f32.mrb[13].mxu0  ;;  %6643 = vmatprep.subr.bf16.mxu1 %v9781_v37 }
 0x110   :  { %v5614_v18 = vadd.f32 %v5613_v13, %v5612_v55  ;;  %v5677_v17 = vpop.f32.mrb[13].mxu1  ;;  %6081 = vmatpush3.bf16.msra.mxu0 %v9782_v27  ;;  %v5615_v63 = vpop.f32.mrb[14].mxu0  ;;  %v8353_v13 = vld [vmem:[%s9704_s0 + $0xf8] sm:$0xff]  }
 0x111   :  { %v5678_v0 = vadd.f32 %v5677_v17, %v5676_v60  ;;  %v5679_v5 = vpop.f32.mrb[14].mxu1  ;;  %6082 = vmatprep.subr.bf16.mxu0 %v9783_v14  ;;  %v5616_v34 = vpop.f32.mrb[15].mxu0  ;;  %v9786_v17 = vld [vmem:[#allocation24_spill] sm:$0xff] }
 0x112   :  { %v5680_v54 = vpop.f32.mrb[15].mxu1  ;;  %6644 = vmatpush3.bf16.msra.mxu1 %v9781_v37 }
 0x113   :  { %6630 = vmatmul.mubr.bf16.gmra.mrb[120].mxu0 %v8329_v12  ;;  %6645 = vmatprep.subr.bf16.mxu1 %v7860_v40  ;;  %v8342_v41 = vadd.f32 %v5678_v0, %v5614_v18 }
 0x114   :  { %2442 = vmatmul.mubr.bf16.gmra.mrb[120].mxu1 %v8118_v43  ;;  %6083 = vmatpush3.bf16.msra.mxu0 %v9784_v46 }
 0x115   :  { %6084 = vmatprep.subr.bf16.mxu0 %v9785_v24  ;;  %6633 = vmatprep.mubr.bf16.mxu0 %v8337_v38 }
 0x116   :  { %v5618_v30 = vpop.f32.mrb[16].mxu0  ;;  %2449 = vmatprep.mubr.bf16.mxu1 %v8129_v49  ;;  %6646 = vmatpush3.bf16.msra.mxu1 %v7860_v40  ;;  %v9787_v49 = vld [vmem:[#allocation25_spill] sm:$0xff] }
 0x117   :  { %v5682_v55 = vpop.f32.mrb[16].mxu1  ;;  %v5619_v60 = vpop.f32.mrb[17].mxu0  ;;  %6647 = vmatprep.subr.bf16.mxu1 %v7867_v19 }
 0x118   :  { %v5620_v43 = vadd.f32 %v5619_v60, %v5618_v30  ;;  %v5683_v37 = vpop.f32.mrb[17].mxu1  ;;  %v5621_v18 = vpop.f32.mrb[18].mxu0  ;;  %6085 = vmatpush3.bf16.msra.mxu0 %v9786_v17 }
 0x119   :  { %v5684_v27 = vadd.f32 %v5683_v37, %v5682_v55  ;;  %v5685_v63 = vpop.f32.mrb[18].mxu1  ;;  %v5622_v0 = vpop.f32.mrb[19].mxu0  ;;  %6086 = vmatprep.subr.bf16.mxu0 %v9787_v49 }
 0x11a   :  { %v5623_v40 = vadd.f32 %v5622_v0, %v5621_v18  ;;  %v5686_v5 = vpop.f32.mrb[19].mxu1  ;;  %6648 = vmatpush3.bf16.msra.mxu1 %v7867_v19 }
 0x11b   :  { %v5687_v14 = vadd.f32 %v5686_v5, %v5685_v63  ;;  %6634 = vmatmul.mubr.bf16.gmra.mrb[124].mxu0 %v8353_v13  ;;  %6649 = vmatprep.subr.bf16.mxu1 %v7900_v23  ;;  %v8361_v34 = vadd.f32 %v5684_v27, %v5620_v43 }
 0x11c   :  { %2450 = vmatmul.mubr.bf16.gmra.mrb[124].mxu1 %v8150_v51  ;;  %6087 = vmatpush3.bf16.msra.mxu0 %v7888_v25 }
 0x11d   :  { %6088 = vmatprep.subr.bf16.mxu0 %v7895_v52  ;;  %2457 = vmatprep.mubr.bf16.mxu1 %v8161_v57  ;;  %v8367_v54 = vadd.f32 %v5687_v14, %v5623_v40 }
 0x11e   :  { %v5624_v46 = vpop.f32.mrb[20].mxu0  ;;  %2522 = vmatprep.mubr.bf16.mxu0 %v8033_v6  ;;  %6650 = vmatpush3.bf16.msra.mxu1 %v7900_v23 }
 0x11f   :  { %v5688_v19 = vpop.f32.mrb[20].mxu1  ;;  %v5625_v24 = vpop.f32.mrb[21].mxu0  ;;  %6651 = vmatprep.subr.bf16.mxu1 %v7914_v31 }
 0x120   :  { %v5626_v30 = vadd.f32 %v5625_v24, %v5624_v46  ;;  %v5689_v55 = vpop.f32.mrb[21].mxu1  ;;  %v5627_v51 = vpop.f32.mrb[22].mxu0  ;;  %6089 = vmatpush3.bf16.msra.mxu0 %v7906_v36 }
 0x121   :  { %v5690_v25 = vadd.f32 %v5689_v55, %v5688_v19  ;;  %v5691_v52 = vpop.f32.mrb[22].mxu1  ;;  %v5628_v60 = vpop.f32.mrb[23].mxu0 }
 0x122   :  { %v5629_v57 = vadd.f32 %v5628_v60, %v5627_v51  ;;  %v5692_v43 = vpop.f32.mrb[23].mxu1  ;;  %6652 = vmatpush3.bf16.msra.mxu1 %v7914_v31 }
 0x123   :  { %v5693_v37 = vadd.f32 %v5692_v43, %v5691_v52  ;;  %2523 = vmatmul.mubr.bf16.vlgmr.msra.gmra.mrb[128].mxu0 %v8056_v15  ;;  %v8375_v23 = vadd.f32 %v5690_v25, %v5626_v30 }
 0x124   :  { %2458 = vmatmul.mubr.bf16.gmra.mrb[128].mxu1 %v8182_v1  ;;  %2530 = vmatprep.mubr.bf16.mxu0 %v8069_v21 }
 0x125   :  { %2465 = vmatprep.mubr.bf16.mxu1 %v8193_v8  ;;  %v8380_v6 = vadd.f32 %v5693_v37, %v5629_v57 }
 0x126   :  { %v5630_v36 = vpop.f32.mrb[24].mxu0 }
 0x127   :  { %v5694_v18 = vpop.f32.mrb[24].mxu1  ;;  %v5631_v17 = vpop.f32.mrb[25].mxu0 }
 0x128   :  { %v5632_v27 = vadd.f32 %v5631_v17, %v5630_v36  ;;  %v5695_v63 = vpop.f32.mrb[25].mxu1  ;;  %v5633_v0 = vpop.f32.mrb[26].mxu0 }
 0x129   :  { %v5696_v31 = vadd.f32 %v5695_v63, %v5694_v18  ;;  %v5697_v49 = vpop.f32.mrb[26].mxu1  ;;  %v5634_v40 = vpop.f32.mrb[27].mxu0 }
 0x12a   :  { %v5635_v15 = vadd.f32 %v5634_v40, %v5633_v0  ;;  %v5698_v5 = vpop.f32.mrb[27].mxu1 }
 0x12b   :  { %v5699_v14 = vadd.f32 %v5698_v5, %v5697_v49  ;;  %2531 = vmatmul.mubr.bf16.gmra.mrb[132].mxu0 %v8092_v32  ;;  %v8383_v1 = vadd.f32 %v5696_v31, %v5632_v27 }
 0x12c   :  { %2466 = vmatmul.mubr.bf16.gmra.mrb[132].mxu1 %v8211_v45  ;;  %2538 = vmatprep.mubr.bf16.mxu0 %v8103_v42 }
 0x12d   :  { %2473 = vmatprep.mubr.bf16.mxu1 %v8221_v33  ;;  %v8388_v21 = vadd.f32 %v5699_v14, %v5635_v15 }
 0x12e   :  { %v5636_v8 = vpop.f32.mrb[28].mxu0 }
 0x12f   :  { %v5700_v46 = vpop.f32.mrb[28].mxu1  ;;  %v5637_v19 = vpop.f32.mrb[29].mxu0 }
 0x130   :  { %v5638_v24 = vadd.f32 %v5637_v19, %v5636_v8  ;;  %v5701_v30 = vpop.f32.mrb[29].mxu1  ;;  %v5639_v55 = vpop.f32.mrb[30].mxu0 }
 0x131   :  { %v5702_v51 = vadd.f32 %v5701_v30, %v5700_v46  ;;  %v5703_v25 = vpop.f32.mrb[30].mxu1  ;;  %v5640_v52 = vpop.f32.mrb[31].mxu0 }
 0x132   :  { %v5704_v32 = vpop.f32.mrb[31].mxu1 }
 0x133   :  { %2539 = vmatmul.mubr.bf16.gmra.mrb[136].mxu0 %v8124_v44  ;;  %v1315_v60 = vadd.f32 %v5702_v51, %v5638_v24 }
 0x134   :  { %2474 = vmatmul.mubr.bf16.gmra.mrb[136].mxu1 %v8235_v35  ;;  %2546 = vmatprep.mubr.bf16.mxu0 %v8134_v50 }
 0x135   :  { %2481 = vmatprep.mubr.bf16.mxu1 %v8245_v61 }
 0x136   :  { %v6559_v42 = vpop.f32.mrb[32].mxu0 }
 0x137   :  { %v8395_v45 = vadd.f32 %v6559_v42, %v8290_v22  ;;  %v5738_v33 = vpop.f32.mrb[32].mxu1  ;;  %v1355_v57 = vpop.f32.mrb[33].mxu0 }
 0x138   :  { %v8398_v43 = vadd.f32 %v1355_v57, %v8272_v9  ;;  %v5739_v37 = vpop.f32.mrb[33].mxu1  ;;  %v6560_v36 = vpop.f32.mrb[34].mxu0 }
 0x139   :  { %v8400_v18 = vadd.f32 %v5739_v37, %v5738_v33  ;;  %v8403_v44 = vadd.f32 %v6560_v36, %v8296_v48  ;;  %v5741_v35 = vpop.f32.mrb[34].mxu1  ;;  %v1358_v50 = vpop.f32.mrb[35].mxu0 }
 0x13a   :  { %v8406_v61 = vadd.f32 %v1358_v50, %v8277_v10  ;;  %v5742_v17 = vpop.f32.mrb[35].mxu1 }
 0x13b   :  { %v8408_v22 = vadd.f32 %v5742_v17, %v5741_v35  ;;  %2547 = vmatmul.mubr.bf16.gmra.mrb[140].mxu0 %v8156_v56 }
 0x13c   :  { %2482 = vmatmul.mubr.bf16.gmra.mrb[140].mxu1 %v8259_v4  ;;  %2554 = vmatprep.mubr.bf16.mxu0 %v8166_v58 }
 0x13d   :  { %6653 = vmatprep.mubr.bf16.mxu1 %v8269_v28 }
 0x13e   :  { %v6563_v9 = vpop.f32.mrb[36].mxu0 }
 0x13f   :  { %v8415_v48 = vadd.f32 %v6563_v9, %v8342_v41  ;;  %v5744_v27 = vpop.f32.mrb[36].mxu1  ;;  %v1371_v63 = vpop.f32.mrb[37].mxu0 }
 0x140   :  { %v8418_v10 = vadd.f32 %v1371_v63, %v8316_v20  ;;  %v5745_v0 = vpop.f32.mrb[37].mxu1  ;;  %v6564_v31 = vpop.f32.mrb[38].mxu0 }
 0x141   :  { %v8420_v49 = vadd.f32 %v5745_v0, %v5744_v27  ;;  %v5747_v56 = vpop.f32.mrb[38].mxu1  ;;  %v1374_v40 = vpop.f32.mrb[39].mxu0 }
 0x142   :  { %v8423_v4 = vadd.f32 %v1374_v40, %v8322_v53  ;;  %v5748_v58 = vpop.f32.mrb[39].mxu1 }
 0x143   :  { %v8425_v28 = vadd.f32 %v5748_v58, %v5747_v56  ;;  %2555 = vmatmul.mubr.bf16.gmra.mrb[144].mxu0 %v8188_v7 }
 0x144   :  { %6654 = vmatmul.mubr.bf16.vlgmr.msra.gmra.mrb[144].mxu1 %v8282_v29  ;;  %2562 = vmatprep.mubr.bf16.mxu0 %v8198_v11 }
 0x145   :  { %6657 = vmatprep.mubr.bf16.mxu1 %v8287_v62 }
 0x146   :  { %v6567_v20 = vpop.f32.mrb[40].mxu0 }
 0x147   :  { %v8432_v41 = vadd.f32 %v6567_v20, %v8375_v23  ;;  %v5750_v15 = vpop.f32.mrb[40].mxu1  ;;  %v1387_v5 = vpop.f32.mrb[41].mxu0 }
 0x148   :  { %v8435_v53 = vadd.f32 %v1387_v5, %v8361_v34  ;;  %v5751_v14 = vpop.f32.mrb[41].mxu1  ;;  %v6568_v8 = vpop.f32.mrb[42].mxu0 }
 0x149   :  { %v8437_v46 = vadd.f32 %v5751_v14, %v5750_v15  ;;  %v8440_v7 = vadd.f32 %v6568_v8, %v8380_v6  ;;  %v5753_v29 = vpop.f32.mrb[42].mxu1  ;;  %v1390_v11 = vpop.f32.mrb[43].mxu0 }
 0x14a   :  { %v8443_v62 = vadd.f32 %v1390_v11, %v8367_v54  ;;  %v5754_v19 = vpop.f32.mrb[43].mxu1 }
 0x14b   :  { %v8445_v23 = vadd.f32 %v5754_v19, %v5753_v29  ;;  %2563 = vmatmul.mubr.bf16.gmra.mrb[148].mxu0 %v8216_v47 }
 0x14c   :  { %6658 = vmatmul.mubr.bf16.gmra.mrb[148].mxu1 %v8303_v3  ;;  %2570 = vmatprep.mubr.bf16.mxu0 %v8226_v59 }
 0x14d   :  { %6661 = vmatprep.mubr.bf16.mxu1 %v8312_v16 }
 0x14e   :  { %v6571_v34 = vpop.f32.mrb[44].mxu0 }
 0x14f   :  { %v8451_v24 = vadd.f32 %v6571_v34, %v1315_v60  ;;  %v5756_v6 = vpop.f32.mrb[44].mxu1  ;;  %v1403_v30 = vpop.f32.mrb[45].mxu0 }
 0x150   :  { %v8454_v55 = vadd.f32 %v1403_v30, %v8383_v1  ;;  %v5757_v54 = vpop.f32.mrb[45].mxu1  ;;  %v6572_v51 = vpop.f32.mrb[46].mxu0 }
 0x151   :  { %v8456_v25 = vadd.f32 %v5757_v54, %v5756_v6  ;;  %v5759_v52 = vpop.f32.mrb[46].mxu1  ;;  %v1406_v47 = vpop.f32.mrb[47].mxu0 }
 0x152   :  { %v8459_v3 = vadd.f32 %v1406_v47, %v8388_v21  ;;  %v5760_v59 = vpop.f32.mrb[47].mxu1 }
 0x153   :  { %2571 = vmatmul.mubr.bf16.gmra.mrb[152].mxu0 %v8240_v39 }
 0x154   :  { %6662 = vmatmul.mubr.bf16.gmra.mrb[152].mxu1 %v8329_v12  ;;  %2578 = vmatprep.mubr.bf16.mxu0 %v8250_v2 }
 0x155   :  { %6665 = vmatprep.mubr.bf16.mxu1 %v8337_v38 }
 0x156   :  { %v5802_v16 = vpop.f32.mrb[48].mxu0 }
 0x157   :  { %v5762_v1 = vpop.f32.mrb[48].mxu1  ;;  %v5803_v32 = vpop.f32.mrb[49].mxu0 }
 0x158   :  { %v5763_v60 = vpop.f32.mrb[49].mxu1  ;;  %v5804_v42 = vadd.f32 %v5803_v32, %v5802_v16  ;;  %v5805_v33 = vpop.f32.mrb[50].mxu0 }
 0x159   :  { %v8465_v57 = vadd.f32 %v5763_v60, %v5762_v1  ;;  %v5765_v37 = vpop.f32.mrb[50].mxu1  ;;  %v5806_v21 = vpop.f32.mrb[51].mxu0 }
 0x15a   :  { %v5766_v36 = vpop.f32.mrb[51].mxu1  ;;  %v5807_v35 = vadd.f32 %v5806_v21, %v5805_v33  ;;  %v1871_v39 = vadd.f32 %v5804_v42, %v8400_v18 }
 0x15b   :  { %v8468_v50 = vadd.f32 %v5766_v36, %v5765_v37  ;;  %2579 = vmatmul.mubr.bf16.gmra.mrb[156].mxu0 %v8264_v26  ;;  %v7004_v36 = vld [vmem:[%s9705_s3] sm:$0xff]  }
 0x15c   :  { %6666 = vmatmul.mubr.bf16.gmra.mrb[156].mxu1 %v8353_v13  ;;  %v1874_v2 = vadd.f32 %v5807_v35, %v8408_v22 }
 0x15e   :  { %v5808_v12 = vpop.f32.mrb[52].mxu0 }
 0x15f   :  { %v5768_v38 = vpop.f32.mrb[52].mxu1  ;;  %v5809_v17 = vpop.f32.mrb[53].mxu0 }
 0x160   :  { %v5769_v9 = vpop.f32.mrb[53].mxu1  ;;  %v5810_v27 = vadd.f32 %v5809_v17, %v5808_v12  ;;  %v5811_v63 = vpop.f32.mrb[54].mxu0 }
 0x161   :  { %v8473_v0 = vadd.f32 %v5769_v9, %v5768_v38  ;;  %v5771_v31 = vpop.f32.mrb[54].mxu1  ;;  %v5812_v56 = vpop.f32.mrb[55].mxu0 }
 0x162   :  { %v5772_v40 = vpop.f32.mrb[55].mxu1  ;;  %v5813_v18 = vadd.f32 %v5812_v56, %v5811_v63  ;;  %v1879_v58 = vadd.f32 %v5810_v27, %v8420_v49 }
 0x163   :  { %v8476_v20 = vadd.f32 %v5772_v40, %v5771_v31 }
 0x164   :  { %v1882_v26 = vadd.f32 %v5813_v18, %v8425_v28 }
 0x166   :  { %v5814_v13 = vpop.f32.mrb[56].mxu0 }
 0x167   :  { %v5774_v22 = vpop.f32.mrb[56].mxu1  ;;  %v5815_v15 = vpop.f32.mrb[57].mxu0 }
 0x168   :  { %v5775_v5 = vpop.f32.mrb[57].mxu1  ;;  %v5816_v14 = vadd.f32 %v5815_v15, %v5814_v13  ;;  %v5817_v8 = vpop.f32.mrb[58].mxu0 }
 0x169   :  { %v8479_v29 = vadd.f32 %v5775_v5, %v5774_v22  ;;  %v5777_v11 = vpop.f32.mrb[58].mxu1  ;;  %v5818_v19 = vpop.f32.mrb[59].mxu0 }
 0x16a   :  { %v5778_v34 = vpop.f32.mrb[59].mxu1  ;;  %v5819_v6 = vadd.f32 %v5818_v19, %v5817_v8  ;;  %v1887_v30 = vadd.f32 %v5816_v14, %v8437_v46  ;;  %v7003_v46 = vld [vmem:[%s9705_s3 + $0x40] sm:$0xff]  }
 0x16b   :  { %v8482_v54 = vadd.f32 %v5778_v34, %v5777_v11  ;;  %6154 = vmatprep.subr.bf16.mxu0 %v7003_v46 }
 0x16c   :  { %v1890_v49 = vadd.f32 %v5819_v6, %v8445_v23  ;;  %6155 = vmatpush3.bf16.msra.mxu0 %v7004_v36 }
 0x16e   :  { %v5820_v51 = vpop.f32.mrb[60].mxu0 }
 0x16f   :  { %v5780_v28 = vpop.f32.mrb[60].mxu1  ;;  %v5821_v52 = vpop.f32.mrb[61].mxu0 }
 0x170   :  { %v5781_v47 = vpop.f32.mrb[61].mxu1  ;;  %v5822_v59 = vadd.f32 %v5821_v52, %v5820_v51  ;;  %v5823_v16 = vpop.f32.mrb[62].mxu0 }
 0x171   :  { %v8485_v1 = vadd.f32 %v5781_v47, %v5780_v28  ;;  %v5783_v32 = vpop.f32.mrb[62].mxu1  ;;  %v5824_v60 = vpop.f32.mrb[63].mxu0 }
 0x172   :  { %v5784_v42 = vpop.f32.mrb[63].mxu1  ;;  %v1895_v33 = vadd.f32 %v5822_v59, %v8456_v25 }
 0x176   :  { %v5826_v37 = vpop.f32.mrb[64].mxu0 }
 0x177   :  { %v6591_v21 = vpop.f32.mrb[64].mxu1  ;;  %v5827_v23 = vpop.f32.mrb[65].mxu0 }
 0x178   :  { %v8494_v35 = vadd.f32 %v6591_v21, %v1879_v58  ;;  %v5828_v12 = vadd.f32 %v5827_v23, %v5826_v37  ;;  %v1967_v38 = vpop.f32.mrb[65].mxu1  ;;  %v5829_v17 = vpop.f32.mrb[66].mxu0 }
 0x179   :  { %v8496_v9 = vadd.f32 %v1967_v38, %v1871_v39  ;;  %v6592_v25 = vpop.f32.mrb[66].mxu1  ;;  %v5830_v27 = vpop.f32.mrb[67].mxu0  ;;  %v7005_v39 = vld [vmem:[%s9705_s3 + $0x48] sm:$0xff]  }
 0x17a   :  { %v2032_v63 = vmax.f32 %v8395_v45, %v8494_v35  ;;  %v8500_v31 = vadd.f32 %v6592_v25, %v1882_v26  ;;  %v5831_v56 = vadd.f32 %v5830_v27, %v5829_v17  ;;  %v1970_v40 = vpop.f32.mrb[67].mxu1  ;;  %v1903_v18 = vadd.f32 %v5828_v12, %v8465_v57  ;;  %6156 = vmatprep.subr.bf16.mxu0 %v7005_v39 }
 0x17b   :  { %v2030_v58 = vmax.f32 %v8398_v43, %v8496_v9  ;;  %v8505_v13 = vadd.f32 %v1970_v40, %v1874_v2  ;;  %v7006_v2 = vld [vmem:[%s9705_s3 + $0x8] sm:$0xff]  }
 0x17c   :  { %v2033_v22 = vmax.f32 %v8403_v44, %v8500_v31  ;;  %v1906_v15 = vadd.f32 %v5831_v56, %v8468_v50  ;;  %6157 = vmatpush3.bf16.msra.mxu0 %v7006_v2 }
 0x17e   :  { %v5832_v5 = vpop.f32.mrb[68].mxu0 }
 0x17f   :  { %v6595_v57 = vpop.f32.mrb[68].mxu1  ;;  %v5833_v14 = vpop.f32.mrb[69].mxu0 }
 0x180   :  { %v8518_v8 = vadd.f32 %v6595_v57, %v1895_v33  ;;  %v5834_v11 = vadd.f32 %v5833_v14, %v5832_v5  ;;  %v1983_v19 = vpop.f32.mrb[69].mxu1  ;;  %v5835_v34 = vpop.f32.mrb[70].mxu0 }
 0x181   :  { %v8520_v6 = vadd.f32 %v1983_v19, %v1887_v30  ;;  %v6596_v51 = vpop.f32.mrb[70].mxu1  ;;  %v5836_v50 = vpop.f32.mrb[71].mxu0  ;;  %v7007_v30 = vld [vmem:[%s9705_s3 + $0x50] sm:$0xff]  }
 0x182   :  { %v5837_v52 = vadd.f32 %v5836_v50, %v5835_v34  ;;  %v1986_v47 = vpop.f32.mrb[71].mxu1  ;;  %v1911_v59 = vadd.f32 %v5834_v11, %v8473_v0  ;;  %6158 = vmatprep.subr.bf16.mxu0 %v7007_v30  ;;  %v7008_v0 = vld [vmem:[%s9705_s3 + $0x10] sm:$0xff]   ;;  %v9789_v44 = vmax.f32 %v8415_v48, %v8518_v8 }
 0x183   :  { %v8527_v32 = vadd.f32 %v1986_v47, %v1890_v49  ;;  %6159 = vmatpush3.bf16.msra.mxu0 %v7008_v0 }
 0x184   :  { %v1914_v60 = vadd.f32 %v5837_v52, %v8476_v20 }
 0x186   :  { %v5838_v33 = vpop.f32.mrb[72].mxu0 }
 0x187   :  { %v6599_v46 = vpop.f32.mrb[72].mxu1  ;;  %v5839_v37 = vpop.f32.mrb[73].mxu0 }
 0x188   :  { %v8538_v21 = vadd.f32 %v6599_v46, %v1911_v59  ;;  %v5840_v49 = vadd.f32 %v5839_v37, %v5838_v33  ;;  %v1999_v23 = vpop.f32.mrb[73].mxu1  ;;  %v5841_v36 = vpop.f32.mrb[74].mxu0  ;;  %v7012_v33 = vld [vmem:[%s9705_s3 + $0x60] sm:$0xff]  }
 0x189   :  { %v8540_v12 = vadd.f32 %v1999_v23, %v1903_v18  ;;  %v6600_v38 = vpop.f32.mrb[74].mxu1  ;;  %v5842_v20 = vpop.f32.mrb[75].mxu0  ;;  %v7009_v18 = vld [vmem:[%s9705_s3 + $0x58] sm:$0xff]   ;;  %v7013_v46 = vld [vmem:[%s9705_s3 + $0x80] sm:$0xff]  }
 0x18a   :  { %v8544_v25 = vadd.f32 %v6600_v38, %v1914_v60  ;;  %v5843_v27 = vadd.f32 %v5842_v20, %v5841_v36  ;;  %v2002_v56 = vpop.f32.mrb[75].mxu1  ;;  %v1919_v40 = vadd.f32 %v5840_v49, %v8479_v29  ;;  %6160 = vmatprep.subr.bf16.mxu0 %v7009_v18  ;;  %v7011_v60 = vld [vmem:[%s9705_s3 + $0xc0] sm:$0xff]  }
 0x18b   :  { %v8549_v5 = vadd.f32 %v2002_v56, %v1906_v15  ;;  %v7010_v15 = vld [vmem:[%s9705_s3 + $0x18] sm:$0xff]   ;;  %6188 = vmatprep.subr.bf16.mxu1 %v7011_v60  ;;  %v7014_v60 = vld [vmem:[%s9705_s3 + $0x20] sm:$0xff]  }
 0x18c   :  { %v1922_v14 = vadd.f32 %v5843_v27, %v8482_v54  ;;  %6161 = vmatpush3.bf16.msra.mxu0 %v7010_v15  ;;  %6189 = vmatpush3.bf16.msra.mxu1 %v7013_v46  ;;  %v7015_v27 = vld [vmem:[%s9705_s3 + $0xc8] sm:$0xff]  }
 0x18d   :  { %6162 = vmatprep.subr.bf16.mxu0 %v7012_v33  ;;  %6190 = vmatprep.subr.bf16.mxu1 %v7015_v27 }
 0x18e   :  { %v5844_v11 = vpop.f32.mrb[76].mxu0 }
 0x18f   :  { %v6603_v29 = vpop.f32.mrb[76].mxu1  ;;  %v5845_v19 = vpop.f32.mrb[77].mxu0 }
 0x190   :  { %v5846_v34 = vadd.f32 %v5845_v19, %v5844_v11  ;;  %v2015_v51 = vpop.f32.mrb[77].mxu1  ;;  %v5847_v50 = vpop.f32.mrb[78].mxu0  ;;  %6163 = vmatpush3.bf16.msra.mxu0 %v7014_v60 }
 0x191   :  { %v8562_v52 = vadd.f32 %v2015_v51, %v1919_v40  ;;  %v6604_v47 = vpop.f32.mrb[78].mxu1  ;;  %v5848_v59 = vpop.f32.mrb[79].mxu0 }
 0x192   :  { %v1927_v54 = vadd.f32 %v5846_v34, %v8485_v1  ;;  %v2018_v30 = vpop.f32.mrb[79].mxu1  ;;  %v7017_v47 = vld [vmem:[%s9705_s3 + $0xd0] sm:$0xff]  }
 0x193   :  { %v8576_v0 = vadd.f32 %v2018_v30, %v1922_v14  ;;  %v7016_v14 = vld [vmem:[%s9705_s3 + $0x88] sm:$0xff]   ;;  %v7019_v59 = vld [vmem:[%s9705_s3 + $0x90] sm:$0xff]  }
 0x194   :  { %v8578_v49 = vadd.f32 %v6603_v29, %v1927_v54  ;;  %6191 = vmatpush3.bf16.msra.mxu1 %v7016_v14 }
 0x195   :  { %6192 = vmatprep.subr.bf16.mxu1 %v7017_v47  ;;  %v7025_v47 = vld [vmem:[%s9705_s3 + $0xa0] sm:$0xff]  }
 0x196   :  { %v5882_v23 = vpop.f32.mrb[80].mxu0 }
 0x197   :  { %v5946_v38 = vpop.f32.mrb[80].mxu1  ;;  %v5883_v20 = vpop.f32.mrb[81].mxu0 }
 0x198   :  { %v5884_v56 = vadd.f32 %v5883_v20, %v5882_v23  ;;  %v5947_v40 = vpop.f32.mrb[81].mxu1  ;;  %v5885_v18 = vpop.f32.mrb[82].mxu0  ;;  %6193 = vmatpush3.bf16.msra.mxu1 %v7019_v59  ;;  %v7021_v23 = vld [vmem:[%s9705_s3 + $0xd8] sm:$0xff]  }
 0x199   :  { %v5948_v11 = vadd.f32 %v5947_v40, %v5946_v38  ;;  %v5949_v29 = vpop.f32.mrb[82].mxu1  ;;  %v5886_v19 = vpop.f32.mrb[83].mxu0  ;;  %6194 = vmatprep.subr.bf16.mxu1 %v7021_v23 }
 0x19a   :  { %v5887_v15 = vadd.f32 %v5886_v19, %v5885_v18  ;;  %v5950_v34 = vpop.f32.mrb[83].mxu1 }
 0x19b   :  { %v5951_v51 = vadd.f32 %v5950_v34, %v5949_v29  ;;  %v8590_v50 = vadd.f32 %v5948_v11, %v5884_v56  ;;  %v7022_v56 = vld [vmem:[%s9705_s3 + $0x98] sm:$0xff]   ;;  %v7018_v34 = vld [vmem:[%s9705_s3 + $0x68] sm:$0xff]  }
 0x19c   :  { %6195 = vmatpush3.bf16.msra.mxu1 %v7022_v56  ;;  %6164 = vmatprep.subr.bf16.mxu0 %v7018_v34  ;;  %v7028_v56 = vld [vmem:[%s9705_s3 + $0xa8] sm:$0xff]  }
 0x19d   :  { %v8598_v54 = vadd.f32 %v5951_v51, %v5887_v15  ;;  %v7023_v51 = vld [vmem:[%s9705_s3 + $0xe0] sm:$0xff]  }
 0x19e   :  { %v5888_v30 = vpop.f32.mrb[84].mxu0  ;;  %6196 = vmatprep.subr.bf16.mxu1 %v7023_v51  ;;  %v7024_v51 = vld [vmem:[%s9705_s3 + $0x70] sm:$0xff]  }
 0x19f   :  { %v5952_v33 = vpop.f32.mrb[84].mxu1  ;;  %v5889_v46 = vpop.f32.mrb[85].mxu0 }
 0x1a0   :  { %v5890_v38 = vadd.f32 %v5889_v46, %v5888_v30  ;;  %v5953_v20 = vpop.f32.mrb[85].mxu1  ;;  %v5891_v27 = vpop.f32.mrb[86].mxu0  ;;  %6197 = vmatpush3.bf16.msra.mxu1 %v7025_v47  ;;  %v7027_v46 = vld [vmem:[%s9705_s3 + $0xe8] sm:$0xff]   ;;  %v7029_v47 = vld [vmem:[%s9705_s3 + $0xf0] sm:$0xff]  }
 0x1a1   :  { %v5954_v40 = vadd.f32 %v5953_v20, %v5952_v33  ;;  %v5955_v18 = vpop.f32.mrb[86].mxu1  ;;  %v5892_v14 = vpop.f32.mrb[87].mxu0  ;;  %6198 = vmatprep.subr.bf16.mxu1 %v7027_v46 }
 0x1a2   :  { %v5893_v11 = vadd.f32 %v5892_v14, %v5891_v27  ;;  %v5956_v29 = vpop.f32.mrb[87].mxu1  ;;  %v7020_v27 = vld [vmem:[%s9705_s3 + $0x28] sm:$0xff]  }
 0x1a3   :  { %v5957_v19 = vadd.f32 %v5956_v29, %v5955_v18  ;;  %v8609_v15 = vadd.f32 %v5954_v40, %v5890_v38  ;;  %6165 = vmatpush3.bf16.msra.mxu0 %v7020_v27  ;;  %v7033_v27 = vld [vmem:[%s9705_s3 + $0xf8] sm:$0xff]  }
 0x1a4   :  { %6199 = vmatpush3.bf16.msra.mxu1 %v7028_v56  ;;  %6166 = vmatprep.subr.bf16.mxu0 %v7024_v51 }
 0x1a5   :  { %v8620_v59 = vadd.f32 %v5957_v19, %v5893_v11  ;;  %6200 = vmatprep.subr.bf16.mxu1 %v7029_v47 }
 0x1a6   :  { %v5894_v30 = vpop.f32.mrb[88].mxu0 }
 0x1a7   :  { %v5958_v60 = vpop.f32.mrb[88].mxu1  ;;  %v5895_v33 = vpop.f32.mrb[89].mxu0 }
 0x1a8   :  { %v5896_v23 = vadd.f32 %v5895_v33, %v5894_v30  ;;  %v5959_v38 = vpop.f32.mrb[89].mxu1  ;;  %v5897_v20 = vpop.f32.mrb[90].mxu0  ;;  %v7026_v30 = vld [vmem:[%s9705_s3 + $0x30] sm:$0xff]  }
 0x1a9   :  { %v5960_v40 = vadd.f32 %v5959_v38, %v5958_v60  ;;  %v5961_v18 = vpop.f32.mrb[90].mxu1  ;;  %v5898_v14 = vpop.f32.mrb[91].mxu0  ;;  %v7031_v60 = vld [vmem:[%s9705_s3 + $0xb0] sm:$0xff]   ;;  %6167 = vmatpush3.bf16.msra.mxu0 %v7026_v30 }
 0x1aa   :  { %v5899_v11 = vadd.f32 %v5898_v14, %v5897_v20  ;;  %v5962_v29 = vpop.f32.mrb[91].mxu1  ;;  %6201 = vmatpush3.bf16.msra.mxu1 %v7031_v60  ;;  %v7030_v20 = vld [vmem:[%s9705_s3 + $0x78] sm:$0xff]   ;;  %v7035_v60 = vld [vmem:[%s9705_s3 + $0x180] sm:$0xff]  }
 0x1ab   :  { %v5963_v19 = vadd.f32 %v5962_v29, %v5961_v18  ;;  %v8631_v34 = vadd.f32 %v5960_v40, %v5896_v23  ;;  %v7032_v14 = vld [vmem:[%s9705_s3 + $0x38] sm:$0xff]   ;;  %6168 = vmatprep.subr.bf16.mxu0 %v7030_v20  ;;  %6202 = vmatprep.subr.bf16.mxu1 %v7033_v27 }
 0x1ad   :  { %v8645_v33 = vadd.f32 %v5963_v19, %v5899_v11  ;;  %v7034_v11 = vld [vmem:[%s9705_s3 + $0xb8] sm:$0xff]   ;;  %6169 = vmatpush3.bf16.msra.mxu0 %v7032_v14 }
 0x1ae   :  { %v5900_v46 = vpop.f32.mrb[92].mxu0  ;;  %6203 = vmatpush3.bf16.msra.mxu1 %v7034_v11 }
 0x1af   :  { %v5964_v23 = vpop.f32.mrb[92].mxu1  ;;  %v5901_v38 = vpop.f32.mrb[93].mxu0  ;;  %6233 = vmatprep.subr.bf16.mxu1 %v7035_v60 }
 0x1b0   :  { %v5902_v56 = vadd.f32 %v5901_v38, %v5900_v46  ;;  %v5965_v40 = vpop.f32.mrb[93].mxu1  ;;  %v5903_v18 = vpop.f32.mrb[94].mxu0  ;;  %v9741_v46 = vmov 0.0  }
 0x1b1   :  { %v5966_v29 = vadd.f32 %v5965_v40, %v5964_v23  ;;  %v5967_v19 = vpop.f32.mrb[94].mxu1  ;;  %v5904_v51 = vpop.f32.mrb[95].mxu0  ;;  %6669 = vmatprep.subr.bf16.mxu0 %v9741_v46 }
 0x1b2   :  { %v5968_v47 = vpop.f32.mrb[95].mxu1 }
 0x1b3   :  { %v8659_v30 = vadd.f32 %v5966_v29, %v5902_v56 }
 0x1b6   :  { %v5906_v38 = vpop.f32.mrb[96].mxu0 }
 0x1b7   :  { %v5970_v18 = vpop.f32.mrb[96].mxu1  ;;  %v5907_v23 = vpop.f32.mrb[97].mxu0 }
 0x1b8   :  { %v5908_v40 = vadd.f32 %v5907_v23, %v5906_v38  ;;  %v5971_v19 = vpop.f32.mrb[97].mxu1  ;;  %v5909_v20 = vpop.f32.mrb[98].mxu0 }
 0x1b9   :  { %v5972_v27 = vadd.f32 %v5971_v19, %v5970_v18  ;;  %v5973_v51 = vpop.f32.mrb[98].mxu1  ;;  %v5910_v14 = vpop.f32.mrb[99].mxu0 }
 0x1ba   :  { %v5911_v11 = vadd.f32 %v5910_v14, %v5909_v20  ;;  %v5974_v56 = vpop.f32.mrb[99].mxu1 }
 0x1bb   :  { %v5975_v29 = vadd.f32 %v5974_v56, %v5973_v51  ;;  %v8665_v47 = vadd.f32 %v5972_v27, %v5908_v40 }
 0x1bd   :  { %v8667_v1 = vadd.f32 %v5975_v29, %v5911_v11 }
 0x1be   :  { %v5912_v37 = vpop.f32.mrb[100].mxu0 }
 0x1bf   :  { %v5976_v36 = vpop.f32.mrb[100].mxu1  ;;  %v5913_v46 = vpop.f32.mrb[101].mxu0 }
 0x1c0   :  { %v5914_v60 = vadd.f32 %v5913_v46, %v5912_v37  ;;  %v5977_v2 = vpop.f32.mrb[101].mxu1  ;;  %v5915_v57 = vpop.f32.mrb[102].mxu0 }
 0x1c1   :  { %v5978_v39 = vadd.f32 %v5977_v2, %v5976_v36  ;;  %v5979_v38 = vpop.f32.mrb[102].mxu1  ;;  %v5916_v23 = vpop.f32.mrb[103].mxu0 }
 0x1c2   :  { %v5917_v17 = vadd.f32 %v5916_v23, %v5915_v57  ;;  %v5980_v18 = vpop.f32.mrb[103].mxu1 }
 0x1c3   :  { %v5981_v19 = vadd.f32 %v5980_v18, %v5979_v38  ;;  %v2258_v42 = vadd.f32 %v5978_v39, %v5914_v60 }
 0x1c5   :  { %v8669_v20 = vadd.f32 %v5981_v19, %v5917_v17 }
 0x1c6   :  { %v5918_v51 = vpop.f32.mrb[104].mxu0 }
 0x1c7   :  { %v5982_v40 = vpop.f32.mrb[104].mxu1  ;;  %v5919_v27 = vpop.f32.mrb[105].mxu0 }
 0x1c8   :  { %v5920_v14 = vadd.f32 %v5919_v27, %v5918_v51  ;;  %v5983_v11 = vpop.f32.mrb[105].mxu1  ;;  %v5921_v56 = vpop.f32.mrb[106].mxu0 }
 0x1c9   :  { %v5984_v29 = vadd.f32 %v5983_v11, %v5982_v40  ;;  %v5985_v16 = vpop.f32.mrb[106].mxu1  ;;  %v5922_v37 = vpop.f32.mrb[107].mxu0 }
 0x1ca   :  { %v5923_v46 = vadd.f32 %v5922_v37, %v5921_v56  ;;  %v5986_v28 = vpop.f32.mrb[107].mxu1 }
 0x1cb   :  { %v5987_v2 = vadd.f32 %v5986_v28, %v5985_v16  ;;  %v8671_v36 = vadd.f32 %v5984_v29, %v5920_v14 }
 0x1cd   :  { %v8673_v57 = vadd.f32 %v5987_v2, %v5923_v46 }
 0x1ce   :  { %v5924_v38 = vpop.f32.mrb[108].mxu0 }
 0x1cf   :  { %v5988_v39 = vpop.f32.mrb[108].mxu1  ;;  %v5925_v17 = vpop.f32.mrb[109].mxu0 }
 0x1d0   :  { %v5926_v60 = vadd.f32 %v5925_v17, %v5924_v38  ;;  %v5989_v23 = vpop.f32.mrb[109].mxu1  ;;  %v5927_v18 = vpop.f32.mrb[110].mxu0 }
 0x1d1   :  { %v5990_v19 = vadd.f32 %v5989_v23, %v5988_v39  ;;  %v5991_v51 = vpop.f32.mrb[110].mxu1  ;;  %v5928_v27 = vpop.f32.mrb[111].mxu0 }
 0x1d2   :  { %v5992_v26 = vpop.f32.mrb[111].mxu1 }
 0x1d3   :  { %v2274_v40 = vadd.f32 %v5990_v19, %v5926_v60 }
 0x1d6   :  { %v6623_v11 = vpop.f32.mrb[112].mxu0 }
 0x1d7   :  { %v2323_v56 = vadd.f32 %v6623_v11, %v8609_v15  ;;  %v6026_v37 = vpop.f32.mrb[112].mxu1  ;;  %v2314_v28 = vpop.f32.mrb[113].mxu0  ;;  %v9791_v11 = vmax.f32 %v8423_v4, %v8527_v32 }
 0x1d8   :  { %v2315_v16 = vadd.f32 %v2314_v28, %v8590_v50  ;;  %v6027_v14 = vpop.f32.mrb[113].mxu1  ;;  %v6624_v29 = vpop.f32.mrb[114].mxu0 }
 0x1d9   :  { %v8680_v46 = vmax.f32 %v2032_v63, %v2323_v56  ;;  %v8682_v2 = vadd.f32 %v6027_v14, %v6026_v37  ;;  %v2326_v38 = vadd.f32 %v6624_v29, %v8620_v59  ;;  %v6029_v26 = vpop.f32.mrb[114].mxu1  ;;  %v2317_v39 = vpop.f32.mrb[115].mxu0  ;;  %v9788_v63 = vmax.f32 %v8406_v61, %v8505_v13 }
 0x1da   :  { %v8688_v15 = vmax.f32 %v2030_v58, %v2315_v16  ;;  %v2318_v50 = vadd.f32 %v2317_v39, %v8598_v54  ;;  %v6030_v17 = vpop.f32.mrb[115].mxu1  ;;  %v9790_v13 = vmax.f32 %v8418_v10, %v8520_v6  ;;  %v9792_v10 = vmax.f32 %v8432_v41, %v8538_v21 }
 0x1db   :  { %v8694_v45 = vmax.f32 %v2033_v22, %v2326_v38  ;;  %v8696_v35 = vadd.f32 %v6030_v17, %v6029_v26  ;;  %v9795_v17 = vmax.f32 %v8443_v62, %v8549_v5  ;;  %v9797_v62 = vmax.f32 %v8454_v55, %v8562_v52 }
 0x1dc   :  { %v8701_v59 = vmax.f32 %v9788_v63, %v2318_v50  ;;  %v9794_v50 = vmax.f32 %v8440_v7, %v8544_v25 }
 0x1de   :  { %v6627_v60 = vpop.f32.mrb[116].mxu0 }
 0x1df   :  { %v2339_v43 = vadd.f32 %v6627_v60, %v8659_v30  ;;  %v6032_v9 = vpop.f32.mrb[116].mxu1  ;;  %v2330_v58 = vpop.f32.mrb[117].mxu0 }
 0x1e0   :  { %v2331_v54 = vadd.f32 %v2330_v58, %v8631_v34  ;;  %v6033_v23 = vpop.f32.mrb[117].mxu1  ;;  %v6628_v18 = vpop.f32.mrb[118].mxu0  ;;  %v9796_v58 = vmax.f32 %v8451_v24, %v8578_v49 }
 0x1e1   :  { %v8708_v31 = vmax.f32 %v9789_v44, %v2339_v43  ;;  %v8710_v22 = vadd.f32 %v6033_v23, %v6032_v9  ;;  %v6035_v19 = vpop.f32.mrb[118].mxu1  ;;  %v2333_v61 = vpop.f32.mrb[119].mxu0 }
 0x1e2   :  { %v8715_v51 = vmax.f32 %v9790_v13, %v2331_v54  ;;  %v2334_v30 = vadd.f32 %v2333_v61, %v8645_v33  ;;  %v6036_v27 = vpop.f32.mrb[119].mxu1 }
 0x1e3   :  { %v6037_v34 = vadd.f32 %v6036_v27, %v6035_v19 }
 0x1e4   :  { %v8721_v56 = vmax.f32 %v9791_v11, %v2334_v30 }
 0x1e6   :  { %v6631_v48 = vpop.f32.mrb[120].mxu0 }
 0x1e7   :  { %v2355_v8 = vadd.f32 %v6631_v48, %v2258_v42  ;;  %v6038_v37 = vpop.f32.mrb[120].mxu1  ;;  %v2346_v28 = vpop.f32.mrb[121].mxu0  ;;  %v9793_v42 = vmax.f32 %v8435_v53, %v8540_v12 }
 0x1e8   :  { %v2347_v16 = vadd.f32 %v2346_v28, %v8665_v47  ;;  %v6039_v14 = vpop.f32.mrb[121].mxu1  ;;  %v6632_v29 = vpop.f32.mrb[122].mxu0 }
 0x1e9   :  { %v8727_v6 = vmax.f32 %v9792_v10, %v2355_v8  ;;  %v8729_v33 = vadd.f32 %v6039_v14, %v6038_v37  ;;  %v2358_v38 = vadd.f32 %v6632_v29, %v8669_v20  ;;  %v6041_v4 = vpop.f32.mrb[122].mxu1  ;;  %v2349_v32 = vpop.f32.mrb[123].mxu0 }
 0x1ea   :  { %v8735_v26 = vmax.f32 %v9793_v42, %v2347_v16  ;;  %v2350_v47 = vadd.f32 %v2349_v32, %v8667_v1  ;;  %v6042_v39 = vpop.f32.mrb[123].mxu1 }
 0x1eb   :  { %v8741_v41 = vmax.f32 %v9794_v50, %v2358_v38  ;;  %v6043_v21 = vadd.f32 %v6042_v39, %v6041_v4 }
 0x1ec   :  { %v8746_v20 = vmax.f32 %v9795_v17, %v2350_v47 }
 0x1ee   :  { %v6635_v63 = vpop.f32.mrb[124].mxu0 }
 0x1ef   :  { %v2371_v60 = vadd.f32 %v6635_v63, %v2274_v40  ;;  %v6044_v43 = vpop.f32.mrb[124].mxu1  ;;  %v2362_v53 = vpop.f32.mrb[125].mxu0 }
 0x1f0   :  { %v2363_v12 = vadd.f32 %v2362_v53, %v8671_v36  ;;  %v6045_v9 = vpop.f32.mrb[125].mxu1  ;;  %v6636_v1 = vpop.f32.mrb[126].mxu0  ;;  %v9798_v36 = vmax.f32 %v8459_v3, %v8576_v0 }
 0x1f1   :  { %v8752_v7 = vmax.f32 %v9796_v58, %v2371_v60  ;;  %v6046_v25 = vadd.f32 %v6045_v9, %v6044_v43  ;;  %v6047_v54 = vpop.f32.mrb[126].mxu1  ;;  %v2365_v23 = vpop.f32.mrb[127].mxu0 }
 0x1f2   :  { %v8757_v5 = vmax.f32 %v9797_v62, %v2363_v12  ;;  %v2366_v40 = vadd.f32 %v2365_v23, %v8673_v57  ;;  %v6048_v18 = vpop.f32.mrb[127].mxu1 }
 0x1f4   :  { %v8763_v44 = vmax.f32 %v9798_v36, %v2366_v40 }
 0x1f6   :  { %v6090_v19 = vpop.f32.mrb[128].mxu0 }
 0x1f7   :  { %v6050_v24 = vpop.f32.mrb[128].mxu1  ;;  %v6091_v49 = vpop.f32.mrb[129].mxu0 }
 0x1f8   :  { %v6051_v61 = vpop.f32.mrb[129].mxu1  ;;  %v6092_v13 = vadd.f32 %v6091_v49, %v6090_v19  ;;  %v6093_v30 = vpop.f32.mrb[130].mxu0 }
 0x1f9   :  { %v8765_v27 = vadd.f32 %v6051_v61, %v6050_v24  ;;  %v6053_v11 = vpop.f32.mrb[130].mxu1  ;;  %v6094_v55 = vpop.f32.mrb[131].mxu0 }
 0x1fa   :  { %v6054_v52 = vpop.f32.mrb[131].mxu1  ;;  %v6095_v48 = vadd.f32 %v6094_v55, %v6093_v30  ;;  %v2525_v57 = vadd.f32 %v6092_v13, %v8682_v2 }
 0x1fb   :  { %v6055_v8 = vadd.f32 %v6054_v52, %v6053_v11 }
 0x1fc   :  { %v2528_v37 = vadd.f32 %v6095_v48, %v8696_v35 }
 0x1fe   :  { %v6096_v3 = vpop.f32.mrb[132].mxu0 }
 0x1ff   :  { %v6056_v0 = vpop.f32.mrb[132].mxu1  ;;  %v6097_v28 = vpop.f32.mrb[133].mxu0 }
 0x200   :  { %v6057_v16 = vpop.f32.mrb[133].mxu1  ;;  %v6098_v14 = vadd.f32 %v6097_v28, %v6096_v3  ;;  %v6099_v29 = vpop.f32.mrb[134].mxu0 }
 0x201   :  { %v8769_v10 = vadd.f32 %v6057_v16, %v6056_v0  ;;  %v6059_v38 = vpop.f32.mrb[134].mxu1  ;;  %v6100_v4 = vpop.f32.mrb[135].mxu0 }
 0x202   :  { %v6060_v32 = vpop.f32.mrb[135].mxu1  ;;  %v6101_v42 = vadd.f32 %v6100_v4, %v6099_v29  ;;  %v2533_v47 = vadd.f32 %v6098_v14, %v8710_v22 }
 0x203   :  { %v8772_v39 = vadd.f32 %v6060_v32, %v6059_v38 }
 0x204   :  { %v2536_v2 = vadd.f32 %v6101_v42, %v6037_v34 }
 0x206   :  { %v6102_v50 = vpop.f32.mrb[136].mxu0 }
 0x207   :  { %v6062_v17 = vpop.f32.mrb[136].mxu1  ;;  %v6103_v35 = vpop.f32.mrb[137].mxu0 }
 0x208   :  { %v6063_v63 = vpop.f32.mrb[137].mxu1  ;;  %v6104_v60 = vadd.f32 %v6103_v35, %v6102_v50  ;;  %v6105_v43 = vpop.f32.mrb[138].mxu0 }
 0x209   :  { %v8774_v53 = vadd.f32 %v6063_v63, %v6062_v17  ;;  %v6065_v12 = vpop.f32.mrb[138].mxu1  ;;  %v6106_v9 = vpop.f32.mrb[139].mxu0 }
 0x20a   :  { %v6066_v1 = vpop.f32.mrb[139].mxu1  ;;  %v6107_v58 = vadd.f32 %v6106_v9, %v6105_v43  ;;  %v2541_v54 = vadd.f32 %v6104_v60, %v8729_v33 }
 0x20b   :  { %v8777_v23 = vadd.f32 %v6066_v1, %v6065_v12 }
 0x20c   :  { %v2544_v22 = vadd.f32 %v6107_v58, %v6043_v21  ;;  %v8784_v21 = vld [vmem:[%s9706_s2] ss:$0 sm:$0xff] }
 0x20e   :  { %v6108_v62 = vpop.f32.mrb[140].mxu0 }
 0x20f   :  { %v6068_v40 = vpop.f32.mrb[140].mxu1  ;;  %v6109_v34 = vpop.f32.mrb[141].mxu0 }
 0x210   :  { %v6069_v18 = vpop.f32.mrb[141].mxu1  ;;  %v6110_v36 = vadd.f32 %v6109_v34, %v6108_v62  ;;  %v6111_v19 = vpop.f32.mrb[142].mxu0 }
 0x211   :  { %v8779_v24 = vadd.f32 %v6069_v18, %v6068_v40  ;;  %v6071_v49 = vpop.f32.mrb[142].mxu1  ;;  %v6112_v61 = vpop.f32.mrb[143].mxu0 }
 0x212   :  { %v6072_v13 = vpop.f32.mrb[143].mxu1  ;;  %v2549_v30 = vadd.f32 %v6110_v36, %v6046_v25 }
 0x216   :  { %v6114_v11 = vpop.f32.mrb[144].mxu0 }
 0x217   :  { %v6655_v55 = vpop.f32.mrb[144].mxu1  ;;  %v6115_v52 = vpop.f32.mrb[145].mxu0 }
 0x218   :  { %v2630_v48 = vadd.f32 %v6655_v55, %v2533_v47  ;;  %v6116_v33 = vadd.f32 %v6115_v52, %v6114_v11  ;;  %v2621_v3 = vpop.f32.mrb[145].mxu1  ;;  %v6117_v0 = vpop.f32.mrb[146].mxu0 }
 0x219   :  { %v2622_v28 = vadd.f32 %v2621_v3, %v2525_v57  ;;  %v6656_v16 = vpop.f32.mrb[146].mxu1  ;;  %v6118_v14 = vpop.f32.mrb[147].mxu0 }
 0x21a   :  { %v2686_v29 = vmax.f32 %v8680_v46, %v2630_v48  ;;  %v2633_v38 = vadd.f32 %v6656_v16, %v2536_v2  ;;  %v6119_v4 = vadd.f32 %v6118_v14, %v6117_v0  ;;  %v2624_v25 = vpop.f32.mrb[147].mxu1  ;;  %v2557_v32 = vadd.f32 %v6116_v33, %v8765_v27 }
 0x21b   :  { %v2684_v42 = vmax.f32 %v8688_v15, %v2622_v28  ;;  %v2625_v47 = vadd.f32 %v2624_v25, %v2528_v37 }
 0x21c   :  { %v2709_v50 = vadd.f32 %v8784_v21, %v2686_v29  ;;  %v2687_v17 = vmax.f32 %v8694_v45, %v2633_v38  ;;  %v2560_v35 = vadd.f32 %v6119_v4, %v6055_v8 }
 0x21d   :  { %v2707_v63 = vadd.f32 %v8784_v21, %v2684_v42  ;;  %v2685_v57 = vmax.f32 %v8701_v59, %v2625_v47 }
 0x21e   :  { %v2710_v60 = vadd.f32 %v8784_v21, %v2687_v17  ;;  %v6120_v46 = vpop.f32.mrb[148].mxu0  ;;  %v2725_v27 = vmax.f32 %v2709_v50, 0.0 }
 0x21f   :  { %v2708_v2 = vadd.f32 %v8784_v21, %v2685_v57  ;;  %v6659_v43 = vpop.f32.mrb[148].mxu1  ;;  %v6121_v12 = vpop.f32.mrb[149].mxu0  ;;  %v2723_v45 = vmax.f32 %v2707_v63, 0.0 }
 0x220   :  { %v2726_v9 = vmax.f32 %v2710_v60, 0.0  ;;  %v8795_v15 = vadd.f32 %v6659_v43, %v2549_v30  ;;  %v6122_v37 = vadd.f32 %v6121_v12, %v6120_v46  ;;  %v2637_v1 = vpop.f32.mrb[149].mxu1  ;;  %v6123_v58 = vpop.f32.mrb[150].mxu0 }
 0x221   :  { %v2724_v8 = vmax.f32 %v2708_v2, 0.0  ;;  %v2638_v62 = vadd.f32 %v2637_v1, %v2541_v54  ;;  %v6660_v40 = vpop.f32.mrb[150].mxu1  ;;  %v6124_v34 = vpop.f32.mrb[151].mxu0 }
 0x222   :  { %v8797_v59 = vpack.c.bf16 %v2726_v9, %v2725_v27  ;;  %v2690_v18 = vmax.f32 %v8708_v31, %v8795_v15  ;;  %v6125_v36 = vadd.f32 %v6124_v34, %v6123_v58  ;;  %v2640_v19 = vpop.f32.mrb[151].mxu1  ;;  %v2565_v49 = vadd.f32 %v6122_v37, %v8769_v10  ;;  %v9099_v31 = vld [vmem:[%s9705_s3 + $0x1d8] sm:$0xff]  }
 0x223   :  { %v8802_v61 = vpack.c.bf16 %v2724_v8, %v2723_v45  ;;  %v8804_v13 = vpack.c.bf16 %v2725_v27, %v2724_v8  ;;  %v2688_v30 = vmax.f32 %v8715_v51, %v2638_v62  ;;  %v2641_v11 = vadd.f32 %v2640_v19, %v2544_v22  ;;  %v9106_v15 = vld [vmem:[%s9705_s3 + $0x258] sm:$0xff]  }
 0x224   :  { %v2568_v54 = vadd.f32 %v6125_v36, %v8772_v39 }
 0x225   :  { %v2711_v55 = vadd.f32 %v8784_v21, %v2688_v30  ;;  %v2689_v52 = vmax.f32 %v8721_v56, %v2641_v11  ;;  %v8843_v11 = vld [vmem:[%s9705_s3 + $0x100] sm:$0xff]  }
 0x226   :  { %v6126_v48 = vpop.f32.mrb[152].mxu0 }
 0x227   :  { %v8810_v33 = vmax.f32 %v2711_v55, 0.0  ;;  %v2712_v3 = vadd.f32 %v8784_v21, %v2689_v52  ;;  %v6663_v0 = vpop.f32.mrb[152].mxu1  ;;  %v6127_v10 = vpop.f32.mrb[153].mxu0 }
 0x228   :  { %v2662_v28 = vadd.f32 %v6663_v0, %v2565_v49  ;;  %v6128_v16 = vadd.f32 %v6127_v10, %v6126_v48  ;;  %v2653_v14 = vpop.f32.mrb[153].mxu1  ;;  %v6129_v29 = vpop.f32.mrb[154].mxu0  ;;  %v9799_v10 = vmov 0.0  }
 0x229   :  { %v8813_v38 = vmax.f32 %v2712_v3, 0.0  ;;  %v2654_v51 = vadd.f32 %v2653_v14, %v2557_v32  ;;  %v6664_v22 = vpop.f32.mrb[154].mxu1  ;;  %v6130_v39 = vpop.f32.mrb[155].mxu0  ;;  %v8816_v4 = vpack.c.bf16 %v8810_v33, %v2726_v9 }
 0x22a   :  { %v2694_v56 = vmax.f32 %v8727_v6, %v2662_v28  ;;  %v2665_v25 = vadd.f32 %v6664_v22, %v2568_v54  ;;  %v6131_v42 = vadd.f32 %v6130_v39, %v6129_v29  ;;  %v2656_v47 = vpop.f32.mrb[155].mxu1  ;;  %v2573_v50 = vadd.f32 %v6128_v16, %v8774_v53  ;;  %v8848_v54 = vld [vmem:[%s9705_s3 + $0x140] sm:$0xff]   ;;  %v8886_v29 = vld [vmem:[%s9705_s3 + $0x190] sm:$0xff]  }
 0x22b   :  { %v8822_v17 = vpack.c.bf16 %v8813_v38, %v8810_v33  ;;  %v2692_v63 = vmax.f32 %v8735_v26, %v2654_v51  ;;  %v2657_v57 = vadd.f32 %v2656_v47, %v2560_v35  ;;  %v8893_v51 = vld [vmem:[%s9705_s3 + $0x110] sm:$0xff]   ;;  %v8921_v47 = vld [vmem:[%s9705_s3 + $0x118] sm:$0xff]  }
 0x22c   :  { %v2717_v32 = vadd.f32 %v8784_v21, %v2694_v56  ;;  %v2695_v60 = vmax.f32 %v8741_v41, %v2665_v25  ;;  %v2576_v46 = vadd.f32 %v6131_v42, %v8777_v23  ;;  %v8898_v22 = vld [vmem:[%s9705_s3 + $0x150] sm:$0xff]   ;;  %v8908_v56 = vld [vmem:[%s9705_s3 + $0x198] sm:$0xff]  }
 0x22d   :  { %v2715_v6 = vadd.f32 %v8784_v21, %v2692_v63  ;;  %v2693_v2 = vmax.f32 %v8746_v20, %v2657_v57  ;;  %v8933_v63 = vld [vmem:[%s9705_s3 + $0x1a0] sm:$0xff]  }
 0x22e   :  { %v2718_v43 = vadd.f32 %v8784_v21, %v2695_v60  ;;  %v6132_v53 = vpop.f32.mrb[156].mxu0  ;;  %v2733_v37 = vmax.f32 %v2717_v32, 0.0  ;;  %v8942_v57 = vld [vmem:[%s9705_s3 + $0x120] sm:$0xff]   ;;  %v8951_v60 = vpack.c.bf16 %v8813_v38, %v8813_v38  ;;  %v8971_v38 = vld [vmem:[%s9705_s3 + $0x128] sm:$0xff]  }
 0x22f   :  { %v2716_v12 = vadd.f32 %v8784_v21, %v2693_v2  ;;  %v6667_v27 = vpop.f32.mrb[156].mxu1  ;;  %v6133_v9 = vpop.f32.mrb[157].mxu0  ;;  %v2731_v45 = vmax.f32 %v2715_v6, 0.0  ;;  %v8947_v32 = vld [vmem:[%s9705_s3 + $0x160] sm:$0xff]   ;;  %v8962_v6 = vld [vmem:[%s9705_s3 + $0x1a8] sm:$0xff]   ;;  %v8983_v2 = vld [vmem:[%s9705_s3 + $0x1b0] sm:$0xff]  }
 0x230   :  { %v2734_v26 = vmax.f32 %v2718_v43, 0.0  ;;  %v6134_v35 = vadd.f32 %v6133_v9, %v6132_v53  ;;  %v2669_v1 = vpop.f32.mrb[157].mxu1  ;;  %v6135_v58 = vpop.f32.mrb[158].mxu0  ;;  %v8993_v43 = vld [vmem:[%s9705_s3 + $0x130] sm:$0xff]   ;;  %v9017_v9 = vld [vmem:[%s9705_s3 + $0x178] sm:$0xff]  }
 0x231   :  { %v2732_v41 = vmax.f32 %v2716_v12, 0.0  ;;  %v2670_v8 = vadd.f32 %v2669_v1, %v2573_v50  ;;  %v6668_v23 = vpop.f32.mrb[158].mxu1  ;;  %v6136_v62 = vpop.f32.mrb[159].mxu0  ;;  %v8926_v50 = vld [vmem:[%s9705_s3 + $0x158] sm:$0xff]   ;;  %v8998_v53 = vld [vmem:[%s9705_s3 + $0x170] sm:$0xff]   ;;  %v9043_v1 = vld [vmem:[%s9705_s3 + $0x208] sm:$0xff]  }
 0x232   :  { %v8832_v40 = vpack.c.bf16 %v2734_v26, %v2733_v37  ;;  %v2581_v20 = vadd.f32 %v6134_v35, %v8779_v24  ;;  %v2672_v34 = vpop.f32.mrb[159].mxu1  ;;  %v9005_v12 = vld [vmem:[%s9705_s3 + $0x1b8] sm:$0xff]   ;;  %v9038_v35 = vld [vmem:[%s9705_s3 + $0x240] sm:$0xff]   ;;  %v9052_v58 = vld [vmem:[%s9705_s3 + $0x1c8] sm:$0xff]  }
 0x233   :  { %v8835_v36 = vpack.c.bf16 %v2732_v41, %v2731_v45  ;;  %v8837_v19 = vpack.c.bf16 %v2733_v37, %v2732_v41  ;;  %v2696_v49 = vmax.f32 %v8757_v5, %v2670_v8  ;;  %v2673_v30 = vadd.f32 %v2672_v34, %v2576_v46  ;;  %v8857_v5 = vld [vmem:[%s9705_s3 + $0x188] sm:$0xff]   ;;  %v9024_v37 = vld [vmem:[%s9705_s3 + $0x200] sm:$0xff]   ;;  %v9073_v41 = vld [vmem:[%s9705_s3 + $0x1d0] sm:$0xff]  }
 0x234   :  { %v2678_v55 = vadd.f32 %v6667_v27, %v2581_v20  ;;  %v8957_v46 = vpack.c.bf16 %v8810_v33, %v8810_v33  ;;  %v8976_v33 = vld [vmem:[%s9705_s3 + $0x168] sm:$0xff]   ;;  %v9012_v27 = vld [vmem:[%s9705_s3 + $0x138] sm:$0xff]   ;;  %v2713_v8 = vadd.f32 %v8784_v21, %v2690_v18  ;;  %v9084_v23 = vld [vmem:[%s9705_s3 + $0x250] sm:$0xff]  }
 0x235   :  { %v2719_v24 = vadd.f32 %v8784_v21, %v2696_v49  ;;  %v2697_v52 = vmax.f32 %v8763_v44, %v2673_v30  ;;  %3249 = vmatprep.mubr.bf16.mxu0 %v8835_v36  ;;  %3305 = vmatprep.mubr.bf16.mxu1 %v8837_v19  ;;  %v8868_v44 = vld [vmem:[%s9705_s3 + $0x108] sm:$0xff]   ;;  %v9089_v62 = vld [vmem:[%s9705_s3 + $0x218] sm:$0xff]   ;;  %v9111_v18 = vld [vmem:[%s9705_s3 + $0x220] sm:$0xff]  }
 0x236   :  { %v2698_v48 = vmax.f32 %v8752_v7, %v2678_v55  ;;  %3250 = vmatmul.mubr.bf16.vlgmr.msra.gmra.mrb[160].mxu0 %v8802_v61  ;;  %3306 = vmatmul.mubr.bf16.vlgmr.msra.gmra.mrb[160].mxu1 %v8804_v13  ;;  %v8873_v7 = vld [vmem:[%s9705_s3 + $0x148] sm:$0xff]   ;;  %v9120_v20 = vld [vmem:[%s9705_s3 + $0x1e0] sm:$0xff]  }
 0x237   :  { %v2735_v3 = vmax.f32 %v2719_v24, 0.0  ;;  %v2720_v0 = vadd.f32 %v8784_v21, %v2697_v52  ;;  %6670 = vmatpush3.bf16.msra.mxu0 %v8843_v11  ;;  %6234 = vmatpush3.bf16.msra.mxu1 %v8848_v54  ;;  %v9059_v45 = vld [vmem:[%s9705_s3 + $0x248] sm:$0xff]   ;;  %v9129_v49 = vld [vmem:[%s9705_s3 + $0x260] sm:$0xff]   ;;  %v9156_v52 = vld [vmem:[%s9705_s3 + $0x230] sm:$0xff]  }
 0x238   :  { %3257 = vmatprep.mubr.bf16.mxu0 %v8832_v40  ;;  %6671 = vmatprep.subr.bf16.mxu0 %v9799_v10  ;;  %v8878_v28 = vadd.f32 %v8784_v21, %v2698_v48  ;;  %v2729_v21 = vmax.f32 %v2713_v8, 0.0  ;;  %v9134_v30 = vld [vmem:[%s9705_s3 + $0x228] sm:$0xff]   ;;  %v9165_v48 = vld [vmem:[%s9705_s3 + $0x1f0] sm:$0xff]   ;;  %v7167_v8 = vld [vmem:[%s9705_s3 + $0x40] sm:$0xff]  }
 0x239   :  { %v2736_v16 = vmax.f32 %v2720_v0, 0.0  ;;  %6235 = vmatprep.subr.bf16.mxu1 %v8857_v5  ;;  %v8881_v14 = vpack.c.bf16 %v2735_v3, %v2734_v26  ;;  %v8914_v42 = vpack.c.bf16 %v2735_v3, %v2735_v3  ;;  %v9031_v26 = vld [vmem:[%s9705_s3 + $0x1c0] sm:$0xff]   ;;  %v9144_v55 = vld [vmem:[%s9705_s3 + $0x1e8] sm:$0xff]   ;;  %v9177_v0 = vld [vmem:[%s9705_s3 + $0x238] sm:$0xff]  }
 0x23a   :  { %v9122_v34 = vpack.c.bf16 %v2729_v21, %v2729_v21  ;;  %v9151_v24 = vld [vmem:[%s9705_s3 + $0x268] sm:$0xff]   ;;  %9800 = vst [vmem:[#allocation5_spill] sm:$0xff] %v9177_v0  ;;  %v7168_v21 = vld [vmem:[%s9705_s3 + $0xc0] sm:$0xff]  }
 0x23b   :  { %6672 = vmatpush3.bf16.msra.mxu0 %v8868_v44  ;;  %6236 = vmatpush3.bf16.msra.mxu1 %v8873_v7  ;;  %v8900_v39 = vpack.c.bf16 %v2736_v16, %v2735_v3  ;;  %v8910_v25 = vpack.c.bf16 %v2736_v16, %v2736_v16  ;;  %v9172_v3 = vld [vmem:[%s9705_s3 + $0x270] sm:$0xff]   ;;  %v9184_v16 = vld [vmem:[%s9705_s3 + $0x1f8] sm:$0xff]  }
 0x23c   :  { %3313 = vmatprep.mubr.bf16.mxu1 %v8881_v14  ;;  %6673 = vmatprep.subr.bf16.mxu0 %v9799_v10  ;;  %9801 = vst [vmem:[#allocation6_spill] sm:$0xff] %v9184_v16 }
 0x23d   :  { %6237 = vmatprep.subr.bf16.mxu1 %v8886_v29 }
 0x23e   :  { %3258 = vmatmul.mubr.bf16.gmra.mrb[164].mxu0 %v8797_v59  ;;  %3314 = vmatmul.mubr.bf16.gmra.mrb[164].mxu1 %v8816_v4 }
 0x23f   :  { %6674 = vmatpush3.bf16.msra.mxu0 %v8893_v51  ;;  %6238 = vmatpush3.bf16.msra.mxu1 %v8898_v22 }
 0x240   :  { %3265 = vmatprep.mubr.bf16.mxu0 %v8914_v42  ;;  %3321 = vmatprep.mubr.bf16.mxu1 %v8910_v25 }
 0x241   :  { %6675 = vmatprep.subr.bf16.mxu0 %v9799_v10  ;;  %6239 = vmatprep.subr.bf16.mxu1 %v8908_v56 }
 0x243   :  { %6676 = vmatpush3.bf16.msra.mxu0 %v8921_v47  ;;  %6240 = vmatpush3.bf16.msra.mxu1 %v8926_v50 }
 0x244   :  { %6677 = vmatprep.subr.bf16.mxu0 %v9799_v10  ;;  %6241 = vmatprep.subr.bf16.mxu1 %v8933_v63 }
 0x246   :  { %3266 = vmatmul.mubr.bf16.gmra.mrb[168].mxu0 %v8957_v46  ;;  %3322 = vmatmul.mubr.bf16.gmra.mrb[168].mxu1 %v8951_v60 }
 0x247   :  { %6678 = vmatpush3.bf16.msra.mxu0 %v8942_v57  ;;  %6242 = vmatpush3.bf16.msra.mxu1 %v8947_v32 }
 0x248   :  { %3738 = vmatprep.mubr.bf16.mxu1 %v8835_v36  ;;  %6679 = vmatprep.subr.bf16.mxu0 %v9799_v10 }
 0x249   :  { %6243 = vmatprep.subr.bf16.mxu1 %v8962_v6  ;;  %6685 = vmatprep.mubr.msk.bf16.mxu0 %vm7201_vm0, %v9799_v10 }
 0x24b   :  { %6680 = vmatpush3.bf16.msra.mxu0 %v8971_v38  ;;  %6244 = vmatpush3.bf16.msra.mxu1 %v8976_v33 }
 0x24c   :  { %6681 = vmatprep.subr.bf16.mxu0 %v9799_v10  ;;  %6245 = vmatprep.subr.bf16.mxu1 %v8983_v2 }
 0x24f   :  { %6682 = vmatpush3.bf16.msra.mxu0 %v8993_v43  ;;  %6246 = vmatpush3.bf16.msra.mxu1 %v8998_v53 }
 0x250   :  { %6683 = vmatprep.subr.bf16.mxu0 %v9799_v10  ;;  %6247 = vmatprep.subr.bf16.mxu1 %v9005_v12 }
 0x253   :  { %6684 = vmatpush3.bf16.msra.mxu0 %v9012_v27  ;;  %6248 = vmatpush3.bf16.msra.mxu1 %v9017_v9 }
 0x254   :  { %6267 = vmatprep.subr.bf16.mxu0 %v9024_v37  ;;  %6697 = vmatprep.subr.bf16.mxu1 %v9799_v10 }
 0x256   :  { %6686 = vmatmul.mubr.bf16.vlgmr.msra.gmra.mrb[172].mxu0 %v8797_v59  ;;  %3739 = vmatmul.mubr.bf16.vlgmr.msra.gmra.mrb[172].mxu1 %v8802_v61  ;;  %v9064_v61 = vld [vmem:[%s9705_s3 + $0x210] sm:$0xff]  }
 0x257   :  { %3746 = vmatprep.mubr.bf16.mxu1 %v8832_v40  ;;  %6268 = vmatpush3.bf16.msra.mxu0 %v9031_v26 }
 0x258   :  { %6698 = vmatpush3.bf16.msra.mxu1 %v9038_v35  ;;  %6269 = vmatprep.subr.bf16.mxu0 %v9043_v1 }
 0x259   :  { %6699 = vmatprep.subr.bf16.mxu1 %v9799_v10  ;;  %6689 = vmatprep.mubr.msk.bf16.mxu0 %vm7201_vm0, %v9799_v10 }
 0x25b   :  { %6270 = vmatpush3.bf16.msra.mxu0 %v9052_v58 }
 0x25c   :  { %6700 = vmatpush3.bf16.msra.mxu1 %v9059_v45  ;;  %6271 = vmatprep.subr.bf16.mxu0 %v9064_v61 }
 0x25d   :  { %6701 = vmatprep.subr.bf16.mxu1 %v9799_v10 }
 0x25e   :  { %6690 = vmatmul.mubr.bf16.gmra.mrb[176].mxu0 %v8822_v17  ;;  %3747 = vmatmul.mubr.bf16.gmra.mrb[176].mxu1 %v8797_v59 }
 0x25f   :  { %3754 = vmatprep.mubr.bf16.mxu1 %v8914_v42  ;;  %6272 = vmatpush3.bf16.msra.mxu0 %v9073_v41 }
 0x260   :  { %6702 = vmatpush3.bf16.msra.mxu1 %v9084_v23  ;;  %6273 = vmatprep.subr.bf16.mxu0 %v9089_v62 }
 0x261   :  { %6703 = vmatprep.subr.bf16.mxu1 %v9799_v10  ;;  %6693 = vmatprep.mubr.msk.bf16.mxu0 %vm7201_vm0, %v9799_v10 }
 0x263   :  { %6274 = vmatpush3.bf16.msra.mxu0 %v9099_v31 }
 0x264   :  { %6704 = vmatpush3.bf16.msra.mxu1 %v9106_v15  ;;  %6275 = vmatprep.subr.bf16.mxu0 %v9111_v18 }
 0x265   :  { %6705 = vmatprep.subr.bf16.mxu1 %v9799_v10 }
 0x266   :  { %6694 = vmatmul.mubr.bf16.gmra.mrb[180].mxu0 %v9122_v34  ;;  %3755 = vmatmul.mubr.bf16.gmra.mrb[180].mxu1 %v8957_v46  ;;  %v9191_v46 = vld [vmem:[%s9705_s3 + $0x278] sm:$0xff]  }
 0x267   :  { %6276 = vmatpush3.bf16.msra.mxu0 %v9120_v20  ;;  %3794 = vmatprep.mubr.bf16.mxu0 %v8837_v19  ;;  %9802 = vst [vmem:[#allocation8_spill] sm:$0xff] %v9191_v46 }
 0x268   :  { %6706 = vmatpush3.bf16.msra.mxu1 %v9129_v49  ;;  %6277 = vmatprep.subr.bf16.mxu0 %v9134_v30 }
 0x269   :  { %6707 = vmatprep.subr.bf16.mxu1 %v9799_v10  ;;  %6713 = vmatprep.mubr.msk.bf16.mxu1 %vm7201_vm0, %v9799_v10 }
 0x26b   :  { %6278 = vmatpush3.bf16.msra.mxu0 %v9144_v55 }
 0x26c   :  { %6708 = vmatpush3.bf16.msra.mxu1 %v9151_v24  ;;  %6279 = vmatprep.subr.bf16.mxu0 %v9156_v52 }
 0x26d   :  { %6709 = vmatprep.subr.bf16.mxu1 %v9799_v10 }
 0x26f   :  { %6280 = vmatpush3.bf16.msra.mxu0 %v9165_v48 }
 0x270   :  { %6710 = vmatpush3.bf16.msra.mxu1 %v9172_v3  ;;  %6281 = vmatprep.subr.bf16.mxu0 %v9177_v0  ;;  %v7191_v0 = vld [vmem:[%s9705_s3 + $0x70] sm:$0xff]  }
 0x271   :  { %6711 = vmatprep.subr.bf16.mxu1 %v9799_v10 }
 0x273   :  { %6282 = vmatpush3.bf16.msra.mxu0 %v9184_v16  ;;  %v7172_v16 = vld [vmem:[%s9705_s3 + $0xc8] sm:$0xff]  }
 0x274   :  { %6712 = vmatpush3.bf16.msra.mxu1 %v9191_v46  ;;  %6312 = vmatprep.subr.bf16.mxu0 %v7167_v8  ;;  %v7169_v46 = vld [vmem:[%s9705_s3] sm:$0xff]  }
 0x275   :  { %6346 = vmatprep.subr.bf16.mxu1 %v7168_v21  ;;  %v7170_v8 = vld [vmem:[%s9705_s3 + $0x80] sm:$0xff]   ;;  %v7171_v21 = vld [vmem:[%s9705_s3 + $0x48] sm:$0xff]  }
 0x276   :  { %3795 = vmatmul.mubr.bf16.vlgmr.msra.gmra.mrb[184].mxu0 %v8804_v13 }
 0x277   :  { %6714 = vmatmul.mubr.bf16.vlgmr.msra.gmra.mrb[184].mxu1 %v8797_v59  ;;  %3802 = vmatprep.mubr.bf16.mxu0 %v8881_v14 }
 0x278   :  { %6313 = vmatpush3.bf16.msra.mxu0 %v7169_v46  ;;  %6347 = vmatpush3.bf16.msra.mxu1 %v7170_v8  ;;  %v7173_v46 = vld [vmem:[%s9705_s3 + $0x8] sm:$0xff]  }
 0x279   :  { %6314 = vmatprep.subr.bf16.mxu0 %v7171_v21  ;;  %6348 = vmatprep.subr.bf16.mxu1 %v7172_v16  ;;  %v7174_v8 = vld [vmem:[%s9705_s3 + $0x88] sm:$0xff]   ;;  %v7175_v21 = vld [vmem:[%s9705_s3 + $0x50] sm:$0xff]  }
 0x27a   :  { %6717 = vmatprep.mubr.msk.bf16.mxu1 %vm7201_vm0, %v9799_v10  ;;  %v7176_v16 = vld [vmem:[%s9705_s3 + $0xd0] sm:$0xff]  }
 0x27c   :  { %6315 = vmatpush3.bf16.msra.mxu0 %v7173_v46  ;;  %6349 = vmatpush3.bf16.msra.mxu1 %v7174_v8  ;;  %v7177_v46 = vld [vmem:[%s9705_s3 + $0x10] sm:$0xff]  }
 0x27d   :  { %6316 = vmatprep.subr.bf16.mxu0 %v7175_v21  ;;  %6350 = vmatprep.subr.bf16.mxu1 %v7176_v16  ;;  %v7178_v8 = vld [vmem:[%s9705_s3 + $0x90] sm:$0xff]   ;;  %v7179_v21 = vld [vmem:[%s9705_s3 + $0x58] sm:$0xff]  }
 0x27e   :  { %3803 = vmatmul.mubr.bf16.gmra.mrb[188].mxu0 %v8816_v4  ;;  %v7180_v16 = vld [vmem:[%s9705_s3 + $0xd8] sm:$0xff]  }
 0x27f   :  { %6718 = vmatmul.mubr.bf16.gmra.mrb[188].mxu1 %v8822_v17  ;;  %3810 = vmatprep.mubr.bf16.mxu0 %v8910_v25 }
 0x280   :  { %6317 = vmatpush3.bf16.msra.mxu0 %v7177_v46  ;;  %6351 = vmatpush3.bf16.msra.mxu1 %v7178_v8  ;;  %v7181_v46 = vld [vmem:[%s9705_s3 + $0x18] sm:$0xff]  }
 0x281   :  { %6318 = vmatprep.subr.bf16.mxu0 %v7179_v21  ;;  %6352 = vmatprep.subr.bf16.mxu1 %v7180_v16  ;;  %v7182_v8 = vld [vmem:[%s9705_s3 + $0x98] sm:$0xff]   ;;  %v7183_v21 = vld [vmem:[%s9705_s3 + $0x60] sm:$0xff]  }
 0x282   :  { %6721 = vmatprep.mubr.msk.bf16.mxu1 %vm7201_vm0, %v9799_v10  ;;  %v7184_v16 = vld [vmem:[%s9705_s3 + $0xe0] sm:$0xff]  }
 0x284   :  { %6319 = vmatpush3.bf16.msra.mxu0 %v7181_v46  ;;  %6353 = vmatpush3.bf16.msra.mxu1 %v7182_v8  ;;  %v7185_v46 = vld [vmem:[%s9705_s3 + $0x20] sm:$0xff]  }
 0x285   :  { %6320 = vmatprep.subr.bf16.mxu0 %v7183_v21  ;;  %6354 = vmatprep.subr.bf16.mxu1 %v7184_v16  ;;  %v7186_v8 = vld [vmem:[%s9705_s3 + $0xa0] sm:$0xff]   ;;  %v7187_v21 = vld [vmem:[%s9705_s3 + $0x68] sm:$0xff]  }
 0x286   :  { %3811 = vmatmul.mubr.bf16.gmra.mrb[192].mxu0 %v8951_v60  ;;  %v7188_v16 = vld [vmem:[%s9705_s3 + $0xe8] sm:$0xff]  }
 0x287   :  { %6722 = vmatmul.mubr.bf16.gmra.mrb[192].mxu1 %v9122_v34  ;;  %3951 = vmatprep.mubr.bf16.mxu0 %v8804_v13 }
 0x288   :  { %6321 = vmatpush3.bf16.msra.mxu0 %v7185_v46  ;;  %6355 = vmatpush3.bf16.msra.mxu1 %v7186_v8  ;;  %v7189_v46 = vld [vmem:[%s9705_s3 + $0x28] sm:$0xff]  }
 0x289   :  { %4007 = vmatprep.mubr.bf16.mxu1 %v8797_v59  ;;  %6322 = vmatprep.subr.bf16.mxu0 %v7187_v21  ;;  %v7190_v8 = vld [vmem:[%s9705_s3 + $0xa8] sm:$0xff]   ;;  %v7192_v21 = vld [vmem:[%s9705_s3 + $0xf0] sm:$0xff]  }
 0x28a   :  { %6356 = vmatprep.subr.bf16.mxu1 %v7188_v16  ;;  %v7193_v16 = vld [vmem:[%s9705_s3 + $0x30] sm:$0xff]  }
 0x28c   :  { %6323 = vmatpush3.bf16.msra.mxu0 %v7189_v46  ;;  %6357 = vmatpush3.bf16.msra.mxu1 %v7190_v8  ;;  %v7194_v46 = vld [vmem:[%s9705_s3 + $0xb0] sm:$0xff]   ;;  %v7195_v8 = vld [vmem:[%s9705_s3 + $0x78] sm:$0xff]  }
 0x28d   :  { %6324 = vmatprep.subr.bf16.mxu0 %v7191_v0  ;;  %6358 = vmatprep.subr.bf16.mxu1 %v7192_v21  ;;  %v7196_v0 = vld [vmem:[%s9705_s3 + $0xf8] sm:$0xff]  }
 0x28e   :  { %v7197_v21 = vld [vmem:[%s9705_s3 + $0x38] sm:$0xff]  }
 0x290   :  { %6325 = vmatpush3.bf16.msra.mxu0 %v7193_v16  ;;  %6359 = vmatpush3.bf16.msra.mxu1 %v7194_v46  ;;  %v7198_v16 = vld [vmem:[%s9705_s3 + $0xb8] sm:$0xff]   ;;  %v7199_v46 = vld [vmem:[%s9705_s3 + $0x180] sm:$0xff]  }
 0x291   :  { %6326 = vmatprep.subr.bf16.mxu0 %v7195_v8  ;;  %6360 = vmatprep.subr.bf16.mxu1 %v7196_v0 }
 0x294   :  { %6327 = vmatpush3.bf16.msra.mxu0 %v7197_v21  ;;  %6361 = vmatpush3.bf16.msra.mxu1 %v7198_v16  ;;  %v7094_v21 = vld [vmem:[%s9707_s5 + $0x88] sm:$0xff]  }
 0x295   :  { %6725 = vmatprep.subr.bf16.mxu0 %v9799_v10  ;;  %6391 = vmatprep.subr.bf16.mxu1 %v7199_v46 }
 0x297   :  { %3952 = vmatmul.mubr.bf16.vlgmr.msra.gmra.mrb[196].mxu0 %v8835_v36  ;;  %4008 = vmatmul.mubr.bf16.vlgmr.msra.gmra.mrb[196].mxu1 %v8837_v19 }
 0x298   :  { %3959 = vmatprep.mubr.bf16.mxu0 %v8816_v4  ;;  %4015 = vmatprep.mubr.bf16.mxu1 %v8822_v17 }
 0x299   :  { %6726 = vmatpush3.bf16.msra.mxu0 %v8843_v11  ;;  %6392 = vmatpush3.bf16.msra.mxu1 %v8848_v54  ;;  %v9805_v11 = vld [vmem:[#allocation8_spill] sm:$0xff] }
 0x29a   :  { %6727 = vmatprep.subr.bf16.mxu0 %v9799_v10  ;;  %6393 = vmatprep.subr.bf16.mxu1 %v8857_v5 }
 0x29d   :  { %6728 = vmatpush3.bf16.msra.mxu0 %v8868_v44  ;;  %6394 = vmatpush3.bf16.msra.mxu1 %v8873_v7 }
 0x29e   :  { %6729 = vmatprep.subr.bf16.mxu0 %v9799_v10  ;;  %6395 = vmatprep.subr.bf16.mxu1 %v8886_v29 }
 0x29f   :  { %3960 = vmatmul.mubr.bf16.gmra.mrb[200].mxu0 %v8832_v40  ;;  %4016 = vmatmul.mubr.bf16.gmra.mrb[200].mxu1 %v8881_v14 }
 0x2a0   :  { %3967 = vmatprep.mubr.bf16.mxu0 %v8951_v60  ;;  %4023 = vmatprep.mubr.bf16.mxu1 %v9122_v34 }
 0x2a1   :  { %6730 = vmatpush3.bf16.msra.mxu0 %v8893_v51  ;;  %6396 = vmatpush3.bf16.msra.mxu1 %v8898_v22 }
 0x2a2   :  { %6731 = vmatprep.subr.bf16.mxu0 %v9799_v10  ;;  %6397 = vmatprep.subr.bf16.mxu1 %v8908_v56 }
 0x2a5   :  { %6732 = vmatpush3.bf16.msra.mxu0 %v8921_v47  ;;  %6398 = vmatpush3.bf16.msra.mxu1 %v8926_v50 }
 0x2a6   :  { %6733 = vmatprep.subr.bf16.mxu0 %v9799_v10  ;;  %6399 = vmatprep.subr.bf16.mxu1 %v8933_v63 }
 0x2a7   :  { %3968 = vmatmul.mubr.bf16.gmra.mrb[204].mxu0 %v8914_v42  ;;  %4024 = vmatmul.mubr.bf16.gmra.mrb[204].mxu1 %v8910_v25 }
 0x2a8   :  { %4124 = vmatprep.mubr.bf16.mxu1 %v8804_v13  ;;  %6741 = vmatprep.mubr.msk.bf16.mxu0 %vm7201_vm0, %v9799_v10  ;;  %v2737_v13 = vmax.f32 %v8878_v28, 0.0 }
 0x2a9   :  { %6734 = vmatpush3.bf16.msra.mxu0 %v8942_v57  ;;  %6400 = vmatpush3.bf16.msra.mxu1 %v8947_v32 }
 0x2aa   :  { %6735 = vmatprep.subr.bf16.mxu0 %v9799_v10  ;;  %6401 = vmatprep.subr.bf16.mxu1 %v8962_v6 }
 0x2ad   :  { %6736 = vmatpush3.bf16.msra.mxu0 %v8971_v38  ;;  %6402 = vmatpush3.bf16.msra.mxu1 %v8976_v33 }
 0x2ae   :  { %6737 = vmatprep.subr.bf16.mxu0 %v9799_v10  ;;  %6403 = vmatprep.subr.bf16.mxu1 %v8983_v2 }
 0x2b1   :  { %6738 = vmatpush3.bf16.msra.mxu0 %v8993_v43  ;;  %6404 = vmatpush3.bf16.msra.mxu1 %v8998_v53 }
 0x2b2   :  { %6739 = vmatprep.subr.bf16.mxu0 %v9799_v10  ;;  %6405 = vmatprep.subr.bf16.mxu1 %v9005_v12 }
 0x2b5   :  { %6740 = vmatpush3.bf16.msra.mxu0 %v9012_v27  ;;  %6406 = vmatpush3.bf16.msra.mxu1 %v9017_v9 }
 0x2b6   :  { %6425 = vmatprep.subr.bf16.mxu0 %v9024_v37  ;;  %6753 = vmatprep.subr.bf16.mxu1 %v9799_v10 }
 0x2b8   :  { %6742 = vmatmul.mubr.bf16.vlgmr.msra.gmra.mrb[208].mxu0 %v8832_v40  ;;  %4125 = vmatmul.mubr.bf16.vlgmr.msra.gmra.mrb[208].mxu1 %v8835_v36  ;;  %v9804_v36 = vld [vmem:[#allocation6_spill] sm:$0xff] }
 0x2b9   :  { %4132 = vmatprep.mubr.bf16.mxu1 %v8816_v4  ;;  %6426 = vmatpush3.bf16.msra.mxu0 %v9031_v26  ;;  %v3918_v4 = vpack.c.bf16 %v2737_v13, %v2737_v13 }
 0x2ba   :  { %6754 = vmatpush3.bf16.msra.mxu1 %v9038_v35  ;;  %6427 = vmatprep.subr.bf16.mxu0 %v9043_v1 }
 0x2bb   :  { %6755 = vmatprep.subr.bf16.mxu1 %v9799_v10  ;;  %6745 = vmatprep.mubr.msk.bf16.mxu0 %vm7201_vm0, %v9799_v10 }
 0x2bd   :  { %6428 = vmatpush3.bf16.msra.mxu0 %v9052_v58 }
 0x2be   :  { %6756 = vmatpush3.bf16.msra.mxu1 %v9059_v45  ;;  %6429 = vmatprep.subr.bf16.mxu0 %v9064_v61 }
 0x2bf   :  { %6757 = vmatprep.subr.bf16.mxu1 %v9799_v10 }
 0x2c0   :  { %6746 = vmatmul.mubr.bf16.gmra.mrb[212].mxu0 %v8900_v39  ;;  %4133 = vmatmul.mubr.bf16.gmra.mrb[212].mxu1 %v8832_v40 }
 0x2c1   :  { %4140 = vmatprep.mubr.bf16.mxu1 %v8951_v60  ;;  %6430 = vmatpush3.bf16.msra.mxu0 %v9073_v41 }
 0x2c2   :  { %6758 = vmatpush3.bf16.msra.mxu1 %v9084_v23  ;;  %6431 = vmatprep.subr.bf16.mxu0 %v9089_v62  ;;  %v7083_v23 = vld [vmem:[%s9707_s5 + $0x40] sm:$0xff]  }
 0x2c3   :  { %6759 = vmatprep.subr.bf16.mxu1 %v9799_v10  ;;  %6749 = vmatprep.mubr.msk.bf16.mxu0 %vm7201_vm0, %v9799_v10  ;;  %v7084_v62 = vld [vmem:[%s9707_s5] sm:$0xff]  }
 0x2c5   :  { %6432 = vmatpush3.bf16.msra.mxu0 %v9099_v31  ;;  %v7085_v31 = vld [vmem:[%s9707_s5 + $0x48] sm:$0xff]  }
 0x2c6   :  { %6760 = vmatpush3.bf16.msra.mxu1 %v9106_v15  ;;  %6433 = vmatprep.subr.bf16.mxu0 %v9111_v18  ;;  %v7086_v15 = vld [vmem:[%s9707_s5 + $0x8] sm:$0xff]   ;;  %v7087_v18 = vld [vmem:[%s9707_s5 + $0x50] sm:$0xff]  }
 0x2c7   :  { %6761 = vmatprep.subr.bf16.mxu1 %v9799_v10 }
 0x2c8   :  { %6750 = vmatmul.mubr.bf16.gmra.mrb[216].mxu0 %v3918_v4  ;;  %4141 = vmatmul.mubr.bf16.gmra.mrb[216].mxu1 %v8914_v42 }
 0x2c9   :  { %6434 = vmatpush3.bf16.msra.mxu0 %v9120_v20  ;;  %4180 = vmatprep.mubr.bf16.mxu0 %v8797_v59  ;;  %v9803_v59 = vld [vmem:[#allocation5_spill] sm:$0xff]  ;;  %v7088_v20 = vld [vmem:[%s9707_s5 + $0x10] sm:$0xff]  }
 0x2ca   :  { %6762 = vmatpush3.bf16.msra.mxu1 %v9129_v49  ;;  %6435 = vmatprep.subr.bf16.mxu0 %v9134_v30  ;;  %v7090_v49 = vld [vmem:[%s9707_s5 + $0x80] sm:$0xff]   ;;  %v7091_v30 = vld [vmem:[%s9707_s5 + $0x58] sm:$0xff]  }
 0x2cb   :  { %6763 = vmatprep.subr.bf16.mxu1 %v9799_v10  ;;  %6769 = vmatprep.mubr.msk.bf16.mxu1 %vm7201_vm0, %v9799_v10 }
 0x2cd   :  { %6436 = vmatpush3.bf16.msra.mxu0 %v9144_v55  ;;  %v7092_v55 = vld [vmem:[%s9707_s5 + $0x18] sm:$0xff]  }
 0x2ce   :  { %6764 = vmatpush3.bf16.msra.mxu1 %v9151_v24  ;;  %6437 = vmatprep.subr.bf16.mxu0 %v9156_v52  ;;  %v7093_v24 = vld [vmem:[%s9707_s5 + $0xc8] sm:$0xff]  }
 0x2cf   :  { %6765 = vmatprep.subr.bf16.mxu1 %v9799_v10 }
 0x2d1   :  { %6438 = vmatpush3.bf16.msra.mxu0 %v9165_v48 }
 0x2d2   :  { %6766 = vmatpush3.bf16.msra.mxu1 %v9172_v3  ;;  %6439 = vmatprep.subr.bf16.mxu0 %v9803_v59 }
 0x2d3   :  { %6767 = vmatprep.subr.bf16.mxu1 %v9799_v10 }
 0x2d5   :  { %6440 = vmatpush3.bf16.msra.mxu0 %v9804_v36 }
 0x2d6   :  { %6768 = vmatpush3.bf16.msra.mxu1 %v9805_v11  ;;  %6470 = vmatprep.subr.bf16.mxu0 %v7083_v23  ;;  %v7095_v11 = vld [vmem:[%s9707_s5 + $0x60] sm:$0xff]   ;;  %v7113_v23 = vld [vmem:[%s9707_s5 + $0xb0] sm:$0xff]  }
 0x2d8   :  { %4181 = vmatmul.mubr.bf16.vlgmr.msra.gmra.mrb[220].mxu0 %v8837_v19 }
 0x2d9   :  { %6770 = vmatmul.mubr.bf16.vlgmr.msra.gmra.mrb[220].mxu1 %v8832_v40  ;;  %4188 = vmatprep.mubr.bf16.mxu0 %v8822_v17 }
 0x2da   :  { %6773 = vmatprep.mubr.msk.bf16.mxu1 %vm7201_vm0, %v9799_v10  ;;  %6471 = vmatpush3.bf16.msra.mxu0 %v7084_v62  ;;  %v7114_v62 = vld [vmem:[%s9707_s5 + $0xf8] sm:$0xff]  }
 0x2db   :  { %6472 = vmatprep.subr.bf16.mxu0 %v7085_v31  ;;  %v7116_v31 = vld [vmem:[%s9707_s5 + $0xb8] sm:$0xff]  }
 0x2de   :  { %6473 = vmatpush3.bf16.msra.mxu0 %v7086_v15 }
 0x2df   :  { %6474 = vmatprep.subr.bf16.mxu0 %v7087_v18 }
 0x2e0   :  { %4189 = vmatmul.mubr.bf16.gmra.mrb[224].mxu0 %v8881_v14 }
 0x2e1   :  { %6774 = vmatmul.mubr.bf16.gmra.mrb[224].mxu1 %v8900_v39  ;;  %4196 = vmatprep.mubr.bf16.mxu0 %v9122_v34  ;;  %v7089_v34 = vld [vmem:[%s9707_s5 + $0xc0] sm:$0xff]  }
 0x2e2   :  { %6777 = vmatprep.mubr.msk.bf16.mxu1 %vm7201_vm0, %v9799_v10  ;;  %6492 = vmatprep.subr.bf16.mxu1 %v7089_v34 }
 0x2e3   :  { %6493 = vmatpush3.bf16.msra.mxu1 %v7090_v49  ;;  %6475 = vmatpush3.bf16.msra.mxu0 %v7088_v20 }
 0x2e4   :  { %6476 = vmatprep.subr.bf16.mxu0 %v7091_v30  ;;  %6494 = vmatprep.subr.bf16.mxu1 %v7093_v24 }
 0x2e7   :  { %6477 = vmatpush3.bf16.msra.mxu0 %v7092_v55  ;;  %6495 = vmatpush3.bf16.msra.mxu1 %v7094_v21 }
 0x2e8   :  { %4197 = vmatmul.mubr.bf16.gmra.mrb[228].mxu0 %v8910_v25  ;;  %6478 = vmatprep.subr.bf16.mxu0 %v7095_v11 }
 0x2e9   :  { %6778 = vmatmul.mubr.bf16.gmra.mrb[228].mxu1 %v3918_v4 }
 0x309   :  { %v6170_v19 = vpop.f32.mrb[160].mxu0  ;;  %v6204_v54 = vpop.f32.mrb[160].mxu1 }
 0x30a   :  { %v6171_v40 = vpop.f32.mrb[161].mxu0  ;;  %v6205_v5 = vpop.f32.mrb[161].mxu1 }
 0x30b   :  { %v6172_v17 = vadd.f32 %v6171_v40, %v6170_v19  ;;  %v6206_v44 = vadd.f32 %v6205_v5, %v6204_v54  ;;  %v6173_v7 = vpop.f32.mrb[162].mxu0  ;;  %v6207_v28 = vpop.f32.mrb[162].mxu1  ;;  %v7096_v54 = vld [vmem:[%s9707_s5 + $0x20] sm:$0xff]   ;;  %v7097_v40 = vld [vmem:[%s9707_s5 + $0xd0] sm:$0xff]  }
 0x30c   :  { %v6174_v29 = vpop.f32.mrb[163].mxu0  ;;  %v6208_v14 = vpop.f32.mrb[163].mxu1  ;;  %v7098_v5 = vld [vmem:[%s9707_s5 + $0x90] sm:$0xff]   ;;  %6496 = vmatprep.subr.bf16.mxu1 %v7097_v40  ;;  %6479 = vmatpush3.bf16.msra.mxu0 %v7096_v54 }
 0x30d   :  { %v6175_v51 = vadd.f32 %v6174_v29, %v6173_v7  ;;  %v6209_v22 = vadd.f32 %v6208_v14, %v6207_v28  ;;  %v3308_v39 = vadd.f32 %v6206_v44, %v6172_v17  ;;  %6497 = vmatpush3.bf16.msra.mxu1 %v7098_v5  ;;  %v7099_v17 = vld [vmem:[%s9707_s5 + $0x68] sm:$0xff]   ;;  %v7101_v29 = vld [vmem:[%s9707_s5 + $0xd8] sm:$0xff]  }
 0x30e   :  { %v7100_v28 = vld [vmem:[%s9707_s5 + $0x28] sm:$0xff]   ;;  %6480 = vmatprep.subr.bf16.mxu0 %v7099_v17  ;;  %6498 = vmatprep.subr.bf16.mxu1 %v7101_v29 }
 0x30f   :  { %v3311_v56 = vadd.f32 %v6209_v22, %v6175_v51 }
 0x310   :  { %6481 = vmatpush3.bf16.msra.mxu0 %v7100_v28 }
 0x311   :  { %v6176_v42 = vpop.f32.mrb[164].mxu0  ;;  %v6210_v47 = vpop.f32.mrb[164].mxu1 }
 0x312   :  { %v6177_v50 = vpop.f32.mrb[165].mxu0  ;;  %v6211_v63 = vpop.f32.mrb[165].mxu1 }
 0x313   :  { %v6178_v25 = vadd.f32 %v6177_v50, %v6176_v42  ;;  %v6212_v57 = vadd.f32 %v6211_v63, %v6210_v47  ;;  %v6179_v32 = vpop.f32.mrb[166].mxu0  ;;  %v6213_v60 = vpop.f32.mrb[166].mxu1 }
 0x314   :  { %v6180_v6 = vpop.f32.mrb[167].mxu0  ;;  %v6214_v38 = vpop.f32.mrb[167].mxu1 }
 0x315   :  { %v6181_v33 = vadd.f32 %v6180_v6, %v6179_v32  ;;  %v6215_v2 = vadd.f32 %v6214_v38, %v6213_v60  ;;  %v9411_v43 = vadd.f32 %v6212_v57, %v6178_v25  ;;  %v7103_v57 = vld [vmem:[%s9707_s5 + $0x70] sm:$0xff]   ;;  %v7105_v6 = vld [vmem:[%s9707_s5 + $0xe0] sm:$0xff]  }
 0x316   :  { %v7104_v60 = vld [vmem:[%s9707_s5 + $0x30] sm:$0xff]   ;;  %6482 = vmatprep.subr.bf16.mxu0 %v7103_v57  ;;  %v7106_v38 = vld [vmem:[%s9707_s5 + $0xa0] sm:$0xff]  }
 0x317   :  { %v9413_v53 = vadd.f32 %v6215_v2, %v6181_v33  ;;  %6483 = vmatpush3.bf16.msra.mxu0 %v7104_v60  ;;  %v7107_v33 = vld [vmem:[%s9707_s5 + $0x78] sm:$0xff]  }
 0x318   :  { %6484 = vmatprep.subr.bf16.mxu0 %v7107_v33 }
 0x319   :  { %v6182_v12 = vpop.f32.mrb[168].mxu0  ;;  %v6216_v27 = vpop.f32.mrb[168].mxu1 }
 0x31a   :  { %v6183_v9 = vpop.f32.mrb[169].mxu0  ;;  %v6217_v37 = vpop.f32.mrb[169].mxu1 }
 0x31b   :  { %v6184_v26 = vadd.f32 %v6183_v9, %v6182_v12  ;;  %v6218_v35 = vadd.f32 %v6217_v37, %v6216_v27  ;;  %v6185_v1 = vpop.f32.mrb[170].mxu0  ;;  %v6219_v58 = vpop.f32.mrb[170].mxu1  ;;  %v7109_v12 = vld [vmem:[%s9707_s5 + $0xe8] sm:$0xff]  }
 0x31c   :  { %v6186_v45 = vpop.f32.mrb[171].mxu0  ;;  %v6220_v61 = vpop.f32.mrb[171].mxu1  ;;  %v7110_v58 = vld [vmem:[%s9707_s5 + $0xa8] sm:$0xff]  }
 0x31d   :  { %v9415_v41 = vadd.f32 %v6218_v35, %v6184_v26 }
 0x329   :  { %v3363_v52 = vpop.f32.mrb[172].mxu0  ;;  %v6249_v48 = vpop.f32.mrb[172].mxu1 }
 0x32a   :  { %v9450_v3 = vadd.f32 %v3363_v52, %v3308_v39  ;;  %v6687_v8 = vpop.f32.mrb[173].mxu0  ;;  %v6250_v0 = vpop.f32.mrb[173].mxu1  ;;  %v7102_v39 = vld [vmem:[%s9707_s5 + $0x98] sm:$0xff]  }
 0x32b   :  { %v9455_v16 = vadd.f32 %v6250_v0, %v6249_v48  ;;  %v3366_v46 = vpop.f32.mrb[174].mxu0  ;;  %v6252_v13 = vpop.f32.mrb[174].mxu1  ;;  %6499 = vmatpush3.bf16.msra.mxu1 %v7102_v39 }
 0x32c   :  { %v9457_v4 = vadd.f32 %v3366_v46, %v3311_v56  ;;  %v6688_v59 = vpop.f32.mrb[175].mxu0  ;;  %v6253_v36 = vpop.f32.mrb[175].mxu1  ;;  %6500 = vmatprep.subr.bf16.mxu1 %v7105_v6 }
 0x32d   :  { %v9462_v19 = vadd.f32 %v6253_v36, %v6252_v13 }
 0x32f   :  { %6501 = vmatpush3.bf16.msra.mxu1 %v7106_v38 }
 0x330   :  { %6502 = vmatprep.subr.bf16.mxu1 %v7109_v12 }
 0x331   :  { %v3371_v44 = vpop.f32.mrb[176].mxu0  ;;  %v6255_v7 = vpop.f32.mrb[176].mxu1 }
 0x332   :  { %v9483_v14 = vadd.f32 %v3371_v44, %v9411_v43  ;;  %v6691_v51 = vpop.f32.mrb[177].mxu0  ;;  %v6256_v22 = vpop.f32.mrb[177].mxu1 }
 0x333   :  { %v9488_v56 = vadd.f32 %v6256_v22, %v6255_v7  ;;  %v3374_v42 = vpop.f32.mrb[178].mxu0  ;;  %v6258_v47 = vpop.f32.mrb[178].mxu1  ;;  %6503 = vmatpush3.bf16.msra.mxu1 %v7110_v58 }
 0x334   :  { %v9491_v50 = vadd.f32 %v3374_v42, %v9413_v53  ;;  %v6692_v63 = vpop.f32.mrb[179].mxu0  ;;  %v6259_v25 = vpop.f32.mrb[179].mxu1  ;;  %v7108_v53 = vld [vmem:[%s9707_s5 + $0x38] sm:$0xff]  }
 0x335   :  { %v9496_v32 = vadd.f32 %v6259_v25, %v6258_v47  ;;  %6485 = vmatpush3.bf16.msra.mxu0 %v7108_v53 }
 0x336   :  { %6781 = vmatprep.subr.bf16.mxu0 %v9799_v10 }
 0x339   :  { %v3379_v2 = vpop.f32.mrb[180].mxu0  ;;  %v6261_v43 = vpop.f32.mrb[180].mxu1 }
 0x33a   :  { %v9517_v27 = vadd.f32 %v3379_v2, %v9415_v41  ;;  %v6695_v9 = vpop.f32.mrb[181].mxu0  ;;  %v6262_v37 = vpop.f32.mrb[181].mxu1  ;;  %v7111_v41 = vld [vmem:[%s9707_s5 + $0xf0] sm:$0xff]  }
 0x33b   :  { %v6263_v26 = vadd.f32 %v6262_v37, %v6261_v43  ;;  %v3382_v35 = vpop.f32.mrb[182].mxu0  ;;  %v6264_v1 = vpop.f32.mrb[182].mxu1  ;;  %6504 = vmatprep.subr.bf16.mxu1 %v7111_v41 }
 0x33c   :  { %v6696_v45 = vpop.f32.mrb[183].mxu0  ;;  %v6265_v61 = vpop.f32.mrb[183].mxu1  ;;  %6505 = vmatpush3.bf16.msra.mxu1 %v7113_v23 }
 0x33d   :  { %6506 = vmatprep.subr.bf16.mxu1 %v7114_v62 }
 0x340   :  { %6507 = vmatpush3.bf16.msra.mxu1 %v7116_v31 }
 0x341   :  { %6801 = vmatprep.subr.bf16.mxu1 %v9799_v10 }
 0x349   :  { %v6283_v15 = vpop.f32.mrb[184].mxu0 }
 0x34a   :  { %v3852_v18 = vpop.f32.mrb[184].mxu1  ;;  %v6284_v20 = vpop.f32.mrb[185].mxu0 }
 0x34b   :  { %v6285_v34 = vadd.f32 %v6284_v20, %v6283_v15  ;;  %v6715_v49 = vpop.f32.mrb[185].mxu1  ;;  %v6286_v30 = vpop.f32.mrb[186].mxu0 }
 0x34c   :  { %v3855_v55 = vpop.f32.mrb[186].mxu1  ;;  %v6287_v24 = vpop.f32.mrb[187].mxu0 }
 0x34d   :  { %v3797_v52 = vadd.f32 %v6285_v34, %v9455_v16  ;;  %v6288_v48 = vadd.f32 %v6287_v24, %v6286_v30  ;;  %v6716_v8 = vpop.f32.mrb[187].mxu1 }
 0x34f   :  { %v9537_v0 = vadd.f32 %v3852_v18, %v3797_v52  ;;  %v3800_v21 = vadd.f32 %v6288_v48, %v9462_v19 }
 0x351   :  { %v9540_v46 = vadd.f32 %v3855_v55, %v3800_v21  ;;  %v6289_v13 = vpop.f32.mrb[188].mxu0  ;;  %v3874_v59 = vmax.f32 %v9450_v3, %v9537_v0 }
 0x352   :  { %v3860_v36 = vpop.f32.mrb[188].mxu1  ;;  %v6290_v11 = vpop.f32.mrb[189].mxu0 }
 0x353   :  { %v6291_v54 = vadd.f32 %v6290_v11, %v6289_v13  ;;  %v6719_v40 = vpop.f32.mrb[189].mxu1  ;;  %v6292_v5 = vpop.f32.mrb[190].mxu0  ;;  %v3875_v16 = vmax.f32 %v9457_v4, %v9540_v46 }
 0x354   :  { %v3863_v17 = vpop.f32.mrb[190].mxu1  ;;  %v6293_v44 = vpop.f32.mrb[191].mxu0 }
 0x355   :  { %v3805_v7 = vadd.f32 %v6291_v54, %v9488_v56  ;;  %v6294_v28 = vadd.f32 %v6293_v44, %v6292_v5  ;;  %v6720_v19 = vpop.f32.mrb[191].mxu1 }
 0x357   :  { %v9547_v29 = vadd.f32 %v3860_v36, %v3805_v7  ;;  %v3808_v51 = vadd.f32 %v6294_v28, %v9496_v32 }
 0x359   :  { %v9550_v22 = vadd.f32 %v3863_v17, %v3808_v51  ;;  %v6295_v39 = vpop.f32.mrb[192].mxu0  ;;  %v3876_v42 = vmax.f32 %v9483_v14, %v9547_v29 }
 0x35a   :  { %v3868_v47 = vpop.f32.mrb[192].mxu1  ;;  %v6296_v63 = vpop.f32.mrb[193].mxu0 }
 0x35b   :  { %v6297_v25 = vadd.f32 %v6296_v63, %v6295_v39  ;;  %v6723_v57 = vpop.f32.mrb[193].mxu1  ;;  %v6298_v60 = vpop.f32.mrb[194].mxu0  ;;  %v3877_v56 = vmax.f32 %v9491_v50, %v9550_v22 }
 0x35c   :  { %v3871_v6 = vpop.f32.mrb[194].mxu1  ;;  %v6299_v38 = vpop.f32.mrb[195].mxu0 }
 0x35d   :  { %v3813_v33 = vadd.f32 %v6297_v25, %v6263_v26  ;;  %v6724_v2 = vpop.f32.mrb[195].mxu1 }
 0x35f   :  { %v9556_v43 = vadd.f32 %v3868_v47, %v3813_v33 }
 0x361   :  { %v3878_v32 = vmax.f32 %v9517_v27, %v9556_v43  ;;  %v9582_v27 = vld [vmem:[%s9708_s4] ss:$0 sm:$0xff] }
 0x36a   :  { %v6328_v53 = vpop.f32.mrb[196].mxu0  ;;  %v6362_v12 = vpop.f32.mrb[196].mxu1 }
 0x36b   :  { %v6329_v9 = vpop.f32.mrb[197].mxu0  ;;  %v6363_v37 = vpop.f32.mrb[197].mxu1 }
 0x36c   :  { %v6330_v35 = vadd.f32 %v6329_v9, %v6328_v53  ;;  %v6364_v1 = vadd.f32 %v6363_v37, %v6362_v12  ;;  %v6331_v58 = vpop.f32.mrb[198].mxu0  ;;  %v6365_v45 = vpop.f32.mrb[198].mxu1 }
 0x36d   :  { %v6332_v61 = vpop.f32.mrb[199].mxu0  ;;  %v6366_v41 = vpop.f32.mrb[199].mxu1 }
 0x36e   :  { %v6333_v23 = vadd.f32 %v6332_v61, %v6331_v58  ;;  %v6367_v62 = vadd.f32 %v6366_v41, %v6365_v45  ;;  %v4010_v31 = vadd.f32 %v6364_v1, %v6330_v35 }
 0x370   :  { %v4013_v26 = vadd.f32 %v6367_v62, %v6333_v23 }
 0x372   :  { %v6334_v15 = vpop.f32.mrb[200].mxu0  ;;  %v6368_v18 = vpop.f32.mrb[200].mxu1 }
 0x373   :  { %v6335_v20 = vpop.f32.mrb[201].mxu0  ;;  %v6369_v34 = vpop.f32.mrb[201].mxu1 }
 0x374   :  { %v6336_v49 = vadd.f32 %v6335_v20, %v6334_v15  ;;  %v6370_v30 = vadd.f32 %v6369_v34, %v6368_v18  ;;  %v6337_v55 = vpop.f32.mrb[202].mxu0  ;;  %v6371_v24 = vpop.f32.mrb[202].mxu1 }
 0x375   :  { %v6338_v52 = vpop.f32.mrb[203].mxu0  ;;  %v6372_v48 = vpop.f32.mrb[203].mxu1 }
 0x376   :  { %v6339_v8 = vadd.f32 %v6338_v52, %v6337_v55  ;;  %v6373_v21 = vadd.f32 %v6372_v48, %v6371_v24  ;;  %v4018_v13 = vadd.f32 %v6370_v30, %v6336_v49 }
 0x378   :  { %v4021_v36 = vadd.f32 %v6373_v21, %v6339_v8 }
 0x37a   :  { %v6340_v11 = vpop.f32.mrb[204].mxu0  ;;  %v6374_v54 = vpop.f32.mrb[204].mxu1 }
 0x37b   :  { %v6341_v40 = vpop.f32.mrb[205].mxu0  ;;  %v6375_v5 = vpop.f32.mrb[205].mxu1 }
 0x37c   :  { %v6342_v17 = vadd.f32 %v6341_v40, %v6340_v11  ;;  %v6376_v44 = vadd.f32 %v6375_v5, %v6374_v54  ;;  %v6343_v7 = vpop.f32.mrb[206].mxu0  ;;  %v6377_v28 = vpop.f32.mrb[206].mxu1 }
 0x37d   :  { %v6344_v19 = vpop.f32.mrb[207].mxu0  ;;  %v6378_v51 = vpop.f32.mrb[207].mxu1 }
 0x37e   :  { %v4026_v39 = vadd.f32 %v6376_v44, %v6342_v17 }
 0x38b   :  { %v4065_v47 = vpop.f32.mrb[208].mxu0  ;;  %v6407_v63 = vpop.f32.mrb[208].mxu1 }
 0x38c   :  { %v4066_v25 = vadd.f32 %v4065_v47, %v4010_v31  ;;  %v6743_v57 = vpop.f32.mrb[209].mxu0  ;;  %v6408_v60 = vpop.f32.mrb[209].mxu1 }
 0x38d   :  { %v6409_v6 = vadd.f32 %v6408_v60, %v6407_v63  ;;  %v4068_v38 = vpop.f32.mrb[210].mxu0  ;;  %v6410_v33 = vpop.f32.mrb[210].mxu1 }
 0x38e   :  { %v4087_v2 = vmax.f32 %v3874_v59, %v4066_v25  ;;  %v4069_v53 = vadd.f32 %v4068_v38, %v4013_v26  ;;  %v6744_v12 = vpop.f32.mrb[211].mxu0  ;;  %v6411_v9 = vpop.f32.mrb[211].mxu1 }
 0x38f   :  { %v6412_v37 = vadd.f32 %v6411_v9, %v6410_v33 }
 0x390   :  { %v4088_v35 = vmax.f32 %v3875_v16, %v4069_v53 }
 0x393   :  { %v4073_v1 = vpop.f32.mrb[212].mxu0  ;;  %v6413_v58 = vpop.f32.mrb[212].mxu1 }
 0x394   :  { %v4074_v45 = vadd.f32 %v4073_v1, %v4018_v13  ;;  %v6747_v61 = vpop.f32.mrb[213].mxu0  ;;  %v6414_v41 = vpop.f32.mrb[213].mxu1 }
 0x395   :  { %v6415_v23 = vadd.f32 %v6414_v41, %v6413_v58  ;;  %v4076_v62 = vpop.f32.mrb[214].mxu0  ;;  %v6416_v31 = vpop.f32.mrb[214].mxu1 }
 0x396   :  { %v4089_v3 = vmax.f32 %v3876_v42, %v4074_v45  ;;  %v4077_v0 = vadd.f32 %v4076_v62, %v4021_v36  ;;  %v6748_v59 = vpop.f32.mrb[215].mxu0  ;;  %v6417_v26 = vpop.f32.mrb[215].mxu1 }
 0x397   :  { %v6418_v15 = vadd.f32 %v6417_v26, %v6416_v31 }
 0x398   :  { %v9572_v4 = vmax.f32 %v3877_v56, %v4077_v0 }
 0x39b   :  { %v4081_v46 = vpop.f32.mrb[216].mxu0  ;;  %v6419_v16 = vpop.f32.mrb[216].mxu1 }
 0x39c   :  { %v4082_v18 = vadd.f32 %v4081_v46, %v4026_v39  ;;  %v6751_v20 = vpop.f32.mrb[217].mxu0  ;;  %v6420_v34 = vpop.f32.mrb[217].mxu1  ;;  %v7115_v46 = vld [vmem:[%s9707_s5 + $0x108] sm:$0xff]  }
 0x39d   :  { %v6421_v49 = vadd.f32 %v6420_v34, %v6419_v16  ;;  %v4084_v30 = vpop.f32.mrb[218].mxu0  ;;  %v6422_v55 = vpop.f32.mrb[218].mxu1 }
 0x39e   :  { %v9577_v14 = vmax.f32 %v3878_v32, %v4082_v18  ;;  %v6752_v29 = vpop.f32.mrb[219].mxu0  ;;  %v6423_v42 = vpop.f32.mrb[219].mxu1  ;;  %v7117_v30 = vld [vmem:[%s9707_s5 + $0x110] sm:$0xff]  }
 0x39f   :  { %v7118_v29 = vld [vmem:[%s9707_s5 + $0x118] sm:$0xff]   ;;  %v7120_v42 = vld [vmem:[%s9707_s5 + $0x128] sm:$0xff]  }
 0x3ab   :  { %v6441_v24 = vpop.f32.mrb[220].mxu0 }
 0x3ac   :  { %v4238_v52 = vpop.f32.mrb[220].mxu1  ;;  %v6442_v50 = vpop.f32.mrb[221].mxu0 }
 0x3ad   :  { %v6443_v22 = vadd.f32 %v6442_v50, %v6441_v24  ;;  %v6771_v56 = vpop.f32.mrb[221].mxu1  ;;  %v6444_v48 = vpop.f32.mrb[222].mxu0  ;;  %v7121_v24 = vld [vmem:[%s9707_s5 + $0x130] sm:$0xff]   ;;  %v7122_v50 = vld [vmem:[%s9707_s5 + $0x138] sm:$0xff]  }
 0x3ae   :  { %v4241_v8 = vpop.f32.mrb[222].mxu1  ;;  %v6445_v21 = vpop.f32.mrb[223].mxu0 }
 0x3af   :  { %v4183_v13 = vadd.f32 %v6443_v22, %v6409_v6  ;;  %v6446_v36 = vadd.f32 %v6445_v21, %v6444_v48  ;;  %v6772_v11 = vpop.f32.mrb[223].mxu1  ;;  %v7123_v48 = vld [vmem:[%s9709_s7] sm:$0xff]   ;;  %v7125_v21 = vld [vmem:[%s9709_s7 + $0x10] sm:$0xff]  }
 0x3b0   :  { %v7128_v11 = vld [vmem:[%s9709_s7 + $0x28] sm:$0xff]  }
 0x3b1   :  { %v4239_v54 = vadd.f32 %v4238_v52, %v4183_v13  ;;  %v4186_v40 = vadd.f32 %v6446_v36, %v6412_v37  ;;  %v7126_v13 = vld [vmem:[%s9709_s7 + $0x18] sm:$0xff]   ;;  %v7127_v36 = vld [vmem:[%s9709_s7 + $0x20] sm:$0xff]  }
 0x3b3   :  { %v4260_v43 = vmax.f32 %v4087_v2, %v4239_v54  ;;  %v4242_v32 = vadd.f32 %v4241_v8, %v4186_v40  ;;  %v6447_v5 = vpop.f32.mrb[224].mxu0  ;;  %v7124_v8 = vld [vmem:[%s9709_s7 + $0x8] sm:$0xff]   ;;  %v7129_v54 = vld [vmem:[%s9709_s7 + $0x30] sm:$0xff]   ;;  %v7130_v40 = vld [vmem:[%s9709_s7 + $0x38] sm:$0xff]  }
 0x3b4   :  { %v4246_v17 = vpop.f32.mrb[224].mxu1  ;;  %v6448_v44 = vpop.f32.mrb[225].mxu0 }
 0x3b5   :  { %v4272_v7 = vadd.f32 %v9582_v27, %v4260_v43  ;;  %v4261_v28 = vmax.f32 %v4088_v35, %v4242_v32  ;;  %v6449_v19 = vadd.f32 %v6448_v44, %v6447_v5  ;;  %v6775_v51 = vpop.f32.mrb[225].mxu1  ;;  %v6450_v39 = vpop.f32.mrb[226].mxu0  ;;  %v7112_v35 = vld [vmem:[%s9707_s5 + $0x100] sm:$0xff]   ;;  %v7132_v43 = vld [vmem:[%s9710_s9 + $0x8] sm:$0xff]   ;;  %v7133_v32 = vld [vmem:[%s9710_s9 + $0x10] sm:$0xff]  }
 0x3b6   :  { %v4249_v47 = vpop.f32.mrb[226].mxu1  ;;  %v6451_v63 = vpop.f32.mrb[227].mxu0  ;;  %v7134_v5 = vld [vmem:[%s9710_s9 + $0x18] sm:$0xff]   ;;  %v7136_v44 = vld [vmem:[%s9710_s9 + $0x28] sm:$0xff]  }
 0x3b7   :  { %v4191_v25 = vadd.f32 %v6449_v19, %v6415_v23  ;;  %v6452_v57 = vadd.f32 %v6451_v63, %v6450_v39  ;;  %v6776_v60 = vpop.f32.mrb[227].mxu1  ;;  %v4273_v6 = vadd.f32 %v9582_v27, %v4261_v28  ;;  %v4277_v38 = vmax.f32 %v4272_v7, 0.0 }
 0x3b9   :  { %v4247_v33 = vadd.f32 %v4246_v17, %v4191_v25  ;;  %v4194_v2 = vadd.f32 %v6452_v57, %v6418_v15  ;;  %v4278_v53 = vmax.f32 %v4273_v6, 0.0  ;;  %v4282_v58 = vpack.c.bf16 %v4277_v38, %v4277_v38  ;;  %v7135_v17 = vld [vmem:[%s9710_s9 + $0x20] sm:$0xff]  }
 0x3bb   :  { %v4262_v12 = vmax.f32 %v4089_v3, %v4247_v33  ;;  %v4250_v9 = vadd.f32 %v4249_v47, %v4194_v2  ;;  %v6453_v37 = vpop.f32.mrb[228].mxu0  ;;  %v4283_v1 = vpack.c.bf16 %v4278_v53, %v4278_v53  ;;  %v5519_v47 = vld [vmem:[%s9711_s6] ss:$0 sm:$0xff] }
 0x3bc   :  { %v4254_v45 = vpop.f32.mrb[228].mxu1  ;;  %v6454_v61 = vpop.f32.mrb[229].mxu0 }
 0x3bd   :  { %v4274_v41 = vadd.f32 %v9582_v27, %v4262_v12  ;;  %v4263_v23 = vmax.f32 %v9572_v4, %v4250_v9  ;;  %v6455_v62 = vadd.f32 %v6454_v61, %v6453_v37  ;;  %v6779_v31 = vpop.f32.mrb[229].mxu1  ;;  %v6456_v0 = vpop.f32.mrb[230].mxu0  ;;  %4646 = vmatprep.mubr.bf16.mxu0 %v4283_v1  ;;  %v5560_v61 = vld [vmem:[%s9712_s8] ss:$0 sm:$0xff] }
 0x3be   :  { %v4257_v59 = vpop.f32.mrb[230].mxu1  ;;  %v6457_v3 = vpop.f32.mrb[231].mxu0  ;;  %4647 = vmatmul.mubr.bf16.vlgmr.msra.gmra.mrb[232].mxu0 %v4282_v58  ;;  %v7137_v58 = vld [vmem:[%s9710_s9 + $0x30] sm:$0xff]  }
 0x3bf   :  { %v4199_v26 = vadd.f32 %v6455_v62, %v6421_v49  ;;  %v6780_v15 = vpop.f32.mrb[231].mxu1  ;;  %6782 = vmatpush3.bf16.msra.mxu0 %v7112_v35  ;;  %v4275_v16 = vadd.f32 %v9582_v27, %v4263_v23  ;;  %6797 = vmatprep.mubr.msk.bf16.mxu0 %vm7201_vm0, %v9799_v10  ;;  %v4279_v4 = vmax.f32 %v4274_v41, 0.0 }
 0x3c0   :  { %6783 = vmatprep.subr.bf16.mxu0 %v9799_v10 }
 0x3c1   :  { %v4255_v18 = vadd.f32 %v4254_v45, %v4199_v26  ;;  %v4280_v20 = vmax.f32 %v4275_v16, 0.0  ;;  %v4284_v55 = vpack.c.bf16 %v4279_v4, %v4279_v4  ;;  %v7138_v45 = vld [vmem:[%s9710_s9 + $0x38] sm:$0xff]  }
 0x3c3   :  { %v4264_v34 = vmax.f32 %v9577_v14, %v4255_v18  ;;  %6784 = vmatpush3.bf16.msra.mxu0 %v7115_v46  ;;  %v4285_v49 = vpack.c.bf16 %v4280_v20, %v4280_v20  ;;  %v7119_v14 = vld [vmem:[%s9707_s5 + $0x120] sm:$0xff]  }
 0x3c4   :  { %6785 = vmatprep.subr.bf16.mxu0 %v9799_v10 }
 0x3c5   :  { %4686 = vmatprep.mubr.bf16.mxu1 %v4285_v49  ;;  %v4276_v52 = vadd.f32 %v9582_v27, %v4264_v34  ;;  %v7131_v27 = vld [vmem:[%s9710_s9] sm:$0xff]  }
 0x3c6   :  { %4687 = vmatmul.mubr.bf16.vlgmr.msra.gmra.mrb[232].mxu1 %v4284_v55 }
 0x3c7   :  { %6786 = vmatpush3.bf16.msra.mxu0 %v7117_v30  ;;  %6817 = vmatprep.mubr.msk.bf16.mxu1 %vm7201_vm0, %v9799_v10  ;;  %v4281_v22 = vmax.f32 %v4276_v52, 0.0 }
 0x3c8   :  { %6787 = vmatprep.subr.bf16.mxu0 %v9799_v10  ;;  %6802 = vmatpush3.bf16.msra.mxu1 %v7123_v48 }
 0x3c9   :  { %v4286_v56 = vpack.c.bf16 %v4281_v22, %v4281_v22  ;;  %6803 = vmatprep.subr.bf16.mxu1 %v9799_v10 }
 0x3cb   :  { %6788 = vmatpush3.bf16.msra.mxu0 %v7118_v29 }
 0x3cc   :  { %6789 = vmatprep.subr.bf16.mxu0 %v9799_v10  ;;  %6804 = vmatpush3.bf16.msra.mxu1 %v7124_v8 }
 0x3cd   :  { %6805 = vmatprep.subr.bf16.mxu1 %v9799_v10 }
 0x3cf   :  { %6790 = vmatpush3.bf16.msra.mxu0 %v7119_v14 }
 0x3d0   :  { %6791 = vmatprep.subr.bf16.mxu0 %v9799_v10  ;;  %6806 = vmatpush3.bf16.msra.mxu1 %v7125_v21 }
 0x3d1   :  { %6807 = vmatprep.subr.bf16.mxu1 %v9799_v10 }
 0x3d3   :  { %6792 = vmatpush3.bf16.msra.mxu0 %v7120_v42 }
 0x3d4   :  { %6793 = vmatprep.subr.bf16.mxu0 %v9799_v10  ;;  %6808 = vmatpush3.bf16.msra.mxu1 %v7126_v13 }
 0x3d5   :  { %6809 = vmatprep.subr.bf16.mxu1 %v9799_v10 }
 0x3d7   :  { %6794 = vmatpush3.bf16.msra.mxu0 %v7121_v24 }
 0x3d8   :  { %6795 = vmatprep.subr.bf16.mxu0 %v9799_v10  ;;  %6810 = vmatpush3.bf16.msra.mxu1 %v7127_v36 }
 0x3d9   :  { %6811 = vmatprep.subr.bf16.mxu1 %v9799_v10 }
 0x3db   :  { %6796 = vmatpush3.bf16.msra.mxu0 %v7122_v50 }
 0x3dc   :  { %6821 = vmatprep.subr.bf16.mxu0 %v9799_v10  ;;  %6812 = vmatpush3.bf16.msra.mxu1 %v7128_v11 }
 0x3dd   :  { %6813 = vmatprep.subr.bf16.mxu1 %v9799_v10 }
 0x3de   :  { %6798 = vmatmul.mubr.bf16.vlgmr.msra.gmra.mrb[236].mxu0 %v4286_v56 }
 0x3df   :  { %6837 = vmatprep.mubr.msk.bf16.mxu0 %vm7201_vm0, %v9799_v10  ;;  %6822 = vmatpush3.bf16.msra.mxu0 %v7131_v27 }
 0x3e0   :  { %6814 = vmatpush3.bf16.msra.mxu1 %v7129_v54  ;;  %6823 = vmatprep.subr.bf16.mxu0 %v9799_v10 }
 0x3e1   :  { %6815 = vmatprep.subr.bf16.mxu1 %v9799_v10 }
 0x3e3   :  { %6824 = vmatpush3.bf16.msra.mxu0 %v7132_v43 }
 0x3e4   :  { %6816 = vmatpush3.bf16.msra.mxu1 %v7130_v40  ;;  %6825 = vmatprep.subr.bf16.mxu0 %v9799_v10 }
 0x3e7   :  { %6826 = vmatpush3.bf16.msra.mxu0 %v7133_v32 }
 0x3e8   :  { %6827 = vmatprep.subr.bf16.mxu0 %v9799_v10 }
 0x3eb   :  { %6828 = vmatpush3.bf16.msra.mxu0 %v7134_v5 }
 0x3ec   :  { %6829 = vmatprep.subr.bf16.mxu0 %v9799_v10 }
 0x3ef   :  { %6830 = vmatpush3.bf16.msra.mxu0 %v7135_v17 }
 0x3f0   :  { %6831 = vmatprep.subr.bf16.mxu0 %v9799_v10 }
 0x3f3   :  { %6832 = vmatpush3.bf16.msra.mxu0 %v7136_v44 }
 0x3f4   :  { %6833 = vmatprep.subr.bf16.mxu0 %v9799_v10 }
 0x3f7   :  { %6834 = vmatpush3.bf16.msra.mxu0 %v7137_v58 }
 0x3f8   :  { %6835 = vmatprep.subr.bf16.mxu0 %v9799_v10  ;;  %v5569_v10 = vld [vmem:[%s9713_s10] ss:$0 sm:$0xff] }
 0x3fb   :  { %6836 = vmatpush3.bf16.msra.mxu0 %v7138_v45 }
 0x491   :  { %v6486_v7 = vpop.f32.mrb[232].mxu0 }
 0x492   :  { %v6487_v28 = vpop.f32.mrb[233].mxu0 }
 0x493   :  { %v6488_v19 = vadd.f32 %v6487_v28, %v6486_v7  ;;  %v6489_v51 = vpop.f32.mrb[234].mxu0 }
 0x494   :  { %v6490_v39 = vpop.f32.mrb[235].mxu0 }
 0x495   :  { %v4649_v57 = vadd.f32 %v6488_v19, %v5519_v47 }
 0x499   :  { %v6508_v63 = vpop.f32.mrb[232].mxu1 }
 0x49a   :  { %v6509_v25 = vpop.f32.mrb[233].mxu1 }
 0x49b   :  { %v6510_v60 = vadd.f32 %v6509_v25, %v6508_v63  ;;  %v6511_v6 = vpop.f32.mrb[234].mxu1 }
 0x49c   :  { %v6512_v38 = vpop.f32.mrb[235].mxu1 }
 0x49d   :  { %v4689_v33 = vadd.f32 %v6510_v60, %v4649_v57 }
 0x4b1   :  { %v4728_v2 = vpop.f32.mrb[236].mxu0 }
 0x4b2   :  { %v4729_v53 = vadd.f32 %v4728_v2, %v4689_v33  ;;  %v6799_v12 = vpop.f32.mrb[237].mxu0 }
 0x4b3   :  { %v4731_v9 = vpop.f32.mrb[238].mxu0 }
 0x4b4   :  { %v4734_v37 = vmax.f32 %v4729_v53, 0.0  ;;  %v6800_v1 = vpop.f32.mrb[239].mxu0 }
 0x4b6   :  { %v4735_v35 = vpack.c.bf16 %v4734_v37, %v4734_v37 }
 0x4b8   :  { %6818 = vmatmul.mubr.bf16.vlgmr.msra.gmra.mrb[236].mxu1 %v4735_v35 }
 0x58b   :  { %v4841_v41 = vpop.f32.mrb[236].mxu1 }
 0x58c   :  { %v4842_v23 = vadd.f32 %v5560_v61, %v4841_v41  ;;  %v6819_v62 = vpop.f32.mrb[237].mxu1 }
 0x58d   :  { %v4844_v31 = vpop.f32.mrb[238].mxu1 }
 0x58e   :  { %v4847_v0 = vmax.f32 %v4842_v23, 0.0  ;;  %v6820_v59 = vpop.f32.mrb[239].mxu1 }
 0x590   :  { %v4848_v3 = vpack.c.bf16 %v4847_v0, %v4847_v0 }
 0x592   :  { %6838 = vmatmul.mubr.bf16.vlgmr.msra.gmra.mrb[240].mxu0 %v4848_v3 }
 0x665   :  { %v4954_v26 = vpop.f32.mrb[240].mxu0 }
 0x666   :  { %v4955_v15 = vadd.f32 %v5569_v10, %v4954_v26  ;;  %v6839_v46 = vpop.f32.mrb[241].mxu0 }
 0x667   :  { %v4957_v16 = vpop.f32.mrb[242].mxu0 }
 0x668   :  { %4960 = vst [vmem:[%s9714_s11] sm:$0xff] %v4955_v15  ;;  %v6840_v4 = vpop.f32.mrb[243].mxu0 }

</bundles_post_ra>
